<compile_context>
chip_gen: v5e
topology: v5e:2x2
jax: 0.10.0
libtpu: 0.0.40
codegen_flags: <defaults>
</compile_context>

<pallas_src>
import functools

import jax
import jax.numpy as jnp
import numpy as np
from jax.experimental import pallas as pl
from jax.experimental.pallas import tpu as pltpu

VMEM = pl.BlockSpec(memory_space=pltpu.MemorySpace.VMEM)
SMEM = pl.BlockSpec(memory_space=pltpu.MemorySpace.SMEM)
ANY = pl.BlockSpec(memory_space=pl.ANY)

LPOS_PAD = 128  # lane-dense pad width for the positive logit


# ------------------------------ fused kernel -------------------------------

def _moco_step_kernel(ptr_ref, xq_ref, xk_ref,
                      w1q_ref, b1q_ref, w2q_ref, b2q_ref,
                      w1k_ref, b1k_ref, w2k_ref, b2k_ref,
                      queue_in_ref,
                      w1k_out, b1k_out, w2k_out, b2k_out,
                      lpos_ref, lneg_ref, queue_out_ref,
                      queue_vmem, k_buf, sem_in, sem_out, *, m, inv_t):
    """EMA + q/k encoders + normalize + logits (/T) + in-place enqueue."""
    # Kick off the queue HBM->VMEM stream immediately so it overlaps with the
    # encoder matmuls (it is only needed for l_neg).
    fetch = pltpu.make_async_copy(queue_in_ref, queue_vmem, sem_in)
    fetch.start()

    om = 1.0 - m

    def encode(x, w1, b1, w2, b2):
        # bf16 MXU matmuls, f32 accumulation; elementwise math stays f32.
        h = jnp.dot(x.astype(jnp.bfloat16), w1.astype(jnp.bfloat16),
                    preferred_element_type=jnp.float32) + b1
        h = jnp.maximum(h, 0.0)
        f = jnp.dot(h.astype(jnp.bfloat16), w2.astype(jnp.bfloat16),
                    preferred_element_type=jnp.float32) + b2
        # F.normalize(dim=1): x / max(||x||, 1e-12) == x * rsqrt(max(||x||^2, 1e-24))
        inv = jax.lax.rsqrt(
            jnp.maximum(jnp.sum(f * f, axis=1, keepdims=True), 1e-24))
        return f * inv

    # --- query encoder (uses params_q as-is, as in the reference) ---
    w1q = w1q_ref[...]; b1q = b1q_ref[...]
    w2q = w2q_ref[...]; b2q = b2q_ref[...]
    q = encode(xq_ref[...], w1q, b1q, w2q, b2q)

    # --- momentum EMA fused into the key-encoder weight path (VPU filler) ---
    w1k = w1k_ref[...] * m + w1q * om
    b1k = b1k_ref[...] * m + b1q * om
    w2k = w2k_ref[...] * m + w2q * om
    b2k = b2k_ref[...] * m + b2q * om
    w1k_out[...] = w1k
    b1k_out[...] = b1k
    w2k_out[...] = w2k
    b2k_out[...] = b2k

    # --- key encoder consumes the post-EMA weights (reference ordering) ---
    # TODO(synk): torch.distributed all_gather/broadcast and the shuffle-BN
    # permutation are an exact identity on a single device with a
    # BatchNorm-free synthetic encoder, so they are elided.
    k = encode(xk_ref[...], w1k, b1k, w2k, b2k)

    n = q.shape[0]
    # l_pos = einsum('nc,nc->n', q, k) / T, broadcast over a 128-lane slab so
    # the store is lane-dense; glue slices the (aligned) column 0 back out.
    l_pos = jnp.sum(q * k, axis=1, keepdims=True) * inv_t
    lpos_ref[...] = jnp.broadcast_to(l_pos, (n, LPOS_PAD))

    # l_neg = q @ queue^T / T against the *pre-enqueue* queue snapshot (bf16).
    fetch.wait()
    lneg_ref[...] = jax.lax.dot_general(
        q.astype(jnp.bfloat16), queue_vmem[...],
        dimension_numbers=(((1,), (1,)), ((), ())),
        preferred_element_type=jnp.float32) * inv_t

    # --- enqueue: write only the N new key rows into the aliased HBM queue ---
    k_buf[...] = k.astype(k_buf.dtype)
    ptr = pl.multiple_of(ptr_ref[0], n)
    wb = pltpu.make_async_copy(k_buf, queue_out_ref.at[pl.ds(ptr, n), :],
                               sem_out)
    wb.start()
    wb.wait()


def moco_step(xq, xk, params_q, params_k, queue_t, queue_ptr, *, m, t):
    n, _ = xq.shape
    kq, dim = queue_t.shape
    kern = functools.partial(_moco_step_kernel, m=float(m),
                             inv_t=float(1.0 / t))
    out_shape = (
        *(jax.ShapeDtypeStruct(p.shape, p.dtype) for p in params_k),
        jax.ShapeDtypeStruct((n, LPOS_PAD), jnp.float32),
        jax.ShapeDtypeStruct((n, kq), jnp.float32),
        jax.ShapeDtypeStruct(queue_t.shape, queue_t.dtype),
    )
    outs = pl.pallas_call(
        kern,
        out_shape=out_shape,
        in_specs=[SMEM] + [VMEM] * 10 + [ANY],
        out_specs=(VMEM, VMEM, VMEM, VMEM, VMEM, VMEM, ANY),
        scratch_shapes=[
            pltpu.VMEM((kq, dim), queue_t.dtype),   # queue snapshot for l_neg
            pltpu.VMEM((n, dim), queue_t.dtype),    # bf16 keys for enqueue DMA
            pltpu.SemaphoreType.DMA(()),
            pltpu.SemaphoreType.DMA(()),
        ],
        # in-place updates: params_k (inputs 7..10) and queue (input 11)
        input_output_aliases={7: 0, 8: 1, 9: 2, 10: 3, 11: 6},
    )(queue_ptr, xq, xk, *params_q, *params_k, queue_t)
    w1k, b1k, w2k, b2k, lpos_pad, l_neg, queue_t = outs
    return (w1k, b1k, w2k, b2k), lpos_pad, l_neg, queue_t


# ------------------------------ MoCo forward -------------------------------

@functools.partial(jax.jit, static_argnames=("m", "t"), donate_argnums=(3, 4, 5))
def moco_forward(im_q, im_k, params_q, params_k, queue_t, queue_ptr, *, m, t):
    n = im_q.shape[0]
    kq = queue_t.shape[0]
    assert kq % n == 0, "queue length must be divisible by batch size"

    xq = im_q.reshape(n, -1)
    xk = im_k.reshape(n, -1)

    params_k, lpos_pad, l_neg, queue_t = moco_step(
        xq, xk, params_q, params_k, queue_t, queue_ptr, m=m, t=t)

    # TODO(synk): at real sizes keep l_pos / l_neg as separate outputs and feed
    # the loss as logsumexp - l_pos; the concat below only exists to preserve
    # the reference (logits, labels=0) interface at toy size.
    logits = jnp.concatenate([lpos_pad[:, :1], l_neg], axis=1)
    labels = jnp.zeros((n,), dtype=jnp.int32)

    queue_ptr = queue_ptr.at[0].set((queue_ptr[0] + n) % kq)
    return logits, labels, params_k, queue_t, queue_ptr


# --------------------------- pure-JAX reference ----------------------------

def moco_reference(xq, xk, params_q, params_k, queue_t_f32, m, t):
    def enc(x, w1, b1, w2, b2):
        h = jnp.maximum(x @ w1 + b1, 0.0)
        f = h @ w2 + b2
        nrm = jnp.maximum(jnp.linalg.norm(f, axis=1, keepdims=True), 1e-12)
        return f / nrm

    q = enc(xq, *params_q)
    new_pk = tuple(pk * m + pq * (1.0 - m)
                   for pq, pk in zip(params_q, params_k))
    k = enc(xk, *new_pk)
    l_pos = jnp.sum(q * k, axis=1, keepdims=True)
    l_neg = q @ queue_t_f32.T
    logits = jnp.concatenate([l_pos, l_neg], axis=1) / t
    return logits, k, new_pk


# ---------------------------------- main -----------------------------------

if __name__ == "__main__":
    N, C, H, W = 16, 3, 16, 16          # small batch of NCHW images
    HID, DIM, K_QUEUE = 256, 128, 256   # encoder hidden, feature dim, queue len
    MOMENTUM, TEMP = 0.999, 0.07

    root = jax.random.PRNGKey(0)
    k_imq, k_imk, k_w1, k_w2, k_queue = jax.random.split(root, 5)

    im_q = jax.random.normal(k_imq, (N, C, H, W), jnp.float32)
    im_k = jax.random.normal(k_imk, (N, C, H, W), jnp.float32)

    FEAT = C * H * W
    w1 = jax.random.normal(k_w1, (FEAT, HID), jnp.float32) * 0.02
    b1 = jnp.zeros((1, HID), jnp.float32)
    w2 = jax.random.normal(k_w2, (HID, DIM), jnp.float32) * 0.02
    b2 = jnp.zeros((1, DIM), jnp.float32)
    params_q = (w1, b1, w2, b2)
    params_k = tuple(jnp.copy(p) for p in params_q)   # key encoder copy

    # register_buffer('queue', randn(dim, bs)) normalized along dim=0, stored
    # transposed [K_QUEUE, DIM] and in bf16 (lane-dense rows, half the stream).
    q0 = jax.random.normal(k_queue, (DIM, K_QUEUE), jnp.float32)
    q0 = q0 / jnp.maximum(jnp.sqrt(jnp.sum(q0 * q0, axis=0, keepdims=True)),
                          1e-12)
    queue_t = q0.T.astype(jnp.bfloat16)
    queue_ptr = jnp.zeros((1,), jnp.int32)

    # ---- pure-JAX reference (computed BEFORE donation invalidates buffers) --
    xq_ref = im_q.reshape(N, -1)
    xk_ref = im_k.reshape(N, -1)
    ref_logits, ref_k, ref_pk = moco_reference(
        xq_ref, xk_ref, params_q, params_k, queue_t.astype(jnp.float32),
        MOMENTUM, TEMP)
    ref_logits = np.asarray(ref_logits)
    ref_k = np.asarray(ref_k)
    ref_pk = tuple(np.asarray(p) for p in ref_pk)
    queue_before = np.asarray(queue_t)
    ptr0 = int(queue_ptr[0])

    # --------------------------- fused Pallas step ---------------------------
    logits, labels, params_k, queue_t, queue_ptr = moco_forward(
        im_q, im_k, params_q, params_k, queue_t, queue_ptr,
        m=MOMENTUM, t=TEMP)
    jax.block_until_ready((logits, labels, queue_t, queue_ptr) + params_k)

    # ------------------------------- checks ---------------------------------
    assert logits.shape == (N, 1 + K_QUEUE) and logits.dtype == jnp.float32
    assert labels.shape == (N,) and int(labels.sum()) == 0
    assert queue_t.shape == (K_QUEUE, DIM) and queue_t.dtype == jnp.bfloat16
    assert int(queue_ptr[0]) == (ptr0 + N) % K_QUEUE

    np.testing.assert_allclose(np.asarray(logits), ref_logits,
                               rtol=5e-2, atol=0.25)
    for got, want in zip(params_k, ref_pk):
        np.testing.assert_allclose(np.asarray(got), want, rtol=1e-5, atol=1e-5)

    queue_np = np.asarray(queue_t).astype(np.float32)
    np.testing.assert_allclose(queue_np[ptr0:ptr0 + N], ref_k,
                               rtol=5e-2, atol=3e-2)
    assert np.array_equal(np.asarray(queue_t)[ptr0 + N:],
                          queue_before[ptr0 + N:])

    print("KERNEL_OK")
</pallas_src>

<mosaic_0001>
module attributes {stable_mosaic.version = 11 : i64} {
  func.func @_moco_step_kernel(%arg0: memref<1xi32, #tpu.memory_space<smem>>, %arg1: memref<16x768xf32, #tpu.memory_space<vmem>>, %arg2: memref<16x768xf32, #tpu.memory_space<vmem>>, %arg3: memref<768x256xf32, #tpu.memory_space<vmem>>, %arg4: memref<1x256xf32, #tpu.memory_space<vmem>>, %arg5: memref<256x128xf32, #tpu.memory_space<vmem>>, %arg6: memref<1x128xf32, #tpu.memory_space<vmem>>, %arg7: memref<768x256xf32, #tpu.memory_space<vmem>>, %arg8: memref<1x256xf32, #tpu.memory_space<vmem>>, %arg9: memref<256x128xf32, #tpu.memory_space<vmem>>, %arg10: memref<1x128xf32, #tpu.memory_space<vmem>>, %arg11: memref<256x128xbf16, #tpu.memory_space<any>>, %arg12: memref<768x256xf32, #tpu.memory_space<vmem>>, %arg13: memref<1x256xf32, #tpu.memory_space<vmem>>, %arg14: memref<256x128xf32, #tpu.memory_space<vmem>>, %arg15: memref<1x128xf32, #tpu.memory_space<vmem>>, %arg16: memref<16x128xf32, #tpu.memory_space<vmem>>, %arg17: memref<16x256xf32, #tpu.memory_space<vmem>>, %arg18: memref<256x128xbf16, #tpu.memory_space<any>>, %arg19: memref<256x128xbf16, #tpu.memory_space<vmem>>, %arg20: memref<16x128xbf16, #tpu.memory_space<vmem>>, %arg21: memref<!tpu.dma_semaphore, #tpu.memory_space<semaphore_mem>>, %arg22: memref<!tpu.dma_semaphore, #tpu.memory_space<semaphore_mem>>) attributes {dimension_semantics = [], scalar_prefetch = 0 : i64, scratch_operands = 4 : i64, tpu.core_type = #tpu.core_type<tc>} {
    tpu.enqueue_dma source(%arg11 : memref<256x128xbf16, #tpu.memory_space<any>>) target(%arg19 : memref<256x128xbf16, #tpu.memory_space<vmem>>) target_semaphore(%arg21 : memref<!tpu.dma_semaphore, #tpu.memory_space<semaphore_mem>>)
    %c0 = arith.constant 0 : index
    %c0_0 = arith.constant 0 : index
    %0 = vector.load %arg3[%c0, %c0_0] : memref<768x256xf32, #tpu.memory_space<vmem>>, vector<768x256xf32>
    %c0_1 = arith.constant 0 : index
    %c0_2 = arith.constant 0 : index
    %1 = vector.load %arg4[%c0_1, %c0_2] : memref<1x256xf32, #tpu.memory_space<vmem>>, vector<1x256xf32>
    %c0_3 = arith.constant 0 : index
    %c0_4 = arith.constant 0 : index
    %2 = vector.load %arg5[%c0_3, %c0_4] : memref<256x128xf32, #tpu.memory_space<vmem>>, vector<256x128xf32>
    %c0_5 = arith.constant 0 : index
    %c0_6 = arith.constant 0 : index
    %3 = vector.load %arg6[%c0_5, %c0_6] : memref<1x128xf32, #tpu.memory_space<vmem>>, vector<1x128xf32>
    %c0_7 = arith.constant 0 : index
    %c0_8 = arith.constant 0 : index
    %4 = vector.load %arg1[%c0_7, %c0_8] : memref<16x768xf32, #tpu.memory_space<vmem>>, vector<16x768xf32>
    %5 = arith.truncf %4 : vector<16x768xf32> to vector<16x768xbf16>
    %6 = arith.truncf %0 : vector<768x256xf32> to vector<768x256xbf16>
    %cst = arith.constant dense<0.000000e+00> : vector<16x256xf32>
    %7 = tpu.matmul %5, %6, %cst {dimension_numbers = #tpu.dot_dimension_numbers<[1], [0], [0], [1], [0, 0, 1, 1], [], []>} : vector<16x768xbf16>, vector<768x256xbf16>, vector<16x256xf32> -> vector<16x256xf32>
    %8 = vector.broadcast %1 : vector<1x256xf32> to vector<16x256xf32>
    %9 = arith.addf %7, %8 : vector<16x256xf32>
    %cst_9 = arith.constant 0.000000e+00 : f32
    %10 = vector.broadcast %cst_9 : f32 to vector<16x256xf32>
    %11 = arith.maximumf %9, %10 : vector<16x256xf32>
    %12 = arith.truncf %11 : vector<16x256xf32> to vector<16x256xbf16>
    %13 = arith.truncf %2 : vector<256x128xf32> to vector<256x128xbf16>
    %cst_10 = arith.constant dense<0.000000e+00> : vector<16x128xf32>
    %14 = tpu.matmul %12, %13, %cst_10 {dimension_numbers = #tpu.dot_dimension_numbers<[1], [0], [0], [1], [0, 0, 1, 1], [], []>} : vector<16x256xbf16>, vector<256x128xbf16>, vector<16x128xf32> -> vector<16x128xf32>
    %15 = vector.broadcast %3 : vector<1x128xf32> to vector<16x128xf32>
    %16 = arith.addf %14, %15 : vector<16x128xf32>
    %17 = arith.mulf %16, %16 : vector<16x128xf32>
    %cst_11 = arith.constant dense<0.000000e+00> : vector<16xf32>
    %18 = vector.multi_reduction <add>, %17, %cst_11 [1] : vector<16x128xf32> to vector<16xf32>
    %19 = vector.shape_cast %18 : vector<16xf32> to vector<16x1xf32>
    %cst_12 = arith.constant 1.000000e-24 : f32
    %20 = vector.broadcast %cst_12 : f32 to vector<16x1xf32>
    %21 = arith.maximumf %19, %20 : vector<16x1xf32>
    %22 = math.rsqrt %21 : vector<16x1xf32>
    %23 = vector.broadcast %22 : vector<16x1xf32> to vector<16x128xf32>
    %24 = arith.mulf %16, %23 : vector<16x128xf32>
    %c0_13 = arith.constant 0 : index
    %c0_14 = arith.constant 0 : index
    %25 = vector.load %arg7[%c0_13, %c0_14] : memref<768x256xf32, #tpu.memory_space<vmem>>, vector<768x256xf32>
    %cst_15 = arith.constant 9.990000e-01 : f32
    %26 = vector.broadcast %cst_15 : f32 to vector<768x256xf32>
    %27 = arith.mulf %25, %26 : vector<768x256xf32>
    %cst_16 = arith.constant 1.000000e-03 : f32
    %28 = vector.broadcast %cst_16 : f32 to vector<768x256xf32>
    %29 = arith.mulf %0, %28 : vector<768x256xf32>
    %30 = arith.addf %27, %29 : vector<768x256xf32>
    %c0_17 = arith.constant 0 : index
    %c0_18 = arith.constant 0 : index
    %31 = vector.load %arg8[%c0_17, %c0_18] : memref<1x256xf32, #tpu.memory_space<vmem>>, vector<1x256xf32>
    %cst_19 = arith.constant 9.990000e-01 : f32
    %32 = vector.broadcast %cst_19 : f32 to vector<1x256xf32>
    %33 = arith.mulf %31, %32 : vector<1x256xf32>
    %cst_20 = arith.constant 1.000000e-03 : f32
    %34 = vector.broadcast %cst_20 : f32 to vector<1x256xf32>
    %35 = arith.mulf %1, %34 : vector<1x256xf32>
    %36 = arith.addf %33, %35 : vector<1x256xf32>
    %c0_21 = arith.constant 0 : index
    %c0_22 = arith.constant 0 : index
    %37 = vector.load %arg9[%c0_21, %c0_22] : memref<256x128xf32, #tpu.memory_space<vmem>>, vector<256x128xf32>
    %cst_23 = arith.constant 9.990000e-01 : f32
    %38 = vector.broadcast %cst_23 : f32 to vector<256x128xf32>
    %39 = arith.mulf %37, %38 : vector<256x128xf32>
    %cst_24 = arith.constant 1.000000e-03 : f32
    %40 = vector.broadcast %cst_24 : f32 to vector<256x128xf32>
    %41 = arith.mulf %2, %40 : vector<256x128xf32>
    %42 = arith.addf %39, %41 : vector<256x128xf32>
    %c0_25 = arith.constant 0 : index
    %c0_26 = arith.constant 0 : index
    %43 = vector.load %arg10[%c0_25, %c0_26] : memref<1x128xf32, #tpu.memory_space<vmem>>, vector<1x128xf32>
    %cst_27 = arith.constant 9.990000e-01 : f32
    %44 = vector.broadcast %cst_27 : f32 to vector<1x128xf32>
    %45 = arith.mulf %43, %44 : vector<1x128xf32>
    %cst_28 = arith.constant 1.000000e-03 : f32
    %46 = vector.broadcast %cst_28 : f32 to vector<1x128xf32>
    %47 = arith.mulf %3, %46 : vector<1x128xf32>
    %48 = arith.addf %45, %47 : vector<1x128xf32>
    %c0_29 = arith.constant 0 : index
    %c0_30 = arith.constant 0 : index
    %49 = vector.load %arg12[%c0_29, %c0_30] : memref<768x256xf32, #tpu.memory_space<vmem>>, vector<768x256xf32>
    tpu.vector_store %arg12[%c0_29, %c0_30], %30 {strides = array<i32>} : memref<768x256xf32, #tpu.memory_space<vmem>>, vector<768x256xf32>,
    %c0_31 = arith.constant 0 : index
    %c0_32 = arith.constant 0 : index
    %50 = vector.load %arg13[%c0_31, %c0_32] : memref<1x256xf32, #tpu.memory_space<vmem>>, vector<1x256xf32>
    tpu.vector_store %arg13[%c0_31, %c0_32], %36 {strides = array<i32>} : memref<1x256xf32, #tpu.memory_space<vmem>>, vector<1x256xf32>,
    %c0_33 = arith.constant 0 : index
    %c0_34 = arith.constant 0 : index
    %51 = vector.load %arg14[%c0_33, %c0_34] : memref<256x128xf32, #tpu.memory_space<vmem>>, vector<256x128xf32>
    tpu.vector_store %arg14[%c0_33, %c0_34], %42 {strides = array<i32>} : memref<256x128xf32, #tpu.memory_space<vmem>>, vector<256x128xf32>,
    %c0_35 = arith.constant 0 : index
    %c0_36 = arith.constant 0 : index
    %52 = vector.load %arg15[%c0_35, %c0_36] : memref<1x128xf32, #tpu.memory_space<vmem>>, vector<1x128xf32>
    tpu.vector_store %arg15[%c0_35, %c0_36], %48 {strides = array<i32>} : memref<1x128xf32, #tpu.memory_space<vmem>>, vector<1x128xf32>,
    %c0_37 = arith.constant 0 : index
    %c0_38 = arith.constant 0 : index
    %53 = vector.load %arg2[%c0_37, %c0_38] : memref<16x768xf32, #tpu.memory_space<vmem>>, vector<16x768xf32>
    %54 = arith.truncf %53 : vector<16x768xf32> to vector<16x768xbf16>
    %55 = arith.truncf %30 : vector<768x256xf32> to vector<768x256xbf16>
    %cst_39 = arith.constant dense<0.000000e+00> : vector<16x256xf32>
    %56 = tpu.matmul %54, %55, %cst_39 {dimension_numbers = #tpu.dot_dimension_numbers<[1], [0], [0], [1], [0, 0, 1, 1], [], []>} : vector<16x768xbf16>, vector<768x256xbf16>, vector<16x256xf32> -> vector<16x256xf32>
    %57 = vector.broadcast %36 : vector<1x256xf32> to vector<16x256xf32>
    %58 = arith.addf %56, %57 : vector<16x256xf32>
    %cst_40 = arith.constant 0.000000e+00 : f32
    %59 = vector.broadcast %cst_40 : f32 to vector<16x256xf32>
    %60 = arith.maximumf %58, %59 : vector<16x256xf32>
    %61 = arith.truncf %60 : vector<16x256xf32> to vector<16x256xbf16>
    %62 = arith.truncf %42 : vector<256x128xf32> to vector<256x128xbf16>
    %cst_41 = arith.constant dense<0.000000e+00> : vector<16x128xf32>
    %63 = tpu.matmul %61, %62, %cst_41 {dimension_numbers = #tpu.dot_dimension_numbers<[1], [0], [0], [1], [0, 0, 1, 1], [], []>} : vector<16x256xbf16>, vector<256x128xbf16>, vector<16x128xf32> -> vector<16x128xf32>
    %64 = vector.broadcast %48 : vector<1x128xf32> to vector<16x128xf32>
    %65 = arith.addf %63, %64 : vector<16x128xf32>
    %66 = arith.mulf %65, %65 : vector<16x128xf32>
    %cst_42 = arith.constant dense<0.000000e+00> : vector<16xf32>
    %67 = vector.multi_reduction <add>, %66, %cst_42 [1] : vector<16x128xf32> to vector<16xf32>
    %68 = vector.shape_cast %67 : vector<16xf32> to vector<16x1xf32>
    %cst_43 = arith.constant 1.000000e-24 : f32
    %69 = vector.broadcast %cst_43 : f32 to vector<16x1xf32>
    %70 = arith.maximumf %68, %69 : vector<16x1xf32>
    %71 = math.rsqrt %70 : vector<16x1xf32>
    %72 = vector.broadcast %71 : vector<16x1xf32> to vector<16x128xf32>
    %73 = arith.mulf %65, %72 : vector<16x128xf32>
    %74 = arith.mulf %24, %73 : vector<16x128xf32>
    %cst_44 = arith.constant dense<0.000000e+00> : vector<16xf32>
    %75 = vector.multi_reduction <add>, %74, %cst_44 [1] : vector<16x128xf32> to vector<16xf32>
    %76 = vector.shape_cast %75 : vector<16xf32> to vector<16x1xf32>
    %cst_45 = arith.constant 14.2857141 : f32
    %77 = vector.broadcast %cst_45 : f32 to vector<16x1xf32>
    %78 = arith.mulf %76, %77 : vector<16x1xf32>
    %79 = vector.shape_cast %78 : vector<16x1xf32> to vector<16x1xf32>
    %80 = vector.broadcast %79 : vector<16x1xf32> to vector<16x128xf32>
    %c0_46 = arith.constant 0 : index
    %c0_47 = arith.constant 0 : index
    %81 = vector.load %arg16[%c0_46, %c0_47] : memref<16x128xf32, #tpu.memory_space<vmem>>, vector<16x128xf32>
    tpu.vector_store %arg16[%c0_46, %c0_47], %80 {strides = array<i32>} : memref<16x128xf32, #tpu.memory_space<vmem>>, vector<16x128xf32>,
    tpu.wait_dma2 semaphore(%arg21 : memref<!tpu.dma_semaphore, #tpu.memory_space<semaphore_mem>>) src(%arg11 : memref<256x128xbf16, #tpu.memory_space<any>>) dst(%arg19 : memref<256x128xbf16, #tpu.memory_space<vmem>>)
    %82 = arith.truncf %24 : vector<16x128xf32> to vector<16x128xbf16>
    %c0_48 = arith.constant 0 : index
    %c0_49 = arith.constant 0 : index
    %83 = vector.load %arg19[%c0_48, %c0_49] : memref<256x128xbf16, #tpu.memory_space<vmem>>, vector<256x128xbf16>
    %cst_50 = arith.constant dense<0.000000e+00> : vector<16x256xf32>
    %84 = tpu.matmul %82, %83, %cst_50 {dimension_numbers = #tpu.dot_dimension_numbers<[1], [1], [0], [0], [0, 0, 1, 0], [], []>} : vector<16x128xbf16>, vector<256x128xbf16>, vector<16x256xf32> -> vector<16x256xf32>
    %cst_51 = arith.constant 14.2857141 : f32
    %85 = vector.broadcast %cst_51 : f32 to vector<16x256xf32>
    %86 = arith.mulf %84, %85 : vector<16x256xf32>
    %c0_52 = arith.constant 0 : index
    %c0_53 = arith.constant 0 : index
    %87 = vector.load %arg17[%c0_52, %c0_53] : memref<16x256xf32, #tpu.memory_space<vmem>>, vector<16x256xf32>
    tpu.vector_store %arg17[%c0_52, %c0_53], %86 {strides = array<i32>} : memref<16x256xf32, #tpu.memory_space<vmem>>, vector<16x256xf32>,
    %88 = arith.truncf %73 : vector<16x128xf32> to vector<16x128xbf16>
    %c0_54 = arith.constant 0 : index
    %c0_55 = arith.constant 0 : index
    %89 = vector.load %arg20[%c0_54, %c0_55] : memref<16x128xbf16, #tpu.memory_space<vmem>>, vector<16x128xbf16>
    tpu.vector_store %arg20[%c0_54, %c0_55], %88 {strides = array<i32>} : memref<16x128xbf16, #tpu.memory_space<vmem>>, vector<16x128xbf16>,
    %c0_56 = arith.constant 0 : index
    %90 = memref.load %arg0[%c0_56] : memref<1xi32, #tpu.memory_space<smem>>
    %91 = tpu.assume_multiple %90, 16 : i32
    %c0_i32 = arith.constant 0 : i32
    %92 = tpu.memref_slice %arg18[%91, %c0_i32] : memref<256x128xbf16, #tpu.memory_space<any>> -> memref<16x128xbf16, #tpu.memory_space<any>>
    tpu.enqueue_dma source(%arg20 : memref<16x128xbf16, #tpu.memory_space<vmem>>) target(%92 : memref<16x128xbf16, #tpu.memory_space<any>>) target_semaphore(%arg22 : memref<!tpu.dma_semaphore, #tpu.memory_space<semaphore_mem>>)
    %c0_i32_57 = arith.constant 0 : i32
    %93 = tpu.memref_slice %arg18[%91, %c0_i32_57] : memref<256x128xbf16, #tpu.memory_space<any>> -> memref<16x128xbf16, #tpu.memory_space<any>>
    tpu.wait_dma2 semaphore(%arg22 : memref<!tpu.dma_semaphore, #tpu.memory_space<semaphore_mem>>) src(%arg20 : memref<16x128xbf16, #tpu.memory_space<vmem>>) dst(%93 : memref<16x128xbf16, #tpu.memory_space<any>>)
    return
  }
}

</mosaic_0001>

<bundles_post_ra>
// kernel: moco_forward.1
= control target key start
LH: loop header
LB: loop body
LE: loop exit
PB: predicated region body
PF: predicated region fallthrough
CT: control target
= control target key end

     0   :  { %s4146_s0 = inlined_call_operand.<no memory space> [shape: s32[1], index: 0, kind: input, shape index: {}]   ;;  %s4147_s1 = inlined_call_operand.vmem [shape: f32[16,768], index: 1, kind: input, shape index: {}]   ;;  %s4148_s2 = inlined_call_operand.vmem [shape: f32[16,768], index: 2, kind: input, shape index: {}]   ;;  %s4149_s3 = inlined_call_operand.hbm [shape: f32[768,256], index: 3, kind: input, shape index: {}]   ;;  %s4150_s4 = inlined_call_operand.vmem [shape: f32[1,256], index: 4, kind: input, shape index: {}]   ;;  %s4151_s5 = inlined_call_operand.vmem [shape: f32[256,128], index: 5, kind: input, shape index: {}]   ;;  %s4152_s6 = inlined_call_operand.vmem [shape: f32[1,128], index: 6, kind: input, shape index: {}]   ;;  %s4153_s7 = inlined_call_operand.hbm [shape: f32[768,256], index: 7, kind: input, shape index: {}, may-alias: {7,12}]   ;;  %s4154_s8 = inlined_call_operand.vmem [shape: f32[1,256], index: 8, kind: input, shape index: {}, may-alias: {8,13}]   ;;  %s4155_s9 = inlined_call_operand.vmem [shape: f32[256,128], index: 9, kind: input, shape index: {}, may-alias: {9,14}]   ;;  %s4156_s10 = inlined_call_operand.vmem [shape: f32[1,128], index: 10, kind: input, shape index: {}, may-alias: {10,15}]   ;;  %s4157_s11 = inlined_call_operand.vmem [shape: bf16[256,128], index: 11, kind: input, shape index: {}, may-alias: {11,18}]   ;;  %s4158_s12 = inlined_call_operand.hbm [shape: f32[768,256], index: 12, kind: output, shape index: {0}, may-alias: {7,12}]   ;;  %s4159_s13 = inlined_call_operand.vmem [shape: f32[1,256], index: 13, kind: output, shape index: {1}, may-alias: {8,13}]   ;;  %s4160_s14 = inlined_call_operand.vmem [shape: f32[256,128], index: 14, kind: output, shape index: {2}, may-alias: {9,14}]   ;;  %s4161_s15 = inlined_call_operand.vmem [shape: f32[1,128], index: 15, kind: output, shape index: {3}, may-alias: {10,15}]   ;;  %s4162_s16 = inlined_call_operand.vmem [shape: f32[16,128], index: 16, kind: output, shape index: {4}]   ;;  %s4163_s17 = inlined_call_operand.vmem [shape: f32[16,256], index: 17, kind: output, shape index: {5}]   ;;  %s4164_s18 = inlined_call_operand.vmem [shape: bf16[256,128], index: 18, kind: output, shape index: {6}, may-alias: {11,18}]  }
   0x1   :  { %4179 = sst [smem:[#allocation32_spill]] %s4146_s0 }
   0x2   :  { %4180 = sst [smem:[#allocation33_spill]] %s4147_s1 }
   0x3   :  { %4181 = sst [smem:[#allocation34_spill]] %s4148_s2 }
   0x4   :  { %25 = vsyncpa [#allocation8], 0 }
   0x5   :  { %26 = vsyncpa [#allocation11], 0 }
   0x6   :  { %27 = vsyncpa [#allocation9], 0  ;;  %s38_s29 = sshll.u32 %s4149_s3, 4  ;;  %s2874_s30 = smov [#allocation7]   ;;  %s39_s29 = int_to_ptr.hbm [resolvable:$true] %s38_s29 }
   0x7   :  { %s40_s0 = sshll.u32 %s2874_s30, 4  ;;  %s57_s20 = sshll.u32 %s4153_s7, 4  ;;  %s41_s0 = int_to_ptr.vmem [resolvable:$true] %s40_s0  ;;  %s58_s20 = int_to_ptr.hbm [resolvable:$true] %s57_s20 }
   0x8   :  { %s2875_s21 = smov 256   ;;  %s2876_s22 = smov 16  }
   0x9   :  { %46 = dma.hbm_to_vmem [thread:$0]  %s39_s29, 24576, %s41_s0, [#allocation8], %s2875_s21, %s2875_s21, %s2876_s22  }
   0xa   :  { %s2877_s2 = smov [#allocation10]  }
   0xb   :  { %s59_s23 = sshll.u32 %s2877_s2, 4  ;;  %s60_s23 = int_to_ptr.vmem [resolvable:$true] %s59_s23 }
   0xc   :  { %65 = dma.hbm_to_vmem [thread:$0]  %s58_s20, 24576, %s60_s23, [#allocation11], %s2875_s21, %s2875_s21, %s2876_s22  }
   0xd   :  { %2864 = dma.done.wait [#allocation8], 24576  }
   0xe   :  { %2865 = vsyncadd [#allocation8], 4294942720 }
   0xf   :  { %2866 = dma.done.wait [#allocation11], 24576  }
  0x10   :  { %2867 = vsyncadd [#allocation11], 4294942720  ;;  %v90_v0 = vld [vmem:[%s4157_s11] sm:$0xff]  ;;  %v92_v1 = vld [vmem:[%s4157_s11 + $0x8] sm:$0xff] }
  0x11   :  { %v94_v2 = vld [vmem:[%s4157_s11 + $0x10] sm:$0xff]  ;;  %91 = vst [vmem:[#allocation2 + $0x30] sm:$0xff] %v90_v0  ;;  %v96_v3 = vld [vmem:[%s4157_s11 + $0x18] sm:$0xff]  ;;  %v98_v4 = vld [vmem:[%s4157_s11 + $0x20] sm:$0xff] }
  0x12   :  { %93 = vst [vmem:[#allocation2] sm:$0xff] %v92_v1  ;;  %v100_v5 = vld [vmem:[%s4157_s11 + $0x28] sm:$0xff]  ;;  %v102_v6 = vld [vmem:[%s4157_s11 + $0x30] sm:$0xff]  ;;  %v104_v7 = vld [vmem:[%s4157_s11 + $0x38] sm:$0xff] }
  0x13   :  { %95 = vst [vmem:[#allocation2 + $0x58] sm:$0xff] %v94_v2  ;;  %v106_v8 = vld [vmem:[%s4157_s11 + $0x40] sm:$0xff]  ;;  %v108_v9 = vld [vmem:[%s4157_s11 + $0x48] sm:$0xff]  ;;  %v110_v10 = vld [vmem:[%s4157_s11 + $0x50] sm:$0xff] }
  0x14   :  { %97 = vst [vmem:[#allocation2 + $0x18] sm:$0xff] %v96_v3  ;;  %v112_v11 = vld [vmem:[%s4157_s11 + $0x58] sm:$0xff]  ;;  %v114_v12 = vld [vmem:[%s4157_s11 + $0x60] sm:$0xff]  ;;  %v116_v13 = vld [vmem:[%s4157_s11 + $0x68] sm:$0xff] }
  0x15   :  { %99 = vst [vmem:[#allocation2 + $0x50] sm:$0xff] %v98_v4  ;;  %v118_v14 = vld [vmem:[%s4157_s11 + $0x70] sm:$0xff]  ;;  %v120_v15 = vld [vmem:[%s4157_s11 + $0x78] sm:$0xff] }
  0x16   :  { %101 = vst [vmem:[#allocation2 + $0x68] sm:$0xff] %v100_v5 }
  0x17   :  { %103 = vst [vmem:[#allocation2 + $0x8] sm:$0xff] %v102_v6 }
  0x18   :  { %105 = vst [vmem:[#allocation2 + $0x48] sm:$0xff] %v104_v7 }
  0x19   :  { %107 = vst [vmem:[#allocation2 + $0x40] sm:$0xff] %v106_v8 }
  0x1a   :  { %109 = vst [vmem:[#allocation2 + $0x20] sm:$0xff] %v108_v9 }
  0x1b   :  { %111 = vst [vmem:[#allocation2 + $0x10] sm:$0xff] %v110_v10 }
  0x1c   :  { %113 = vst [vmem:[#allocation2 + $0x38] sm:$0xff] %v112_v11 }
  0x1d   :  { %115 = vst [vmem:[#allocation2 + $0x60] sm:$0xff] %v114_v12 }
  0x1e   :  { %117 = vst [vmem:[#allocation2 + $0x70] sm:$0xff] %v116_v13 }
  0x1f   :  { %119 = vst [vmem:[#allocation2 + $0x78] sm:$0xff] %v118_v14 }
  0x20   :  { %121 = vst [vmem:[#allocation2 + $0x28] sm:$0xff] %v120_v15 }
  0x21   :  { %127 = vsyncadd [#allocation4], 2048  ;;  %v156_v16 = vld [vmem:[#allocation7 + $0xe0] sm:$0xff]  ;;  %v158_v17 = vld [vmem:[#allocation7 + $0xf0] sm:$0xff]  ;;  %s4182_s25 = sld [smem:[#allocation33_spill]] }
  0x22   :  { %v386_v18 = vpack.c.bf16 %v158_v17, %v156_v16  ;;  %v752_v19 = vld [vmem:[#allocation10 + $0xe0] sm:$0xff]  ;;  %v754_v20 = vld [vmem:[#allocation10 + $0xf0] sm:$0xff]  ;;  %v1136_v21 = vmul.f32 0.001, %v156_v16  ;;  %v1138_v22 = vmul.f32 0.001, %v158_v17 }
  0x23   :  { %v944_v23 = vmul.f32 0.999, %v752_v19  ;;  %v946_v24 = vmul.f32 0.999, %v754_v20  ;;  %v188_v25 = vld [vmem:[#allocation7 + $0x1e0] sm:$0xff]  ;;  %v190_v26 = vld [vmem:[#allocation7 + $0x1f0] sm:$0xff] }
  0x24   :  { %473 = vmatpush.bf16.msra.mxu2 %v386_v18  ;;  %v402_v27 = vpack.c.bf16 %v190_v26, %v188_v25  ;;  %v784_v28 = vld [vmem:[#allocation10 + $0x1e0] sm:$0xff]  ;;  %v786_v29 = vld [vmem:[#allocation10 + $0x1f0] sm:$0xff]  ;;  %v1168_v30 = vmul.f32 0.001, %v188_v25  ;;  %v1170_v31 = vmul.f32 0.001, %v190_v26 }
  0x25   :  { %v3034_v32 = vadd.f32 %v1136_v21, %v944_v23  ;;  %v3036_v33 = vadd.f32 %v1138_v22, %v946_v24  ;;  %v976_v34 = vmul.f32 0.999, %v784_v28  ;;  %v978_v35 = vmul.f32 0.999, %v786_v29  ;;  %v152_v36 = vld [vmem:[#allocation7 + $0xc0] sm:$0xff]  ;;  %v154_v37 = vld [vmem:[#allocation7 + $0xd0] sm:$0xff] }
  0x26   :  { %487 = vmatpush.bf16.msra.mxu3 %v402_v27  ;;  %v384_v38 = vpack.c.bf16 %v154_v37, %v152_v36  ;;  %v748_v39 = vld [vmem:[#allocation10 + $0xc0] sm:$0xff]  ;;  %v750_v40 = vld [vmem:[#allocation10 + $0xd0] sm:$0xff]  ;;  %v1132_v41 = vmul.f32 0.001, %v152_v36  ;;  %v1134_v42 = vmul.f32 0.001, %v154_v37 }
  0x27   :  { %1656 = vst [vmem:[#allocation12 + $0xe0] sm:$0xff] %v3034_v32  ;;  %v3041_v44 = vadd.f32 %v1168_v30, %v976_v34  ;;  %v3043_v45 = vadd.f32 %v1170_v31, %v978_v35  ;;  %v940_v46 = vmul.f32 0.999, %v748_v39  ;;  %v184_v47 = vld [vmem:[#allocation7 + $0x1c0] sm:$0xff]  ;;  %v186_v48 = vld [vmem:[#allocation7 + $0x1d0] sm:$0xff]  ;;  %s4211_s23 = sld [smem:[#allocation34_spill]] }
  0x28   :  { %v780_v49 = vld [vmem:[#allocation10 + $0x1c0] sm:$0xff]  ;;  %1658 = vst [vmem:[#allocation12 + $0xf0] sm:$0xff] %v3036_v33  ;;  %474 = vmatpush.bf16.msra.mxu2 %v384_v38  ;;  %v942_v50 = vmul.f32 0.999, %v750_v40  ;;  %v400_v51 = vpack.c.bf16 %v186_v48, %v184_v47  ;;  %v782_v52 = vld [vmem:[#allocation10 + $0x1d0] sm:$0xff] }
  0x29   :  { %v972_v53 = vmul.f32 0.999, %v780_v49  ;;  %1688 = vst [vmem:[#allocation12 + $0x1e0] sm:$0xff] %v3041_v44  ;;  %v1324_v55 = vadd.f32 %v1132_v41, %v940_v46  ;;  %v974_v56 = vmul.f32 0.999, %v782_v52  ;;  %v148_v58 = vld [vmem:[#allocation7 + $0xa0] sm:$0xff] }
  0x2a   :  { %v1164_v57 = vmul.f32 0.001, %v184_v47  ;;  %1690 = vst [vmem:[#allocation12 + $0x1f0] sm:$0xff] %v3043_v45  ;;  %v1326_v59 = vadd.f32 %v1134_v42, %v942_v50  ;;  %488 = vmatpush.bf16.msra.mxu3 %v400_v51  ;;  %v1166_v60 = vmul.f32 0.001, %v186_v48  ;;  %v150_v61 = vld [vmem:[#allocation7 + $0xb0] sm:$0xff] }
  0x2b   :  { %v744_v62 = vld [vmem:[#allocation10 + $0xa0] sm:$0xff]  ;;  %v746_v63 = vld [vmem:[#allocation10 + $0xb0] sm:$0xff]  ;;  %1652 = vst [vmem:[#allocation12 + $0xc0] sm:$0xff] %v1324_v55  ;;  %v382_v1 = vpack.c.bf16 %v150_v61, %v148_v58  ;;  %v1128_v6 = vmul.f32 0.001, %v148_v58 }
  0x2c   :  { %v1356_v0 = vadd.f32 %v1164_v57, %v972_v53  ;;  %v936_v2 = vmul.f32 0.999, %v744_v62  ;;  %v938_v3 = vmul.f32 0.999, %v746_v63  ;;  %v180_v4 = vld [vmem:[#allocation7 + $0x1a0] sm:$0xff]  ;;  %1654 = vst [vmem:[#allocation12 + $0xd0] sm:$0xff] %v1326_v59  ;;  %v1358_v5 = vadd.f32 %v1166_v60, %v974_v56 }
  0x2d   :  { %v1130_v7 = vmul.f32 0.001, %v150_v61  ;;  %v182_v8 = vld [vmem:[#allocation7 + $0x1b0] sm:$0xff]  ;;  %475 = vmatpush.bf16.msra.mxu2 %v382_v1  ;;  %v776_v10 = vld [vmem:[#allocation10 + $0x1a0] sm:$0xff]  ;;  %v1160_v12 = vmul.f32 0.001, %v180_v4 }
  0x2e   :  { %1684 = vst [vmem:[#allocation12 + $0x1c0] sm:$0xff] %v1356_v0  ;;  %v398_v9 = vpack.c.bf16 %v182_v8, %v180_v4  ;;  %v778_v11 = vld [vmem:[#allocation10 + $0x1b0] sm:$0xff]  ;;  %v144_v13 = vld [vmem:[#allocation7 + $0x80] sm:$0xff]  ;;  %v1320_v14 = vadd.f32 %v1128_v6, %v936_v2  ;;  %v968_v15 = vmul.f32 0.999, %v776_v10 }
  0x2f   :  { %1686 = vst [vmem:[#allocation12 + $0x1d0] sm:$0xff] %v1358_v5  ;;  %v970_v16 = vmul.f32 0.999, %v778_v11  ;;  %v146_v17 = vld [vmem:[#allocation7 + $0x90] sm:$0xff]  ;;  %v1322_v18 = vadd.f32 %v1130_v7, %v938_v3  ;;  %v1162_v19 = vmul.f32 0.001, %v182_v8 }
  0x30   :  { %489 = vmatpush.bf16.msra.mxu3 %v398_v9  ;;  %v380_v20 = vpack.c.bf16 %v146_v17, %v144_v13  ;;  %v740_v21 = vld [vmem:[#allocation10 + $0x80] sm:$0xff]  ;;  %v742_v22 = vld [vmem:[#allocation10 + $0x90] sm:$0xff]  ;;  %v1124_v23 = vmul.f32 0.001, %v144_v13  ;;  %1648 = vst [vmem:[#allocation12 + $0xa0] sm:$0xff] %v1320_v14  ;;  %v1352_v24 = vadd.f32 %v1160_v12, %v968_v15 }
  0x31   :  { %v932_v25 = vmul.f32 0.999, %v740_v21  ;;  %v934_v26 = vmul.f32 0.999, %v742_v22  ;;  %v176_v27 = vld [vmem:[#allocation7 + $0x180] sm:$0xff]  ;;  %1650 = vst [vmem:[#allocation12 + $0xb0] sm:$0xff] %v1322_v18  ;;  %v1354_v28 = vadd.f32 %v1162_v19, %v970_v16 }
  0x32   :  { %476 = vmatpush.bf16.msra.mxu2 %v380_v20  ;;  %v1126_v29 = vmul.f32 0.001, %v146_v17  ;;  %v178_v30 = vld [vmem:[#allocation7 + $0x190] sm:$0xff]  ;;  %v772_v31 = vld [vmem:[#allocation10 + $0x180] sm:$0xff]  ;;  %1680 = vst [vmem:[#allocation12 + $0x1a0] sm:$0xff] %v1352_v24 }
  0x33   :  { %v774_v34 = vld [vmem:[#allocation10 + $0x190] sm:$0xff]  ;;  %v1316_v35 = vadd.f32 %v1124_v23, %v932_v25  ;;  %v396_v36 = vpack.c.bf16 %v178_v30, %v176_v27  ;;  %v964_v37 = vmul.f32 0.999, %v772_v31  ;;  %v140_v39 = vld [vmem:[#allocation7 + $0x60] sm:$0xff]  ;;  %1682 = vst [vmem:[#allocation12 + $0x1b0] sm:$0xff] %v1354_v28 }
  0x34   :  { %v966_v38 = vmul.f32 0.999, %v774_v34  ;;  %v1318_v40 = vadd.f32 %v1126_v29, %v934_v26  ;;  %v1156_v41 = vmul.f32 0.001, %v176_v27  ;;  %v1158_v42 = vmul.f32 0.001, %v178_v30 }
  0x35   :  { %v142_v46 = vld [vmem:[#allocation7 + $0x70] sm:$0xff]  ;;  %1644 = vst [vmem:[#allocation12 + $0x80] sm:$0xff] %v1316_v35  ;;  %490 = vmatpush.bf16.msra.mxu3 %v396_v36  ;;  %v736_v48 = vld [vmem:[#allocation10 + $0x60] sm:$0xff]  ;;  %v1120_v50 = vmul.f32 0.001, %v140_v39 }
  0x36   :  { %v378_v47 = vpack.c.bf16 %v142_v46, %v140_v39  ;;  %v738_v49 = vld [vmem:[#allocation10 + $0x70] sm:$0xff]  ;;  %v172_v51 = vld [vmem:[#allocation7 + $0x160] sm:$0xff]  ;;  %1646 = vst [vmem:[#allocation12 + $0x90] sm:$0xff] %v1318_v40  ;;  %v1348_v52 = vadd.f32 %v1156_v41, %v964_v37  ;;  %v928_v53 = vmul.f32 0.999, %v736_v48  ;;  %v1350_v57 = vadd.f32 %v1158_v42, %v966_v38 }
  0x37   :  { %v930_v55 = vmul.f32 0.999, %v738_v49  ;;  %v174_v56 = vld [vmem:[#allocation7 + $0x170] sm:$0xff]  ;;  %v1122_v58 = vmul.f32 0.001, %v142_v46  ;;  %v768_v60 = vld [vmem:[#allocation10 + $0x160] sm:$0xff] }
  0x38   :  { %477 = vmatpush.bf16.msra.mxu2 %v378_v47  ;;  %v394_v59 = vpack.c.bf16 %v174_v56, %v172_v51  ;;  %v770_v61 = vld [vmem:[#allocation10 + $0x170] sm:$0xff]  ;;  %v1152_v62 = vmul.f32 0.001, %v172_v51  ;;  %1676 = vst [vmem:[#allocation12 + $0x180] sm:$0xff] %v1348_v52  ;;  %v1312_v63 = vadd.f32 %v1120_v50, %v928_v53  ;;  %v960_v0 = vmul.f32 0.999, %v768_v60 }
  0x39   :  { %v962_v1 = vmul.f32 0.999, %v770_v61  ;;  %v136_v2 = vld [vmem:[#allocation7 + $0x40] sm:$0xff]  ;;  %1678 = vst [vmem:[#allocation12 + $0x190] sm:$0xff] %v1350_v57  ;;  %v1314_v3 = vadd.f32 %v1122_v58, %v930_v55  ;;  %v1154_v4 = vmul.f32 0.001, %v174_v56 }
  0x3a   :  { %491 = vmatpush.bf16.msra.mxu3 %v394_v59  ;;  %v138_v5 = vld [vmem:[#allocation7 + $0x50] sm:$0xff]  ;;  %v732_v6 = vld [vmem:[#allocation10 + $0x40] sm:$0xff]  ;;  %1640 = vst [vmem:[#allocation12 + $0x60] sm:$0xff] %v1312_v63  ;;  %v1344_v8 = vadd.f32 %v1152_v62, %v960_v0  ;;  %v1116_v14 = vmul.f32 0.001, %v136_v2 }
  0x3b   :  { %v734_v7 = vld [vmem:[#allocation10 + $0x50] sm:$0xff]  ;;  %v376_v9 = vpack.c.bf16 %v138_v5, %v136_v2  ;;  %v924_v10 = vmul.f32 0.999, %v732_v6  ;;  %v168_v12 = vld [vmem:[#allocation7 + $0x140] sm:$0xff]  ;;  %1642 = vst [vmem:[#allocation12 + $0x70] sm:$0xff] %v1314_v3  ;;  %v1346_v13 = vadd.f32 %v1154_v4, %v962_v1 }
  0x3c   :  { %v926_v11 = vmul.f32 0.999, %v734_v7  ;;  %v1118_v15 = vmul.f32 0.001, %v138_v5  ;;  %v170_v16 = vld [vmem:[#allocation7 + $0x150] sm:$0xff]  ;;  %1672 = vst [vmem:[#allocation12 + $0x160] sm:$0xff] %v1344_v8 }
  0x3d   :  { %478 = vmatpush.bf16.msra.mxu2 %v376_v9  ;;  %v392_v17 = vpack.c.bf16 %v170_v16, %v168_v12  ;;  %v764_v18 = vld [vmem:[#allocation10 + $0x140] sm:$0xff]  ;;  %v766_v19 = vld [vmem:[#allocation10 + $0x150] sm:$0xff]  ;;  %v1148_v20 = vmul.f32 0.001, %v168_v12  ;;  %1674 = vst [vmem:[#allocation12 + $0x170] sm:$0xff] %v1346_v13  ;;  %v1308_v22 = vadd.f32 %v1116_v14, %v924_v10 }
  0x3e   :  { %v132_v21 = vld [vmem:[#allocation7 + $0x20] sm:$0xff]  ;;  %v956_v23 = vmul.f32 0.999, %v764_v18  ;;  %v958_v24 = vmul.f32 0.999, %v766_v19  ;;  %v134_v25 = vld [vmem:[#allocation7 + $0x30] sm:$0xff]  ;;  %v1310_v26 = vadd.f32 %v1118_v15, %v926_v11 }
  0x3f   :  { %492 = vmatpush.bf16.msra.mxu3 %v392_v17  ;;  %v1150_v27 = vmul.f32 0.001, %v170_v16  ;;  %v374_v28 = vpack.c.bf16 %v134_v25, %v132_v21  ;;  %v728_v29 = vld [vmem:[#allocation10 + $0x20] sm:$0xff]  ;;  %v730_v30 = vld [vmem:[#allocation10 + $0x30] sm:$0xff]  ;;  %v1112_v31 = vmul.f32 0.001, %v132_v21 }
  0x40   :  { %1636 = vst [vmem:[#allocation12 + $0x40] sm:$0xff] %v1308_v22  ;;  %v1340_v34 = vadd.f32 %v1148_v20, %v956_v23  ;;  %v920_v35 = vmul.f32 0.999, %v728_v29  ;;  %v922_v36 = vmul.f32 0.999, %v730_v30  ;;  %v164_v37 = vld [vmem:[#allocation7 + $0x120] sm:$0xff] }
  0x41   :  { %1638 = vst [vmem:[#allocation12 + $0x50] sm:$0xff] %v1310_v26  ;;  %v1342_v38 = vadd.f32 %v1150_v27, %v958_v24  ;;  %479 = vmatpush.bf16.msra.mxu2 %v374_v28  ;;  %v1114_v39 = vmul.f32 0.001, %v134_v25  ;;  %v166_v40 = vld [vmem:[#allocation7 + $0x130] sm:$0xff]  ;;  %v760_v41 = vld [vmem:[#allocation10 + $0x120] sm:$0xff] }
  0x42   :  { %v762_v42 = vld [vmem:[#allocation10 + $0x130] sm:$0xff]  ;;  %1668 = vst [vmem:[#allocation12 + $0x140] sm:$0xff] %v1340_v34  ;;  %v1304_v46 = vadd.f32 %v1112_v31, %v920_v35  ;;  %v390_v47 = vpack.c.bf16 %v166_v40, %v164_v37  ;;  %v952_v48 = vmul.f32 0.999, %v760_v41  ;;  %v128_v50 = vld [vmem:[#allocation7] sm:$0xff] }
  0x43   :  { %v954_v49 = vmul.f32 0.999, %v762_v42  ;;  %1670 = vst [vmem:[#allocation12 + $0x150] sm:$0xff] %v1342_v38  ;;  %v1306_v51 = vadd.f32 %v1114_v39, %v922_v36  ;;  %v1144_v52 = vmul.f32 0.001, %v164_v37  ;;  %v130_v55 = vld [vmem:[#allocation7 + $0x10] sm:$0xff] }
  0x44   :  { %v1146_v53 = vmul.f32 0.001, %v166_v40  ;;  %1632 = vst [vmem:[#allocation12 + $0x20] sm:$0xff] %v1304_v46  ;;  %493 = vmatpush.bf16.msra.mxu3 %v390_v47  ;;  %v372_v56 = vpack.c.bf16 %v130_v55, %v128_v50  ;;  %v724_v57 = vld [vmem:[#allocation10] sm:$0xff]  ;;  %v726_v58 = vld [vmem:[#allocation10 + $0x10] sm:$0xff] }
  0x45   :  { %v1108_v59 = vmul.f32 0.001, %v128_v50  ;;  %v160_v60 = vld [vmem:[#allocation7 + $0x100] sm:$0xff]  ;;  %1634 = vst [vmem:[#allocation12 + $0x30] sm:$0xff] %v1306_v51  ;;  %v1336_v61 = vadd.f32 %v1144_v52, %v952_v48  ;;  %v916_v62 = vmul.f32 0.999, %v724_v57 }
  0x46   :  { %v918_v63 = vmul.f32 0.999, %v726_v58  ;;  %v162_v0 = vld [vmem:[#allocation7 + $0x110] sm:$0xff]  ;;  %v1338_v1 = vadd.f32 %v1146_v53, %v954_v49  ;;  %480 = vmatpush.bf16.msra.mxu2 %v372_v56  ;;  %v1110_v2 = vmul.f32 0.001, %v130_v55  ;;  %v756_v4 = vld [vmem:[#allocation10 + $0x100] sm:$0xff] }
  0x47   :  { %v388_v3 = vpack.c.bf16 %v162_v0, %v160_v60  ;;  %v758_v5 = vld [vmem:[#allocation10 + $0x110] sm:$0xff]  ;;  %v1140_v6 = vmul.f32 0.001, %v160_v60  ;;  %1664 = vst [vmem:[#allocation12 + $0x120] sm:$0xff] %v1336_v61  ;;  %v1300_v7 = vadd.f32 %v1108_v59, %v916_v62  ;;  %v948_v8 = vmul.f32 0.999, %v756_v4 }
  0x48   :  { %v950_v9 = vmul.f32 0.999, %v758_v5  ;;  %v220_v10 = vld [vmem:[#allocation7 + $0x2e0] sm:$0xff]  ;;  %1666 = vst [vmem:[#allocation12 + $0x130] sm:$0xff] %v1338_v1  ;;  %v1302_v11 = vadd.f32 %v1110_v2, %v918_v63  ;;  %v1142_v12 = vmul.f32 0.001, %v162_v0 }
  0x49   :  { %494 = vmatpush.bf16.msra.mxu3 %v388_v3  ;;  %v222_v13 = vld [vmem:[#allocation7 + $0x2f0] sm:$0xff]  ;;  %v816_v14 = vld [vmem:[#allocation10 + $0x2e0] sm:$0xff]  ;;  %1628 = vst [vmem:[#allocation12] sm:$0xff] %v1300_v7  ;;  %v1332_v16 = vadd.f32 %v1140_v6, %v948_v8  ;;  %v1200_v22 = vmul.f32 0.001, %v220_v10 }
  0x4a   :  { %v818_v15 = vld [vmem:[#allocation10 + $0x2f0] sm:$0xff]  ;;  %v418_v17 = vpack.c.bf16 %v222_v13, %v220_v10  ;;  %v1008_v18 = vmul.f32 0.999, %v816_v14  ;;  %v252_v20 = vld [vmem:[#allocation7 + $0x3e0] sm:$0xff]  ;;  %1630 = vst [vmem:[#allocation12 + $0x10] sm:$0xff] %v1302_v11  ;;  %v1334_v21 = vadd.f32 %v1142_v12, %v950_v9 }
  0x4b   :  { %v1010_v19 = vmul.f32 0.999, %v818_v15  ;;  %v1202_v23 = vmul.f32 0.001, %v222_v13  ;;  %v254_v24 = vld [vmem:[#allocation7 + $0x3f0] sm:$0xff]  ;;  %1660 = vst [vmem:[#allocation12 + $0x100] sm:$0xff] %v1332_v16 }
  0x4c   :  { %501 = vmatpush.bf16.msrb.mxu2 %v418_v17  ;;  %v434_v25 = vpack.c.bf16 %v254_v24, %v252_v20  ;;  %v848_v26 = vld [vmem:[#allocation10 + $0x3e0] sm:$0xff]  ;;  %v850_v27 = vld [vmem:[#allocation10 + $0x3f0] sm:$0xff]  ;;  %v1232_v28 = vmul.f32 0.001, %v252_v20  ;;  %1662 = vst [vmem:[#allocation12 + $0x110] sm:$0xff] %v1334_v21  ;;  %v1392_v30 = vadd.f32 %v1200_v22, %v1008_v18 }
  0x4d   :  { %v216_v29 = vld [vmem:[#allocation7 + $0x2c0] sm:$0xff]  ;;  %v1040_v31 = vmul.f32 0.999, %v848_v26  ;;  %v1042_v34 = vmul.f32 0.999, %v850_v27  ;;  %v218_v35 = vld [vmem:[#allocation7 + $0x2d0] sm:$0xff]  ;;  %v1394_v36 = vadd.f32 %v1202_v23, %v1010_v19 }
  0x4e   :  { %515 = vmatpush.bf16.msrb.mxu3 %v434_v25  ;;  %v1234_v37 = vmul.f32 0.001, %v254_v24  ;;  %v416_v38 = vpack.c.bf16 %v218_v35, %v216_v29  ;;  %v812_v39 = vld [vmem:[#allocation10 + $0x2c0] sm:$0xff]  ;;  %v814_v40 = vld [vmem:[#allocation10 + $0x2d0] sm:$0xff]  ;;  %v1196_v41 = vmul.f32 0.001, %v216_v29 }
  0x4f   :  { %1720 = vst [vmem:[#allocation12 + $0x2e0] sm:$0xff] %v1392_v30  ;;  %v1424_v42 = vadd.f32 %v1232_v28, %v1040_v31  ;;  %v1004_v46 = vmul.f32 0.999, %v812_v39  ;;  %v1006_v47 = vmul.f32 0.999, %v814_v40  ;;  %v248_v48 = vld [vmem:[#allocation7 + $0x3c0] sm:$0xff] }
  0x50   :  { %1722 = vst [vmem:[#allocation12 + $0x2f0] sm:$0xff] %v1394_v36  ;;  %v1426_v49 = vadd.f32 %v1234_v37, %v1042_v34  ;;  %502 = vmatpush.bf16.msrb.mxu2 %v416_v38  ;;  %v1198_v50 = vmul.f32 0.001, %v218_v35  ;;  %v250_v51 = vld [vmem:[#allocation7 + $0x3d0] sm:$0xff]  ;;  %v844_v52 = vld [vmem:[#allocation10 + $0x3c0] sm:$0xff] }
  0x51   :  { %v846_v53 = vld [vmem:[#allocation10 + $0x3d0] sm:$0xff]  ;;  %1752 = vst [vmem:[#allocation12 + $0x3e0] sm:$0xff] %v1424_v42  ;;  %v1388_v55 = vadd.f32 %v1196_v41, %v1004_v46  ;;  %v432_v56 = vpack.c.bf16 %v250_v51, %v248_v48  ;;  %v1036_v57 = vmul.f32 0.999, %v844_v52  ;;  %v212_v59 = vld [vmem:[#allocation7 + $0x2a0] sm:$0xff] }
  0x52   :  { %v1038_v58 = vmul.f32 0.999, %v846_v53  ;;  %1754 = vst [vmem:[#allocation12 + $0x3f0] sm:$0xff] %v1426_v49  ;;  %v1390_v60 = vadd.f32 %v1198_v50, %v1006_v47  ;;  %v1228_v61 = vmul.f32 0.001, %v248_v48  ;;  %v214_v63 = vld [vmem:[#allocation7 + $0x2b0] sm:$0xff] }
  0x53   :  { %v1230_v62 = vmul.f32 0.001, %v250_v51  ;;  %1716 = vst [vmem:[#allocation12 + $0x2c0] sm:$0xff] %v1388_v55  ;;  %516 = vmatpush.bf16.msrb.mxu3 %v432_v56  ;;  %v414_v0 = vpack.c.bf16 %v214_v63, %v212_v59  ;;  %v808_v1 = vld [vmem:[#allocation10 + $0x2a0] sm:$0xff]  ;;  %v810_v2 = vld [vmem:[#allocation10 + $0x2b0] sm:$0xff]  ;;  %v3206_v53 = vld [vmem:[#allocation7 + $0x4a8] sm:$0xff] }
  0x54   :  { %v1192_v3 = vmul.f32 0.001, %v212_v59  ;;  %v244_v4 = vld [vmem:[#allocation7 + $0x3a0] sm:$0xff]  ;;  %1718 = vst [vmem:[#allocation12 + $0x2d0] sm:$0xff] %v1390_v60  ;;  %v1420_v5 = vadd.f32 %v1228_v61, %v1036_v57  ;;  %v1000_v6 = vmul.f32 0.999, %v808_v1 }
  0x55   :  { %v1002_v7 = vmul.f32 0.999, %v810_v2  ;;  %v246_v8 = vld [vmem:[#allocation7 + $0x3b0] sm:$0xff]  ;;  %v1422_v9 = vadd.f32 %v1230_v62, %v1038_v58  ;;  %503 = vmatpush.bf16.msrb.mxu2 %v414_v0  ;;  %v1194_v10 = vmul.f32 0.001, %v214_v63  ;;  %v840_v12 = vld [vmem:[#allocation10 + $0x3a0] sm:$0xff] }
  0x56   :  { %v430_v11 = vpack.c.bf16 %v246_v8, %v244_v4  ;;  %v842_v13 = vld [vmem:[#allocation10 + $0x3b0] sm:$0xff]  ;;  %v1224_v14 = vmul.f32 0.001, %v244_v4  ;;  %1748 = vst [vmem:[#allocation12 + $0x3c0] sm:$0xff] %v1420_v5  ;;  %v1384_v15 = vadd.f32 %v1192_v3, %v1000_v6  ;;  %v1032_v16 = vmul.f32 0.999, %v840_v12 }
  0x57   :  { %v1034_v17 = vmul.f32 0.999, %v842_v13  ;;  %v284_v18 = vld [vmem:[#allocation7 + $0x4e0] sm:$0xff]  ;;  %1750 = vst [vmem:[#allocation12 + $0x3d0] sm:$0xff] %v1422_v9  ;;  %v1386_v19 = vadd.f32 %v1194_v10, %v1002_v7  ;;  %v1226_v20 = vmul.f32 0.001, %v246_v8 }
  0x58   :  { %517 = vmatpush.bf16.msrb.mxu3 %v430_v11  ;;  %v286_v21 = vld [vmem:[#allocation7 + $0x4f0] sm:$0xff]  ;;  %v880_v22 = vld [vmem:[#allocation10 + $0x4e0] sm:$0xff]  ;;  %1712 = vst [vmem:[#allocation12 + $0x2a0] sm:$0xff] %v1384_v15  ;;  %v1416_v24 = vadd.f32 %v1224_v14, %v1032_v16  ;;  %v1264_v30 = vmul.f32 0.001, %v284_v18 }
  0x59   :  { %v882_v23 = vld [vmem:[#allocation10 + $0x4f0] sm:$0xff]  ;;  %v450_v25 = vpack.c.bf16 %v286_v21, %v284_v18  ;;  %v1072_v26 = vmul.f32 0.999, %v880_v22  ;;  %v208_v28 = vld [vmem:[#allocation7 + $0x280] sm:$0xff]  ;;  %1714 = vst [vmem:[#allocation12 + $0x2b0] sm:$0xff] %v1386_v19  ;;  %v1418_v29 = vadd.f32 %v1226_v20, %v1034_v17 }
  0x5a   :  { %v1074_v27 = vmul.f32 0.999, %v882_v23  ;;  %v1266_v31 = vmul.f32 0.001, %v286_v21  ;;  %v210_v34 = vld [vmem:[#allocation7 + $0x290] sm:$0xff]  ;;  %1744 = vst [vmem:[#allocation12 + $0x3a0] sm:$0xff] %v1416_v24 }
  0x5b   :  { %529 = vmatpush.bf16.msra.mxu0 %v450_v25  ;;  %v412_v35 = vpack.c.bf16 %v210_v34, %v208_v28  ;;  %v804_v36 = vld [vmem:[#allocation10 + $0x280] sm:$0xff]  ;;  %v806_v37 = vld [vmem:[#allocation10 + $0x290] sm:$0xff]  ;;  %v1188_v38 = vmul.f32 0.001, %v208_v28  ;;  %1746 = vst [vmem:[#allocation12 + $0x3b0] sm:$0xff] %v1418_v29  ;;  %v3050_v40 = vadd.f32 %v1264_v30, %v1072_v26  ;;  %v831_v24 = vld [vmem:[#allocation10 + $0x358] sm:$0xff] }
  0x5c   :  { %v240_v39 = vld [vmem:[#allocation7 + $0x380] sm:$0xff]  ;;  %v3052_v41 = vadd.f32 %v1266_v31, %v1074_v27  ;;  %v996_v42 = vmul.f32 0.999, %v804_v36  ;;  %v998_v46 = vmul.f32 0.999, %v806_v37  ;;  %v242_v47 = vld [vmem:[#allocation7 + $0x390] sm:$0xff] }
  0x5d   :  { %504 = vmatpush.bf16.msrb.mxu2 %v412_v35  ;;  %v1190_v48 = vmul.f32 0.001, %v210_v34  ;;  %v428_v49 = vpack.c.bf16 %v242_v47, %v240_v39  ;;  %v836_v50 = vld [vmem:[#allocation10 + $0x380] sm:$0xff]  ;;  %v838_v51 = vld [vmem:[#allocation10 + $0x390] sm:$0xff]  ;;  %v1220_v52 = vmul.f32 0.001, %v240_v39 }
  0x5e   :  { %1784 = vst [vmem:[#allocation12 + $0x4e0] sm:$0xff] %v3050_v40  ;;  %v1380_v55 = vadd.f32 %v1188_v38, %v996_v42  ;;  %v1028_v56 = vmul.f32 0.999, %v836_v50  ;;  %v1030_v57 = vmul.f32 0.999, %v838_v51  ;;  %v316_v58 = vld [vmem:[#allocation7 + $0x5e0] sm:$0xff] }
  0x5f   :  { %1786 = vst [vmem:[#allocation12 + $0x4f0] sm:$0xff] %v3052_v41  ;;  %v1382_v59 = vadd.f32 %v1190_v48, %v998_v46  ;;  %518 = vmatpush.bf16.msrb.mxu3 %v428_v49  ;;  %v1222_v60 = vmul.f32 0.001, %v242_v47  ;;  %v318_v61 = vld [vmem:[#allocation7 + $0x5f0] sm:$0xff]  ;;  %v912_v62 = vld [vmem:[#allocation10 + $0x5e0] sm:$0xff] }
  0x60   :  { %v914_v63 = vld [vmem:[#allocation10 + $0x5f0] sm:$0xff]  ;;  %1708 = vst [vmem:[#allocation12 + $0x280] sm:$0xff] %v1380_v55  ;;  %v1412_v0 = vadd.f32 %v1220_v52, %v1028_v56  ;;  %v466_v1 = vpack.c.bf16 %v318_v61, %v316_v58  ;;  %v1104_v2 = vmul.f32 0.999, %v912_v62  ;;  %v280_v4 = vld [vmem:[#allocation7 + $0x4c0] sm:$0xff] }
  0x61   :  { %v1106_v3 = vmul.f32 0.999, %v914_v63  ;;  %1710 = vst [vmem:[#allocation12 + $0x290] sm:$0xff] %v1382_v59  ;;  %v1414_v5 = vadd.f32 %v1222_v60, %v1030_v57  ;;  %v1296_v6 = vmul.f32 0.001, %v316_v58  ;;  %v282_v8 = vld [vmem:[#allocation7 + $0x4d0] sm:$0xff] }
  0x62   :  { %v1298_v7 = vmul.f32 0.001, %v318_v61  ;;  %1740 = vst [vmem:[#allocation12 + $0x380] sm:$0xff] %v1412_v0  ;;  %543 = vmatpush.bf16.msra.mxu1 %v466_v1  ;;  %v448_v9 = vpack.c.bf16 %v282_v8, %v280_v4  ;;  %v876_v10 = vld [vmem:[#allocation10 + $0x4c0] sm:$0xff]  ;;  %v878_v11 = vld [vmem:[#allocation10 + $0x4d0] sm:$0xff]  ;;  %v355_v61 = vld [vmem:[%s4182_s25 + $0x8] sm:$0xff] }
  0x63   :  { %v1260_v12 = vmul.f32 0.001, %v280_v4  ;;  %v354_v13 = vld [vmem:[%s4182_s25] sm:$0xff]  ;;  %1742 = vst [vmem:[#allocation12 + $0x390] sm:$0xff] %v1414_v5  ;;  %v3061_v14 = vadd.f32 %v1296_v6, %v1104_v2  ;;  %v1068_v16 = vmul.f32 0.999, %v876_v10 }
  0x64   :  { %v3063_v15 = vadd.f32 %v1298_v7, %v1106_v3  ;;  %v1070_v17 = vmul.f32 0.999, %v878_v11  ;;  %v360_v18 = vld [vmem:[%s4182_s25 + $0x30] sm:$0xff]  ;;  %530 = vmatpush.bf16.msra.mxu0 %v448_v9  ;;  %v1262_v19 = vmul.f32 0.001, %v282_v8  ;;  %v204_v21 = vld [vmem:[#allocation7 + $0x260] sm:$0xff] }
  0x65   :  { %v3068_v20 = vpack.c.bf16 %v360_v18, %v354_v13  ;;  %v206_v22 = vld [vmem:[#allocation7 + $0x270] sm:$0xff]  ;;  %v800_v23 = vld [vmem:[#allocation10 + $0x260] sm:$0xff]  ;;  %1816 = vst [vmem:[#allocation12 + $0x5e0] sm:$0xff] %v3061_v14  ;;  %v1452_v25 = vadd.f32 %v1260_v12, %v1068_v16  ;;  %v1184_v35 = vmul.f32 0.001, %v204_v21  ;;  %v361_v1 = vld [vmem:[%s4182_s25 + $0x38] sm:$0xff] }
  0x66   :  { %v410_v26 = vpack.c.bf16 %v206_v22, %v204_v21  ;;  %v802_v27 = vld [vmem:[#allocation10 + $0x270] sm:$0xff]  ;;  %v992_v28 = vmul.f32 0.999, %v800_v23  ;;  %v236_v29 = vld [vmem:[#allocation7 + $0x360] sm:$0xff]  ;;  %1818 = vst [vmem:[#allocation12 + $0x5f0] sm:$0xff] %v3063_v15  ;;  %v1454_v31 = vadd.f32 %v1262_v19, %v1070_v17  ;;  %v3081_v2 = vpack.c.bf16 %v361_v1, %v355_v61 }
  0x67   :  { %v238_v30 = vld [vmem:[#allocation7 + $0x370] sm:$0xff]  ;;  %481 = vmatmul.bf16.vlgmr.msra.gmra.mxu2 %v3068_v20  ;;  %v994_v34 = vmul.f32 0.999, %v802_v27  ;;  %v832_v37 = vld [vmem:[#allocation10 + $0x360] sm:$0xff]  ;;  %1780 = vst [vmem:[#allocation12 + $0x4c0] sm:$0xff] %v1452_v25 }
  0x68   :  { %v426_v36 = vpack.c.bf16 %v238_v30, %v236_v29  ;;  %505 = vmatpush.bf16.msrb.mxu2 %v410_v26  ;;  %v1186_v38 = vmul.f32 0.001, %v206_v22  ;;  %v834_v39 = vld [vmem:[#allocation10 + $0x370] sm:$0xff]  ;;  %v1024_v42 = vmul.f32 0.999, %v832_v37  ;;  %1782 = vst [vmem:[#allocation12 + $0x4d0] sm:$0xff] %v1454_v31  ;;  %v1376_v46 = vadd.f32 %v1184_v35, %v992_v28  ;;  %495 = vmatmul.bf16.vlgmr.msra.gmra.mxu3 %v3081_v2 }
  0x69   :  { %v1026_v47 = vmul.f32 0.999, %v834_v39  ;;  %v1216_v48 = vmul.f32 0.001, %v236_v29  ;;  %v312_v49 = vld [vmem:[#allocation7 + $0x5c0] sm:$0xff]  ;;  %v314_v52 = vld [vmem:[#allocation7 + $0x5d0] sm:$0xff] }
  0x6a   :  { %519 = vmatpush.bf16.msrb.mxu3 %v426_v36  ;;  %v1378_v50 = vadd.f32 %v1186_v38, %v994_v34  ;;  %v1218_v51 = vmul.f32 0.001, %v238_v30  ;;  %v908_v55 = vld [vmem:[#allocation10 + $0x5c0] sm:$0xff]  ;;  %v910_v56 = vld [vmem:[#allocation10 + $0x5d0] sm:$0xff]  ;;  %1704 = vst [vmem:[#allocation12 + $0x260] sm:$0xff] %v1376_v46  ;;  %v464_v58 = vpack.c.bf16 %v314_v52, %v312_v49 }
  0x6b   :  { %v1408_v57 = vadd.f32 %v1216_v48, %v1024_v42  ;;  %v1100_v59 = vmul.f32 0.999, %v908_v55  ;;  %v1102_v60 = vmul.f32 0.999, %v910_v56  ;;  %v1292_v63 = vmul.f32 0.001, %v312_v49 }
  0x6c   :  { %1706 = vst [vmem:[#allocation12 + $0x270] sm:$0xff] %v1378_v50  ;;  %v1410_v62 = vadd.f32 %v1218_v51, %v1026_v47  ;;  %v1294_v0 = vmul.f32 0.001, %v314_v52  ;;  %544 = vmatpush.bf16.msra.mxu1 %v464_v58  ;;  %v276_v3 = vld [vmem:[#allocation7 + $0x4a0] sm:$0xff]  ;;  %v278_v4 = vld [vmem:[#allocation7 + $0x4b0] sm:$0xff] }
  0x6d   :  { %1736 = vst [vmem:[#allocation12 + $0x360] sm:$0xff] %v1408_v57  ;;  %v872_v5 = vld [vmem:[#allocation10 + $0x4a0] sm:$0xff]  ;;  %v1484_v6 = vadd.f32 %v1292_v63, %v1100_v59  ;;  %v446_v8 = vpack.c.bf16 %v278_v4, %v276_v3  ;;  %v874_v9 = vld [vmem:[#allocation10 + $0x4b0] sm:$0xff]  ;;  %v1256_v16 = vmul.f32 0.001, %v276_v3 }
  0x6e   :  { %1738 = vst [vmem:[#allocation12 + $0x370] sm:$0xff] %v1410_v62  ;;  %v1486_v7 = vadd.f32 %v1294_v0, %v1102_v60  ;;  %v1064_v10 = vmul.f32 0.999, %v872_v5  ;;  %v200_v11 = vld [vmem:[#allocation7 + $0x240] sm:$0xff]  ;;  %v202_v12 = vld [vmem:[#allocation7 + $0x250] sm:$0xff] }
  0x6f   :  { %v1066_v13 = vmul.f32 0.999, %v874_v9  ;;  %v1258_v17 = vmul.f32 0.001, %v278_v4  ;;  %v408_v18 = vpack.c.bf16 %v202_v12, %v200_v11  ;;  %1812 = vst [vmem:[#allocation12 + $0x5c0] sm:$0xff] %v1484_v6  ;;  %531 = vmatpush.bf16.msra.mxu0 %v446_v8  ;;  %v796_v19 = vld [vmem:[#allocation10 + $0x240] sm:$0xff] }
  0x70   :  { %v798_v21 = vld [vmem:[#allocation10 + $0x250] sm:$0xff]  ;;  %v1180_v22 = vmul.f32 0.001, %v200_v11  ;;  %v232_v23 = vld [vmem:[#allocation7 + $0x340] sm:$0xff]  ;;  %1814 = vst [vmem:[#allocation12 + $0x5d0] sm:$0xff] %v1486_v7  ;;  %v1448_v25 = vadd.f32 %v1256_v16, %v1064_v10 }
  0x71   :  { %506 = vmatpush.bf16.msrb.mxu2 %v408_v18  ;;  %v988_v26 = vmul.f32 0.999, %v796_v19  ;;  %v990_v27 = vmul.f32 0.999, %v798_v21  ;;  %v234_v28 = vld [vmem:[#allocation7 + $0x350] sm:$0xff]  ;;  %v1450_v29 = vadd.f32 %v1258_v17, %v1066_v13  ;;  %v828_v34 = vld [vmem:[#allocation10 + $0x340] sm:$0xff] }
  0x72   :  { %v1182_v30 = vmul.f32 0.001, %v202_v12  ;;  %v424_v31 = vpack.c.bf16 %v234_v28, %v232_v23  ;;  %v830_v35 = vld [vmem:[#allocation10 + $0x350] sm:$0xff]  ;;  %v1212_v36 = vmul.f32 0.001, %v232_v23  ;;  %1776 = vst [vmem:[#allocation12 + $0x4a0] sm:$0xff] %v1448_v25 }
  0x73   :  { %v1372_v37 = vadd.f32 %v1180_v22, %v988_v26  ;;  %v1020_v38 = vmul.f32 0.999, %v828_v34  ;;  %v1022_v39 = vmul.f32 0.999, %v830_v35  ;;  %v308_v42 = vld [vmem:[#allocation7 + $0x5a0] sm:$0xff]  ;;  %1778 = vst [vmem:[#allocation12 + $0x4b0] sm:$0xff] %v1450_v29 }
  0x74   :  { %v1374_v46 = vadd.f32 %v1182_v30, %v990_v27  ;;  %520 = vmatpush.bf16.msrb.mxu3 %v424_v31  ;;  %v1214_v47 = vmul.f32 0.001, %v234_v28  ;;  %v310_v48 = vld [vmem:[#allocation7 + $0x5b0] sm:$0xff]  ;;  %v904_v49 = vld [vmem:[#allocation10 + $0x5a0] sm:$0xff]  ;;  %v1288_v59 = vmul.f32 0.001, %v308_v42 }
  0x75   :  { %v906_v50 = vld [vmem:[#allocation10 + $0x5b0] sm:$0xff]  ;;  %1700 = vst [vmem:[#allocation12 + $0x240] sm:$0xff] %v1372_v37  ;;  %v1404_v51 = vadd.f32 %v1212_v36, %v1020_v38  ;;  %v462_v52 = vpack.c.bf16 %v310_v48, %v308_v42  ;;  %v1096_v55 = vmul.f32 0.999, %v904_v49  ;;  %v272_v57 = vld [vmem:[#allocation7 + $0x480] sm:$0xff] }
  0x76   :  { %v1098_v56 = vmul.f32 0.999, %v906_v50  ;;  %1702 = vst [vmem:[#allocation12 + $0x250] sm:$0xff] %v1374_v46  ;;  %v1406_v58 = vadd.f32 %v1214_v47, %v1022_v39  ;;  %v1290_v60 = vmul.f32 0.001, %v310_v48  ;;  %v274_v61 = vld [vmem:[#allocation7 + $0x490] sm:$0xff] }
  0x77   :  { %1732 = vst [vmem:[#allocation12 + $0x340] sm:$0xff] %v1404_v51  ;;  %545 = vmatpush.bf16.msra.mxu1 %v462_v52  ;;  %v444_v62 = vpack.c.bf16 %v274_v61, %v272_v57  ;;  %v868_v63 = vld [vmem:[#allocation10 + $0x480] sm:$0xff]  ;;  %v870_v0 = vld [vmem:[#allocation10 + $0x490] sm:$0xff]  ;;  %v1252_v1 = vmul.f32 0.001, %v272_v57  ;;  %v1480_v4 = vadd.f32 %v1288_v59, %v1096_v55 }
  0x78   :  { %v196_v3 = vld [vmem:[#allocation7 + $0x220] sm:$0xff]  ;;  %1734 = vst [vmem:[#allocation12 + $0x350] sm:$0xff] %v1406_v58  ;;  %v1060_v5 = vmul.f32 0.999, %v868_v63  ;;  %v1062_v6 = vmul.f32 0.999, %v870_v0  ;;  %v1482_v8 = vadd.f32 %v1290_v60, %v1098_v56 }
  0x79   :  { %v198_v7 = vld [vmem:[#allocation7 + $0x230] sm:$0xff]  ;;  %532 = vmatpush.bf16.msra.mxu0 %v444_v62  ;;  %v1254_v9 = vmul.f32 0.001, %v274_v61  ;;  %v792_v11 = vld [vmem:[#allocation10 + $0x220] sm:$0xff]  ;;  %v1176_v13 = vmul.f32 0.001, %v196_v3 }
  0x7a   :  { %v406_v10 = vpack.c.bf16 %v198_v7, %v196_v3  ;;  %v794_v12 = vld [vmem:[#allocation10 + $0x230] sm:$0xff]  ;;  %1808 = vst [vmem:[#allocation12 + $0x5a0] sm:$0xff] %v1480_v4  ;;  %v1444_v16 = vadd.f32 %v1252_v1, %v1060_v5  ;;  %v984_v17 = vmul.f32 0.999, %v792_v11  ;;  %v228_v19 = vld [vmem:[#allocation7 + $0x320] sm:$0xff] }
  0x7b   :  { %v986_v18 = vmul.f32 0.999, %v794_v12  ;;  %1810 = vst [vmem:[#allocation12 + $0x5b0] sm:$0xff] %v1482_v8  ;;  %v1446_v21 = vadd.f32 %v1254_v9, %v1062_v6  ;;  %v1178_v22 = vmul.f32 0.001, %v198_v7  ;;  %v230_v23 = vld [vmem:[#allocation7 + $0x330] sm:$0xff] }
  0x7c   :  { %507 = vmatpush.bf16.msrb.mxu2 %v406_v10  ;;  %v824_v25 = vld [vmem:[#allocation10 + $0x320] sm:$0xff]  ;;  %v826_v26 = vld [vmem:[#allocation10 + $0x330] sm:$0xff]  ;;  %1772 = vst [vmem:[#allocation12 + $0x480] sm:$0xff] %v1444_v16  ;;  %v1368_v27 = vadd.f32 %v1176_v13, %v984_v17  ;;  %v422_v28 = vpack.c.bf16 %v230_v23, %v228_v19  ;;  %v1208_v35 = vmul.f32 0.001, %v228_v19 }
  0x7d   :  { %v1016_v29 = vmul.f32 0.999, %v824_v25  ;;  %v1018_v30 = vmul.f32 0.999, %v826_v26  ;;  %v304_v31 = vld [vmem:[#allocation7 + $0x580] sm:$0xff]  ;;  %1774 = vst [vmem:[#allocation12 + $0x490] sm:$0xff] %v1446_v21  ;;  %v1370_v34 = vadd.f32 %v1178_v22, %v986_v18 }
  0x7e   :  { %v1210_v36 = vmul.f32 0.001, %v230_v23  ;;  %v306_v37 = vld [vmem:[#allocation7 + $0x590] sm:$0xff]  ;;  %1696 = vst [vmem:[#allocation12 + $0x220] sm:$0xff] %v1368_v27  ;;  %521 = vmatpush.bf16.msrb.mxu3 %v422_v28  ;;  %v900_v39 = vld [vmem:[#allocation10 + $0x580] sm:$0xff] }
  0x7f   :  { %v460_v38 = vpack.c.bf16 %v306_v37, %v304_v31  ;;  %v902_v42 = vld [vmem:[#allocation10 + $0x590] sm:$0xff]  ;;  %v1284_v46 = vmul.f32 0.001, %v304_v31  ;;  %v268_v47 = vld [vmem:[#allocation7 + $0x460] sm:$0xff]  ;;  %1698 = vst [vmem:[#allocation12 + $0x230] sm:$0xff] %v1370_v34  ;;  %v1400_v48 = vadd.f32 %v1208_v35, %v1016_v29 }
  0x80   :  { %v1092_v49 = vmul.f32 0.999, %v900_v39  ;;  %v1094_v50 = vmul.f32 0.999, %v902_v42  ;;  %v270_v51 = vld [vmem:[#allocation7 + $0x470] sm:$0xff]  ;;  %v1402_v52 = vadd.f32 %v1210_v36, %v1018_v30  ;;  %v864_v57 = vld [vmem:[#allocation10 + $0x460] sm:$0xff] }
  0x81   :  { %546 = vmatpush.bf16.msra.mxu1 %v460_v38  ;;  %v1286_v55 = vmul.f32 0.001, %v306_v37  ;;  %v442_v56 = vpack.c.bf16 %v270_v51, %v268_v47  ;;  %v866_v58 = vld [vmem:[#allocation10 + $0x470] sm:$0xff]  ;;  %v1248_v59 = vmul.f32 0.001, %v268_v47  ;;  %1728 = vst [vmem:[#allocation12 + $0x320] sm:$0xff] %v1400_v48 }
  0x82   :  { %v1476_v60 = vadd.f32 %v1284_v46, %v1092_v49  ;;  %v1056_v61 = vmul.f32 0.999, %v864_v57  ;;  %v1058_v62 = vmul.f32 0.999, %v866_v58  ;;  %v192_v63 = vld [vmem:[#allocation7 + $0x200] sm:$0xff]  ;;  %1730 = vst [vmem:[#allocation12 + $0x330] sm:$0xff] %v1402_v52 }
  0x83   :  { %v1478_v0 = vadd.f32 %v1286_v55, %v1094_v50  ;;  %533 = vmatpush.bf16.msra.mxu0 %v442_v56  ;;  %v1250_v1 = vmul.f32 0.001, %v270_v51  ;;  %v194_v3 = vld [vmem:[#allocation7 + $0x210] sm:$0xff]  ;;  %v788_v4 = vld [vmem:[#allocation10 + $0x200] sm:$0xff]  ;;  %v1172_v12 = vmul.f32 0.001, %v192_v63 }
  0x84   :  { %v790_v5 = vld [vmem:[#allocation10 + $0x210] sm:$0xff]  ;;  %1804 = vst [vmem:[#allocation12 + $0x580] sm:$0xff] %v1476_v60  ;;  %v1440_v6 = vadd.f32 %v1248_v59, %v1056_v61  ;;  %v404_v7 = vpack.c.bf16 %v194_v3, %v192_v63  ;;  %v980_v8 = vmul.f32 0.999, %v788_v4  ;;  %v224_v10 = vld [vmem:[#allocation7 + $0x300] sm:$0xff]  ;;  %v157_v39 = vld [vmem:[#allocation7 + $0xe8] sm:$0xff] }
  0x85   :  { %v982_v9 = vmul.f32 0.999, %v790_v5  ;;  %1806 = vst [vmem:[#allocation12 + $0x590] sm:$0xff] %v1478_v0  ;;  %v1442_v11 = vadd.f32 %v1250_v1, %v1058_v62  ;;  %v1174_v13 = vmul.f32 0.001, %v194_v3  ;;  %v226_v16 = vld [vmem:[#allocation7 + $0x310] sm:$0xff] }
  0x86   :  { %1768 = vst [vmem:[#allocation12 + $0x460] sm:$0xff] %v1440_v6  ;;  %508 = vmatpush.bf16.msrb.mxu2 %v404_v7  ;;  %v420_v17 = vpack.c.bf16 %v226_v16, %v224_v10  ;;  %v820_v18 = vld [vmem:[#allocation10 + $0x300] sm:$0xff]  ;;  %v822_v19 = vld [vmem:[#allocation10 + $0x310] sm:$0xff]  ;;  %v1204_v21 = vmul.f32 0.001, %v224_v10  ;;  %v1364_v23 = vadd.f32 %v1172_v12, %v980_v8  ;;  %v159_v47 = vld [vmem:[#allocation7 + $0xf8] sm:$0xff] }
  0x87   :  { %v300_v22 = vld [vmem:[#allocation7 + $0x560] sm:$0xff]  ;;  %1770 = vst [vmem:[#allocation12 + $0x470] sm:$0xff] %v1442_v11  ;;  %v1012_v25 = vmul.f32 0.999, %v820_v18  ;;  %v1014_v26 = vmul.f32 0.999, %v822_v19  ;;  %v1366_v28 = vadd.f32 %v1174_v13, %v982_v9  ;;  %v387_v49 = vpack.c.bf16 %v159_v47, %v157_v39 }
  0x88   :  { %v302_v27 = vld [vmem:[#allocation7 + $0x570] sm:$0xff]  ;;  %522 = vmatpush.bf16.msrb.mxu3 %v420_v17  ;;  %v1206_v29 = vmul.f32 0.001, %v226_v16  ;;  %v896_v31 = vld [vmem:[#allocation10 + $0x560] sm:$0xff]  ;;  %v1280_v35 = vmul.f32 0.001, %v300_v22 }
  0x89   :  { %v458_v30 = vpack.c.bf16 %v302_v27, %v300_v22  ;;  %v898_v34 = vld [vmem:[#allocation10 + $0x570] sm:$0xff]  ;;  %1692 = vst [vmem:[#allocation12 + $0x200] sm:$0xff] %v1364_v23  ;;  %v1396_v36 = vadd.f32 %v1204_v21, %v1012_v25  ;;  %v1088_v37 = vmul.f32 0.999, %v896_v31  ;;  %v1282_v46 = vmul.f32 0.001, %v302_v27 }
  0x8a   :  { %v1090_v38 = vmul.f32 0.999, %v898_v34  ;;  %1694 = vst [vmem:[#allocation12 + $0x210] sm:$0xff] %v1366_v28  ;;  %v1398_v42 = vadd.f32 %v1206_v29, %v1014_v26  ;;  %v189_v50 = vld [vmem:[#allocation7 + $0x1e8] sm:$0xff]  ;;  %v191_v51 = vld [vmem:[#allocation7 + $0x1f8] sm:$0xff]  ;;  %v264_v52 = vld [vmem:[#allocation7 + $0x440] sm:$0xff]  ;;  %557 = vmatpush.bf16.msra.mxu2 %v387_v49 }
  0x8b   :  { %547 = vmatpush.bf16.msra.mxu1 %v458_v30  ;;  %1724 = vst [vmem:[#allocation12 + $0x300] sm:$0xff] %v1396_v36  ;;  %v1472_v48 = vadd.f32 %v1280_v35, %v1088_v37  ;;  %v403_v56 = vpack.c.bf16 %v191_v51, %v189_v50  ;;  %v266_v57 = vld [vmem:[#allocation7 + $0x450] sm:$0xff]  ;;  %v860_v59 = vld [vmem:[#allocation10 + $0x440] sm:$0xff]  ;;  %v1244_v61 = vmul.f32 0.001, %v264_v52  ;;  %v357_v13 = vld [vmem:[%s4182_s25 + $0x18] sm:$0xff] }
  0x8c   :  { %1726 = vst [vmem:[#allocation12 + $0x310] sm:$0xff] %v1398_v42  ;;  %v1474_v55 = vadd.f32 %v1282_v46, %v1090_v38  ;;  %v440_v58 = vpack.c.bf16 %v266_v57, %v264_v52  ;;  %v862_v60 = vld [vmem:[#allocation10 + $0x450] sm:$0xff]  ;;  %v1052_v63 = vmul.f32 0.999, %v860_v59  ;;  %v362_v1 = vld [vmem:[%s4182_s25 + $0x40] sm:$0xff]  ;;  %v363_v19 = vld [vmem:[%s4182_s25 + $0x48] sm:$0xff] }
  0x8d   :  { %1800 = vst [vmem:[#allocation12 + $0x560] sm:$0xff] %v1472_v48  ;;  %v356_v62 = vld [vmem:[%s4182_s25 + $0x10] sm:$0xff]  ;;  %571 = vmatpush.bf16.msra.mxu3 %v403_v56  ;;  %v1054_v0 = vmul.f32 0.999, %v862_v60  ;;  %v1246_v3 = vmul.f32 0.001, %v266_v57  ;;  %v3099_v23 = vpack.c.bf16 %v363_v19, %v357_v13 }
  0x8e   :  { %1802 = vst [vmem:[#allocation12 + $0x570] sm:$0xff] %v1474_v55  ;;  %534 = vmatpush.bf16.msra.mxu0 %v440_v58  ;;  %v3090_v4 = vpack.c.bf16 %v362_v1, %v356_v62  ;;  %v296_v5 = vld [vmem:[#allocation7 + $0x540] sm:$0xff]  ;;  %v298_v6 = vld [vmem:[#allocation7 + $0x550] sm:$0xff]  ;;  %v1436_v8 = vadd.f32 %v1244_v61, %v1052_v63  ;;  %v153_v21 = vld [vmem:[#allocation7 + $0xc8] sm:$0xff] }
  0x8f   :  { %v892_v7 = vld [vmem:[#allocation10 + $0x540] sm:$0xff]  ;;  %v456_v9 = vpack.c.bf16 %v298_v6, %v296_v5  ;;  %v894_v10 = vld [vmem:[#allocation10 + $0x550] sm:$0xff]  ;;  %v1276_v12 = vmul.f32 0.001, %v296_v5  ;;  %v1438_v16 = vadd.f32 %v1246_v3, %v1054_v0  ;;  %v1278_v18 = vmul.f32 0.001, %v298_v6  ;;  %523 = vmatmul.bf16.vlgmr.msrb.gmra.mxu3 %v3099_v23 }
  0x90   :  { %v1084_v11 = vmul.f32 0.999, %v892_v7  ;;  %509 = vmatmul.bf16.vlgmr.msrb.gmra.mxu2 %v3090_v4  ;;  %v1086_v17 = vmul.f32 0.999, %v894_v10  ;;  %1764 = vst [vmem:[#allocation12 + $0x440] sm:$0xff] %v1436_v8  ;;  %v155_v25 = vld [vmem:[#allocation7 + $0xd8] sm:$0xff] }
  0x91   :  { %548 = vmatpush.bf16.msra.mxu1 %v456_v9  ;;  %v185_v26 = vld [vmem:[#allocation7 + $0x1c8] sm:$0xff]  ;;  %v187_v27 = vld [vmem:[#allocation7 + $0x1d8] sm:$0xff]  ;;  %1766 = vst [vmem:[#allocation12 + $0x450] sm:$0xff] %v1438_v16  ;;  %v385_v29 = vpack.c.bf16 %v155_v25, %v153_v21  ;;  %v260_v31 = vld [vmem:[#allocation7 + $0x420] sm:$0xff] }
  0x92   :  { %v1468_v22 = vadd.f32 %v1276_v12, %v1084_v11  ;;  %v1470_v28 = vadd.f32 %v1278_v18, %v1086_v17  ;;  %v401_v30 = vpack.c.bf16 %v187_v27, %v185_v26  ;;  %v262_v34 = vld [vmem:[#allocation7 + $0x430] sm:$0xff]  ;;  %v856_v35 = vld [vmem:[#allocation10 + $0x420] sm:$0xff]  ;;  %v1240_v46 = vmul.f32 0.001, %v260_v31  ;;  %v149_v56 = vld [vmem:[#allocation7 + $0xa8] sm:$0xff] }
  0x93   :  { %v438_v36 = vpack.c.bf16 %v262_v34, %v260_v31  ;;  %v858_v37 = vld [vmem:[#allocation10 + $0x430] sm:$0xff]  ;;  %558 = vmatpush.bf16.msra.mxu2 %v385_v29  ;;  %v1048_v38 = vmul.f32 0.999, %v856_v35  ;;  %v292_v42 = vld [vmem:[#allocation7 + $0x520] sm:$0xff]  ;;  %v1242_v47 = vmul.f32 0.001, %v262_v34 }
  0x94   :  { %1796 = vst [vmem:[#allocation12 + $0x540] sm:$0xff] %v1468_v22  ;;  %572 = vmatpush.bf16.msra.mxu3 %v401_v30  ;;  %v1050_v39 = vmul.f32 0.999, %v858_v37  ;;  %v294_v48 = vld [vmem:[#allocation7 + $0x530] sm:$0xff]  ;;  %v888_v49 = vld [vmem:[#allocation10 + $0x520] sm:$0xff]  ;;  %v151_v60 = vld [vmem:[#allocation7 + $0xb8] sm:$0xff] }
  0x95   :  { %1798 = vst [vmem:[#allocation12 + $0x550] sm:$0xff] %v1470_v28  ;;  %535 = vmatpush.bf16.msra.mxu0 %v438_v36  ;;  %v454_v50 = vpack.c.bf16 %v294_v48, %v292_v42  ;;  %v890_v51 = vld [vmem:[#allocation10 + $0x530] sm:$0xff]  ;;  %v1080_v52 = vmul.f32 0.999, %v888_v49  ;;  %v1272_v55 = vmul.f32 0.001, %v292_v42  ;;  %v1432_v57 = vadd.f32 %v1240_v46, %v1048_v38 }
  0x96   :  { %v1082_v58 = vmul.f32 0.999, %v890_v51  ;;  %v1274_v59 = vmul.f32 0.001, %v294_v48  ;;  %v181_v61 = vld [vmem:[#allocation7 + $0x1a8] sm:$0xff]  ;;  %v1434_v62 = vadd.f32 %v1242_v47, %v1050_v39  ;;  %v383_v63 = vpack.c.bf16 %v151_v60, %v149_v56  ;;  %v183_v0 = vld [vmem:[#allocation7 + $0x1b8] sm:$0xff] }
  0x97   :  { %549 = vmatpush.bf16.msra.mxu1 %v454_v50  ;;  %v256_v1 = vld [vmem:[#allocation7 + $0x400] sm:$0xff]  ;;  %1760 = vst [vmem:[#allocation12 + $0x420] sm:$0xff] %v1432_v57  ;;  %v1464_v3 = vadd.f32 %v1272_v55, %v1080_v52  ;;  %v399_v5 = vpack.c.bf16 %v183_v0, %v181_v61  ;;  %v258_v6 = vld [vmem:[#allocation7 + $0x410] sm:$0xff]  ;;  %v3108_v35 = vld [vmem:[#allocation7 + $0x88] sm:$0xff] }
  0x98   :  { %1762 = vst [vmem:[#allocation12 + $0x430] sm:$0xff] %v1434_v62  ;;  %v1466_v7 = vadd.f32 %v1274_v59, %v1082_v58  ;;  %559 = vmatpush.bf16.msra.mxu2 %v383_v63  ;;  %v436_v8 = vpack.c.bf16 %v258_v6, %v256_v1  ;;  %v852_v9 = vld [vmem:[#allocation10 + $0x400] sm:$0xff]  ;;  %v854_v10 = vld [vmem:[#allocation10 + $0x410] sm:$0xff]  ;;  %v1236_v11 = vmul.f32 0.001, %v256_v1  ;;  %v3110_v36 = vld [vmem:[#allocation7 + $0x98] sm:$0xff] }
  0x99   :  { %v288_v12 = vld [vmem:[#allocation7 + $0x500] sm:$0xff]  ;;  %1792 = vst [vmem:[#allocation12 + $0x520] sm:$0xff] %v1464_v3  ;;  %573 = vmatpush.bf16.msra.mxu3 %v399_v5  ;;  %v1044_v13 = vmul.f32 0.999, %v852_v9  ;;  %v1046_v16 = vmul.f32 0.999, %v854_v10  ;;  %v381_v39 = vpack.c.bf16 %v3110_v36, %v3108_v35 }
  0x9a   :  { %v290_v17 = vld [vmem:[#allocation7 + $0x510] sm:$0xff]  ;;  %1794 = vst [vmem:[#allocation12 + $0x530] sm:$0xff] %v1466_v7  ;;  %536 = vmatpush.bf16.msra.mxu0 %v436_v8  ;;  %v1238_v18 = vmul.f32 0.001, %v258_v6  ;;  %v884_v21 = vld [vmem:[#allocation10 + $0x500] sm:$0xff]  ;;  %v3116_v42 = vld [vmem:[#allocation7 + $0x188] sm:$0xff] }
  0x9b   :  { %v452_v19 = vpack.c.bf16 %v290_v17, %v288_v12  ;;  %v886_v22 = vld [vmem:[#allocation10 + $0x510] sm:$0xff]  ;;  %v358_v25 = vld [vmem:[%s4182_s25 + $0x20] sm:$0xff]  ;;  %v1428_v26 = vadd.f32 %v1236_v11, %v1044_v13  ;;  %v1076_v27 = vmul.f32 0.999, %v884_v21  ;;  %v1268_v29 = vmul.f32 0.001, %v288_v12 }
  0x9c   :  { %v1078_v28 = vmul.f32 0.999, %v886_v22  ;;  %v1430_v30 = vadd.f32 %v1238_v18, %v1046_v16  ;;  %v1270_v31 = vmul.f32 0.001, %v290_v17  ;;  %v364_v34 = vld [vmem:[%s4182_s25 + $0x50] sm:$0xff]  ;;  %v3118_v46 = vld [vmem:[#allocation7 + $0x198] sm:$0xff]  ;;  %560 = vmatpush.bf16.msra.mxu2 %v381_v39 }
  0x9d   :  { %550 = vmatpush.bf16.msra.mxu1 %v452_v19  ;;  %1756 = vst [vmem:[#allocation12 + $0x400] sm:$0xff] %v1428_v26  ;;  %v1460_v37 = vadd.f32 %v1268_v29, %v1076_v27  ;;  %v3112_v38 = vpack.c.bf16 %v364_v34, %v358_v25  ;;  %v359_v47 = vld [vmem:[%s4182_s25 + $0x28] sm:$0xff]  ;;  %v397_v49 = vpack.c.bf16 %v3118_v46, %v3116_v42  ;;  %v365_v50 = vld [vmem:[%s4182_s25 + $0x58] sm:$0xff] }
  0x9e   :  { %1758 = vst [vmem:[#allocation12 + $0x410] sm:$0xff] %v1430_v30  ;;  %v1462_v48 = vadd.f32 %v1270_v31, %v1078_v28  ;;  %v3129_v51 = vpack.c.bf16 %v365_v50, %v359_v47  ;;  %v221_v52 = vld [vmem:[#allocation7 + $0x2e8] sm:$0xff]  ;;  %v223_v55 = vld [vmem:[#allocation7 + $0x2f8] sm:$0xff] }
  0x9f   :  { %1788 = vst [vmem:[#allocation12 + $0x500] sm:$0xff] %v1460_v37  ;;  %537 = vmatmul.bf16.vlgmr.msra.gmra.mxu0 %v3112_v38  ;;  %v817_v56 = vld [vmem:[#allocation10 + $0x2e8] sm:$0xff]  ;;  %574 = vmatpush.bf16.msra.mxu3 %v397_v49  ;;  %v419_v57 = vpack.c.bf16 %v223_v55, %v221_v52  ;;  %v819_v58 = vld [vmem:[#allocation10 + $0x2f8] sm:$0xff]  ;;  %v1201_v60 = vmul.f32 0.001, %v221_v52 }
  0xa0   :  { %1790 = vst [vmem:[#allocation12 + $0x510] sm:$0xff] %v1462_v48  ;;  %v1009_v59 = vmul.f32 0.999, %v817_v56  ;;  %551 = vmatmul.bf16.vlgmr.msra.gmra.mxu1 %v3129_v51  ;;  %v1011_v61 = vmul.f32 0.999, %v819_v58  ;;  %v3132_v63 = vld [vmem:[#allocation7 + $0x68] sm:$0xff] }
  0xa1   :  { %v1203_v62 = vmul.f32 0.001, %v223_v55  ;;  %v3134_v0 = vld [vmem:[#allocation7 + $0x78] sm:$0xff]  ;;  %585 = vmatpush.bf16.msrb.mxu0 %v419_v57  ;;  %v3138_v5 = vld [vmem:[#allocation7 + $0x168] sm:$0xff] }
  0xa2   :  { %v1393_v1 = vadd.f32 %v1201_v60, %v1009_v59  ;;  %v379_v3 = vpack.c.bf16 %v3134_v0, %v3132_v63  ;;  %v3140_v6 = vld [vmem:[#allocation7 + $0x178] sm:$0xff]  ;;  %v253_v9 = vld [vmem:[#allocation7 + $0x3e8] sm:$0xff] }
  0xa3   :  { %v1395_v7 = vadd.f32 %v1203_v62, %v1011_v61  ;;  %v395_v8 = vpack.c.bf16 %v3140_v6, %v3138_v5  ;;  %v255_v10 = vld [vmem:[#allocation7 + $0x3f8] sm:$0xff]  ;;  %v849_v12 = vld [vmem:[#allocation10 + $0x3e8] sm:$0xff]  ;;  %v1233_v16 = vmul.f32 0.001, %v253_v9 }
  0xa4   :  { %1721 = vst [vmem:[#allocation12 + $0x2e8] sm:$0xff] %v1393_v1  ;;  %561 = vmatpush.bf16.msra.mxu2 %v379_v3  ;;  %v435_v11 = vpack.c.bf16 %v255_v10, %v253_v9  ;;  %v851_v13 = vld [vmem:[#allocation10 + $0x3f8] sm:$0xff]  ;;  %v217_v17 = vld [vmem:[#allocation7 + $0x2c8] sm:$0xff]  ;;  %v1041_v18 = vmul.f32 0.999, %v849_v12 }
  0xa5   :  { %1723 = vst [vmem:[#allocation12 + $0x2f8] sm:$0xff] %v1395_v7  ;;  %575 = vmatpush.bf16.msra.mxu3 %v395_v8  ;;  %v1043_v19 = vmul.f32 0.999, %v851_v13  ;;  %v219_v21 = vld [vmem:[#allocation7 + $0x2d8] sm:$0xff]  ;;  %v1235_v22 = vmul.f32 0.001, %v255_v10 }
  0xa6   :  { %599 = vmatpush.bf16.msrb.mxu1 %v435_v11  ;;  %v417_v25 = vpack.c.bf16 %v219_v21, %v217_v17  ;;  %v813_v26 = vld [vmem:[#allocation10 + $0x2c8] sm:$0xff]  ;;  %v815_v27 = vld [vmem:[#allocation10 + $0x2d8] sm:$0xff]  ;;  %v1197_v28 = vmul.f32 0.001, %v217_v17  ;;  %v1425_v29 = vadd.f32 %v1233_v16, %v1041_v18  ;;  %v1199_v34 = vmul.f32 0.001, %v219_v21 }
  0xa7   :  { %v1005_v30 = vmul.f32 0.999, %v813_v26  ;;  %v1007_v31 = vmul.f32 0.999, %v815_v27  ;;  %v1427_v37 = vadd.f32 %v1235_v22, %v1043_v19  ;;  %v3144_v39 = vld [vmem:[#allocation7 + $0x48] sm:$0xff]  ;;  %v3146_v47 = vld [vmem:[#allocation7 + $0x58] sm:$0xff] }
  0xa8   :  { %586 = vmatpush.bf16.msrb.mxu0 %v417_v25  ;;  %v3148_v48 = vld [vmem:[#allocation7 + $0x148] sm:$0xff]  ;;  %1753 = vst [vmem:[#allocation12 + $0x3e8] sm:$0xff] %v1425_v29  ;;  %v377_v50 = vpack.c.bf16 %v3146_v47, %v3144_v39  ;;  %v3152_v52 = vld [vmem:[#allocation7 + $0x158] sm:$0xff] }
  0xa9   :  { %v1389_v49 = vadd.f32 %v1197_v28, %v1005_v30  ;;  %v249_v55 = vld [vmem:[#allocation7 + $0x3c8] sm:$0xff]  ;;  %v251_v56 = vld [vmem:[#allocation7 + $0x3d8] sm:$0xff]  ;;  %1755 = vst [vmem:[#allocation12 + $0x3f8] sm:$0xff] %v1427_v37  ;;  %v1391_v57 = vadd.f32 %v1199_v34, %v1007_v31  ;;  %v393_v58 = vpack.c.bf16 %v3152_v52, %v3148_v48 }
  0xaa   :  { %v433_v59 = vpack.c.bf16 %v251_v56, %v249_v55  ;;  %v845_v60 = vld [vmem:[#allocation10 + $0x3c8] sm:$0xff]  ;;  %562 = vmatpush.bf16.msra.mxu2 %v377_v50  ;;  %v847_v61 = vld [vmem:[#allocation10 + $0x3d8] sm:$0xff]  ;;  %v1229_v3 = vmul.f32 0.001, %v249_v55  ;;  %v1231_v8 = vmul.f32 0.001, %v251_v56 }
  0xab   :  { %1717 = vst [vmem:[#allocation12 + $0x2c8] sm:$0xff] %v1389_v49  ;;  %v1037_v62 = vmul.f32 0.999, %v845_v60  ;;  %576 = vmatpush.bf16.msra.mxu3 %v393_v58  ;;  %v1039_v1 = vmul.f32 0.999, %v847_v61  ;;  %v213_v7 = vld [vmem:[#allocation7 + $0x2a8] sm:$0xff] }
  0xac   :  { %1719 = vst [vmem:[#allocation12 + $0x2d8] sm:$0xff] %v1391_v57  ;;  %600 = vmatpush.bf16.msrb.mxu1 %v433_v59  ;;  %v215_v9 = vld [vmem:[#allocation7 + $0x2b8] sm:$0xff]  ;;  %v809_v10 = vld [vmem:[#allocation10 + $0x2a8] sm:$0xff]  ;;  %v1193_v22 = vmul.f32 0.001, %v213_v7 }
  0xad   :  { %v811_v11 = vld [vmem:[#allocation10 + $0x2b8] sm:$0xff]  ;;  %v1421_v12 = vadd.f32 %v1229_v3, %v1037_v62  ;;  %v415_v13 = vpack.c.bf16 %v215_v9, %v213_v7  ;;  %v1001_v16 = vmul.f32 0.999, %v809_v10  ;;  %v3156_v18 = vld [vmem:[#allocation7 + $0x28] sm:$0xff]  ;;  %v1423_v21 = vadd.f32 %v1231_v8, %v1039_v1 }
  0xae   :  { %v1003_v17 = vmul.f32 0.999, %v811_v11  ;;  %v3158_v19 = vld [vmem:[#allocation7 + $0x38] sm:$0xff]  ;;  %v1195_v25 = vmul.f32 0.001, %v215_v9  ;;  %v3162_v27 = vld [vmem:[#allocation7 + $0x128] sm:$0xff] }
  0xaf   :  { %v375_v26 = vpack.c.bf16 %v3158_v19, %v3156_v18  ;;  %v3164_v28 = vld [vmem:[#allocation7 + $0x138] sm:$0xff]  ;;  %1749 = vst [vmem:[#allocation12 + $0x3c8] sm:$0xff] %v1421_v12  ;;  %587 = vmatpush.bf16.msrb.mxu0 %v415_v13  ;;  %v245_v30 = vld [vmem:[#allocation7 + $0x3a8] sm:$0xff]  ;;  %v1385_v31 = vadd.f32 %v1193_v22, %v1001_v16 }
  0xb0   :  { %v391_v29 = vpack.c.bf16 %v3164_v28, %v3162_v27  ;;  %1751 = vst [vmem:[#allocation12 + $0x3d8] sm:$0xff] %v1423_v21  ;;  %v247_v34 = vld [vmem:[#allocation7 + $0x3b8] sm:$0xff]  ;;  %v1387_v37 = vadd.f32 %v1195_v25, %v1003_v17  ;;  %v841_v50 = vld [vmem:[#allocation10 + $0x3a8] sm:$0xff]  ;;  %v1225_v56 = vmul.f32 0.001, %v245_v30 }
  0xb1   :  { %563 = vmatpush.bf16.msra.mxu2 %v375_v26  ;;  %v431_v49 = vpack.c.bf16 %v247_v34, %v245_v30  ;;  %v843_v55 = vld [vmem:[#allocation10 + $0x3b8] sm:$0xff]  ;;  %v1227_v57 = vmul.f32 0.001, %v247_v34  ;;  %1713 = vst [vmem:[#allocation12 + $0x2a8] sm:$0xff] %v1385_v31  ;;  %v1033_v58 = vmul.f32 0.999, %v841_v50 }
  0xb2   :  { %577 = vmatpush.bf16.msra.mxu3 %v391_v29  ;;  %v1035_v59 = vmul.f32 0.999, %v843_v55  ;;  %v209_v60 = vld [vmem:[#allocation7 + $0x288] sm:$0xff]  ;;  %1715 = vst [vmem:[#allocation12 + $0x2b8] sm:$0xff] %v1387_v37  ;;  %v211_v61 = vld [vmem:[#allocation7 + $0x298] sm:$0xff] }
  0xb3   :  { %601 = vmatpush.bf16.msrb.mxu1 %v431_v49  ;;  %v805_v62 = vld [vmem:[#allocation10 + $0x288] sm:$0xff]  ;;  %v807_v1 = vld [vmem:[#allocation10 + $0x298] sm:$0xff]  ;;  %v1189_v3 = vmul.f32 0.001, %v209_v60  ;;  %v1417_v7 = vadd.f32 %v1225_v56, %v1033_v58  ;;  %v413_v8 = vpack.c.bf16 %v211_v61, %v209_v60  ;;  %v1191_v17 = vmul.f32 0.001, %v211_v61 }
  0xb4   :  { %v997_v9 = vmul.f32 0.999, %v805_v62  ;;  %v3168_v10 = vld [vmem:[#allocation7 + $0x8] sm:$0xff]  ;;  %v3170_v11 = vld [vmem:[#allocation7 + $0x18] sm:$0xff]  ;;  %v1419_v13 = vadd.f32 %v1227_v57, %v1035_v59  ;;  %v999_v16 = vmul.f32 0.999, %v807_v1 }
  0xb5   :  { %v3172_v12 = vld [vmem:[#allocation7 + $0x108] sm:$0xff]  ;;  %v373_v21 = vpack.c.bf16 %v3170_v11, %v3168_v10  ;;  %1745 = vst [vmem:[#allocation12 + $0x3a8] sm:$0xff] %v1417_v7  ;;  %588 = vmatpush.bf16.msrb.mxu0 %v413_v8  ;;  %v3176_v25 = vld [vmem:[#allocation7 + $0x118] sm:$0xff] }
  0xb6   :  { %v1381_v22 = vadd.f32 %v1189_v3, %v997_v9  ;;  %1747 = vst [vmem:[#allocation12 + $0x3b8] sm:$0xff] %v1419_v13  ;;  %v1383_v26 = vadd.f32 %v1191_v17, %v999_v16  ;;  %v389_v29 = vpack.c.bf16 %v3176_v25, %v3172_v12  ;;  %v241_v30 = vld [vmem:[#allocation7 + $0x388] sm:$0xff]  ;;  %v243_v31 = vld [vmem:[#allocation7 + $0x398] sm:$0xff] }
  0xb7   :  { %564 = vmatpush.bf16.msra.mxu2 %v373_v21  ;;  %v837_v34 = vld [vmem:[#allocation10 + $0x388] sm:$0xff]  ;;  %v429_v37 = vpack.c.bf16 %v243_v31, %v241_v30  ;;  %v839_v49 = vld [vmem:[#allocation10 + $0x398] sm:$0xff]  ;;  %v1221_v55 = vmul.f32 0.001, %v241_v30  ;;  %v1223_v57 = vmul.f32 0.001, %v243_v31 }
  0xb8   :  { %1709 = vst [vmem:[#allocation12 + $0x288] sm:$0xff] %v1381_v22  ;;  %v1029_v50 = vmul.f32 0.999, %v837_v34  ;;  %578 = vmatpush.bf16.msra.mxu3 %v389_v29  ;;  %v1031_v56 = vmul.f32 0.999, %v839_v49  ;;  %v3180_v58 = vld [vmem:[#allocation7 + $0x4e8] sm:$0xff] }
  0xb9   :  { %1711 = vst [vmem:[#allocation12 + $0x298] sm:$0xff] %v1383_v26  ;;  %602 = vmatpush.bf16.msrb.mxu1 %v429_v37  ;;  %v3182_v60 = vld [vmem:[#allocation7 + $0x4f8] sm:$0xff]  ;;  %v3184_v61 = vld [vmem:[#allocation7 + $0x5e8] sm:$0xff] }
  0xba   :  { %v1413_v59 = vadd.f32 %v1221_v55, %v1029_v50  ;;  %v3186_v62 = vld [vmem:[#allocation7 + $0x5f8] sm:$0xff]  ;;  %565 = vmatmul.bf16.vlgmr.msra.gmra.mxu2 %v3068_v20  ;;  %v1415_v1 = vadd.f32 %v1223_v57, %v1031_v56  ;;  %v451_v3 = vpack.c.bf16 %v3182_v60, %v3180_v58  ;;  %v205_v8 = vld [vmem:[#allocation7 + $0x268] sm:$0xff] }
  0xbb   :  { %v467_v7 = vpack.c.bf16 %v3186_v62, %v3184_v61  ;;  %v207_v9 = vld [vmem:[#allocation7 + $0x278] sm:$0xff]  ;;  %v801_v13 = vld [vmem:[#allocation10 + $0x268] sm:$0xff]  ;;  %579 = vmatmul.bf16.vlgmr.msra.gmra.mxu3 %v3081_v2  ;;  %v1185_v26 = vmul.f32 0.001, %v205_v8 }
  0xbc   :  { %1741 = vst [vmem:[#allocation12 + $0x388] sm:$0xff] %v1413_v59  ;;  %v411_v16 = vpack.c.bf16 %v207_v9, %v205_v8  ;;  %v803_v17 = vld [vmem:[#allocation10 + $0x278] sm:$0xff]  ;;  %613 = vmatpush.bf16.msrb.mxu2 %v451_v3  ;;  %v993_v21 = vmul.f32 0.999, %v801_v13  ;;  %v237_v22 = vld [vmem:[#allocation7 + $0x368] sm:$0xff] }
  0xbd   :  { %1743 = vst [vmem:[#allocation12 + $0x398] sm:$0xff] %v1415_v1  ;;  %627 = vmatpush.bf16.msrb.mxu3 %v467_v7  ;;  %v995_v20 = vmul.f32 0.999, %v803_v17  ;;  %v1187_v29 = vmul.f32 0.001, %v207_v9  ;;  %v239_v30 = vld [vmem:[#allocation7 + $0x378] sm:$0xff] }
  0xbe   :  { %589 = vmatpush.bf16.msrb.mxu0 %v411_v16  ;;  %v833_v31 = vld [vmem:[#allocation10 + $0x368] sm:$0xff]  ;;  %v427_v34 = vpack.c.bf16 %v239_v30, %v237_v22  ;;  %v835_v37 = vld [vmem:[#allocation10 + $0x378] sm:$0xff]  ;;  %v1217_v50 = vmul.f32 0.001, %v237_v22  ;;  %v1377_v56 = vadd.f32 %v1185_v26, %v993_v21  ;;  %v1219_v2 = vmul.f32 0.001, %v239_v30 }
  0xbf   :  { %v1025_v49 = vmul.f32 0.999, %v833_v31  ;;  %v3194_v55 = vld [vmem:[#allocation7 + $0x4c8] sm:$0xff]  ;;  %v1027_v57 = vmul.f32 0.999, %v835_v37  ;;  %v3196_v59 = vld [vmem:[#allocation7 + $0x4d8] sm:$0xff]  ;;  %v1379_v3 = vadd.f32 %v1187_v29, %v995_v20 }
  0xc0   :  { %v3198_v1 = vld [vmem:[#allocation7 + $0x5c8] sm:$0xff]  ;;  %603 = vmatpush.bf16.msrb.mxu1 %v427_v34  ;;  %v449_v7 = vpack.c.bf16 %v3196_v59, %v3194_v55  ;;  %v3202_v8 = vld [vmem:[#allocation7 + $0x5d8] sm:$0xff]  ;;  %1705 = vst [vmem:[#allocation12 + $0x268] sm:$0xff] %v1377_v56 }
  0xc1   :  { %v201_v9 = vld [vmem:[#allocation7 + $0x248] sm:$0xff]  ;;  %v1409_v13 = vadd.f32 %v1217_v50, %v1025_v49  ;;  %v465_v16 = vpack.c.bf16 %v3202_v8, %v3198_v1  ;;  %v203_v17 = vld [vmem:[#allocation7 + $0x258] sm:$0xff]  ;;  %1707 = vst [vmem:[#allocation12 + $0x278] sm:$0xff] %v1379_v3  ;;  %v1411_v21 = vadd.f32 %v1219_v2, %v1027_v57  ;;  %v1023_v3 = vmul.f32 0.999, %v831_v24 }
  0xc2   :  { %614 = vmatpush.bf16.msrb.mxu2 %v449_v7  ;;  %v409_v22 = vpack.c.bf16 %v203_v17, %v201_v9  ;;  %v797_v26 = vld [vmem:[#allocation10 + $0x248] sm:$0xff]  ;;  %v799_v30 = vld [vmem:[#allocation10 + $0x258] sm:$0xff]  ;;  %v1181_v20 = vmul.f32 0.001, %v201_v9  ;;  %v1183_v49 = vmul.f32 0.001, %v203_v17 }
  0xc3   :  { %v233_v29 = vld [vmem:[#allocation7 + $0x348] sm:$0xff]  ;;  %1737 = vst [vmem:[#allocation12 + $0x368] sm:$0xff] %v1409_v13  ;;  %628 = vmatpush.bf16.msrb.mxu3 %v465_v16  ;;  %v989_v31 = vmul.f32 0.999, %v797_v26  ;;  %v991_v34 = vmul.f32 0.999, %v799_v30 }
  0xc4   :  { %v235_v37 = vld [vmem:[#allocation7 + $0x358] sm:$0xff]  ;;  %1739 = vst [vmem:[#allocation12 + $0x378] sm:$0xff] %v1411_v21  ;;  %590 = vmatpush.bf16.msrb.mxu0 %v409_v22  ;;  %v829_v56 = vld [vmem:[#allocation10 + $0x348] sm:$0xff]  ;;  %v1213_v7 = vmul.f32 0.001, %v233_v29 }
  0xc5   :  { %v425_v50 = vpack.c.bf16 %v235_v37, %v233_v29  ;;  %v1373_v57 = vadd.f32 %v1181_v20, %v989_v31  ;;  %v1021_v2 = vmul.f32 0.999, %v829_v56  ;;  %v1375_v54 = vadd.f32 %v1183_v49, %v991_v34  ;;  %v3208_v13 = vld [vmem:[#allocation7 + $0x4b8] sm:$0xff]  ;;  %v3210_v16 = vld [vmem:[#allocation7 + $0x5a8] sm:$0xff] }
  0xc6   :  { %v1215_v9 = vmul.f32 0.001, %v235_v37  ;;  %4183 = vst [vmem:[#allocation20_spill] sm:$0xff] %v3208_v13  ;;  %v447_v17 = vpack.c.bf16 %v3208_v13, %v3206_v53  ;;  %v3214_v22 = vld [vmem:[#allocation7 + $0x5b8] sm:$0xff]  ;;  %v197_v30 = vld [vmem:[#allocation7 + $0x228] sm:$0xff] }
  0xc7   :  { %604 = vmatpush.bf16.msrb.mxu1 %v425_v50  ;;  %4184 = vst [vmem:[#allocation21_spill] sm:$0xff] %v3210_v16  ;;  %v1405_v21 = vadd.f32 %v1213_v7, %v1021_v2  ;;  %v463_v24 = vpack.c.bf16 %v3214_v22, %v3210_v16  ;;  %v199_v20 = vld [vmem:[#allocation7 + $0x238] sm:$0xff]  ;;  %v793_v29 = vld [vmem:[#allocation10 + $0x228] sm:$0xff]  ;;  %v1177_v49 = vmul.f32 0.001, %v197_v30 }
  0xc8   :  { %1701 = vst [vmem:[#allocation12 + $0x248] sm:$0xff] %v1373_v57  ;;  %v1407_v26 = vadd.f32 %v1215_v9, %v1023_v3  ;;  %615 = vmatpush.bf16.msrb.mxu2 %v447_v17  ;;  %v407_v31 = vpack.c.bf16 %v199_v20, %v197_v30  ;;  %v795_v34 = vld [vmem:[#allocation10 + $0x238] sm:$0xff]  ;;  %v985_v37 = vmul.f32 0.999, %v793_v29  ;;  %v1179_v56 = vmul.f32 0.001, %v199_v20 }
  0xc9   :  { %4185 = vst [vmem:[#allocation22_spill] sm:$0xff] %v3214_v22  ;;  %629 = vmatpush.bf16.msrb.mxu3 %v463_v24  ;;  %v987_v50 = vmul.f32 0.999, %v795_v34  ;;  %v229_v57 = vld [vmem:[#allocation7 + $0x328] sm:$0xff]  ;;  %v231_v2 = vld [vmem:[#allocation7 + $0x338] sm:$0xff] }
  0xca   :  { %1703 = vst [vmem:[#allocation12 + $0x258] sm:$0xff] %v1375_v54  ;;  %591 = vmatpush.bf16.msrb.mxu0 %v407_v31  ;;  %v1369_v54 = vadd.f32 %v1177_v49, %v985_v37  ;;  %v825_v3 = vld [vmem:[#allocation10 + $0x328] sm:$0xff]  ;;  %v827_v7 = vld [vmem:[#allocation10 + $0x338] sm:$0xff]  ;;  %v1209_v9 = vmul.f32 0.001, %v229_v57  ;;  %v423_v22 = vpack.c.bf16 %v231_v2, %v229_v57 }
  0xcb   :  { %1733 = vst [vmem:[#allocation12 + $0x348] sm:$0xff] %v1405_v21  ;;  %v1371_v43 = vadd.f32 %v1179_v56, %v987_v50  ;;  %v1017_v16 = vmul.f32 0.999, %v825_v3  ;;  %v1019_v21 = vmul.f32 0.999, %v827_v7  ;;  %v3218_v17 = vld [vmem:[#allocation7 + $0x488] sm:$0xff] }
  0xcc   :  { %1735 = vst [vmem:[#allocation12 + $0x358] sm:$0xff] %v1407_v26  ;;  %v3220_v13 = vld [vmem:[#allocation7 + $0x498] sm:$0xff]  ;;  %v1211_v26 = vmul.f32 0.001, %v231_v2  ;;  %v3224_v30 = vld [vmem:[#allocation7 + $0x588] sm:$0xff]  ;;  %605 = vmatpush.bf16.msrb.mxu1 %v423_v22 }
  0xcd   :  { %4186 = vst [vmem:[#allocation23_spill] sm:$0xff] %v3218_v17  ;;  %v445_v24 = vpack.c.bf16 %v3220_v13, %v3218_v17  ;;  %v1401_v20 = vadd.f32 %v1209_v9, %v1017_v16  ;;  %v307_v29 = vld [vmem:[#allocation7 + $0x598] sm:$0xff]  ;;  %v193_v37 = vld [vmem:[#allocation7 + $0x208] sm:$0xff] }
  0xce   :  { %4187 = vst [vmem:[#allocation24_spill] sm:$0xff] %v3220_v13  ;;  %v1403_v31 = vadd.f32 %v1211_v26, %v1019_v21  ;;  %v461_v34 = vpack.c.bf16 %v307_v29, %v3224_v30  ;;  %v195_v49 = vld [vmem:[#allocation7 + $0x218] sm:$0xff]  ;;  %v789_v50 = vld [vmem:[#allocation10 + $0x208] sm:$0xff]  ;;  %v1173_v2 = vmul.f32 0.001, %v193_v37 }
  0xcf   :  { %1697 = vst [vmem:[#allocation12 + $0x228] sm:$0xff] %v1369_v54  ;;  %616 = vmatpush.bf16.msrb.mxu2 %v445_v24  ;;  %v405_v56 = vpack.c.bf16 %v195_v49, %v193_v37  ;;  %v791_v57 = vld [vmem:[#allocation10 + $0x218] sm:$0xff]  ;;  %v981_v54 = vmul.f32 0.999, %v789_v50  ;;  %v1175_v7 = vmul.f32 0.001, %v195_v49 }
  0xd0   :  { %4188 = vst [vmem:[#allocation25_spill] sm:$0xff] %v3224_v30  ;;  %630 = vmatpush.bf16.msrb.mxu3 %v461_v34  ;;  %v983_v3 = vmul.f32 0.999, %v791_v57  ;;  %v227_v22 = vld [vmem:[#allocation7 + $0x318] sm:$0xff]  ;;  %v821_v9 = vld [vmem:[#allocation10 + $0x308] sm:$0xff] }
  0xd1   :  { %1699 = vst [vmem:[#allocation12 + $0x238] sm:$0xff] %v1371_v43  ;;  %v225_v43 = vld [vmem:[#allocation7 + $0x308] sm:$0xff]  ;;  %592 = vmatpush.bf16.msrb.mxu0 %v405_v56  ;;  %v1365_v16 = vadd.f32 %v1173_v2, %v981_v54  ;;  %v823_v21 = vld [vmem:[#allocation10 + $0x318] sm:$0xff]  ;;  %v1013_v30 = vmul.f32 0.999, %v821_v9 }
  0xd2   :  { %1729 = vst [vmem:[#allocation12 + $0x328] sm:$0xff] %v1401_v20  ;;  %v1205_v26 = vmul.f32 0.001, %v225_v43  ;;  %v1367_v24 = vadd.f32 %v1175_v7, %v983_v3  ;;  %v421_v29 = vpack.c.bf16 %v227_v22, %v225_v43  ;;  %v1015_v13 = vmul.f32 0.999, %v823_v21  ;;  %v3227_v20 = vld [vmem:[#allocation7 + $0x468] sm:$0xff] }
  0xd3   :  { %1731 = vst [vmem:[#allocation12 + $0x338] sm:$0xff] %v1403_v31  ;;  %v3229_v17 = vld [vmem:[#allocation7 + $0x478] sm:$0xff]  ;;  %v1207_v31 = vmul.f32 0.001, %v227_v22  ;;  %v301_v37 = vld [vmem:[#allocation7 + $0x568] sm:$0xff] }
  0xd4   :  { %1693 = vst [vmem:[#allocation12 + $0x208] sm:$0xff] %v1365_v16  ;;  %v443_v34 = vpack.c.bf16 %v3229_v17, %v3227_v20  ;;  %606 = vmatpush.bf16.msrb.mxu1 %v421_v29  ;;  %v1397_v49 = vadd.f32 %v1205_v26, %v1013_v30  ;;  %v303_v50 = vld [vmem:[#allocation7 + $0x578] sm:$0xff]  ;;  %593 = vmatmul.bf16.vlgmr.msrb.gmra.mxu0 %v3090_v4  ;;  %v3234_v54 = vld [vmem:[#allocation7 + $0x448] sm:$0xff] }
  0xd5   :  { %1695 = vst [vmem:[#allocation12 + $0x218] sm:$0xff] %v1367_v24  ;;  %v1399_v56 = vadd.f32 %v1207_v31, %v1015_v13  ;;  %v459_v57 = vpack.c.bf16 %v303_v50, %v301_v37  ;;  %v3236_v2 = vld [vmem:[#allocation7 + $0x458] sm:$0xff]  ;;  %v297_v3 = vld [vmem:[#allocation7 + $0x548] sm:$0xff] }
  0xd6   :  { %617 = vmatpush.bf16.msrb.mxu2 %v443_v34  ;;  %1725 = vst [vmem:[#allocation12 + $0x308] sm:$0xff] %v1397_v49  ;;  %v441_v7 = vpack.c.bf16 %v3236_v2, %v3234_v54  ;;  %v299_v43 = vld [vmem:[#allocation7 + $0x558] sm:$0xff]  ;;  %v3241_v16 = vld [vmem:[#allocation7 + $0x428] sm:$0xff]  ;;  %v333_v49 = vld [vmem:[%s4151_s5 + $0x60] sm:$0xff] }
  0xd7   :  { %1727 = vst [vmem:[#allocation12 + $0x318] sm:$0xff] %v1399_v56  ;;  %631 = vmatpush.bf16.msrb.mxu3 %v459_v57  ;;  %607 = vmatmul.bf16.vlgmr.msrb.gmra.mxu1 %v3099_v23  ;;  %v457_v30 = vpack.c.bf16 %v299_v43, %v297_v3  ;;  %v3243_v4 = vld [vmem:[#allocation7 + $0x438] sm:$0xff]  ;;  %v293_v13 = vld [vmem:[#allocation7 + $0x528] sm:$0xff]  ;;  %v335_v23 = vld [vmem:[%s4151_s5 + $0x70] sm:$0xff] }
  0xd8   :  { %v295_v22 = vld [vmem:[#allocation7 + $0x538] sm:$0xff]  ;;  %v439_v9 = vpack.c.bf16 %v3243_v4, %v3241_v16  ;;  %v3247_v21 = vld [vmem:[#allocation7 + $0x408] sm:$0xff] }
  0xd9   :  { %4189 = vst [vmem:[#allocation26_spill] sm:$0xff] %v3247_v21  ;;  %v3249_v26 = vld [vmem:[#allocation7 + $0x418] sm:$0xff]  ;;  %v455_v24 = vpack.c.bf16 %v295_v22, %v293_v13  ;;  %v289_v29 = vld [vmem:[#allocation7 + $0x508] sm:$0xff]  ;;  %v4192_v22 = vpack.c.bf16 %v3043_v45, %v3041_v44  ;;  %v327_v44 = vld [vmem:[%s4151_s5 + $0x30] sm:$0xff] }
  0xda   :  { %618 = vmatpush.bf16.msrb.mxu2 %v441_v7  ;;  %4190 = vst [vmem:[#allocation27_spill] sm:$0xff] %v3249_v26  ;;  %v291_v31 = vld [vmem:[#allocation7 + $0x518] sm:$0xff]  ;;  %v437_v34 = vpack.c.bf16 %v3249_v26, %v3247_v21  ;;  %v334_v56 = vld [vmem:[%s4151_s5 + $0x68] sm:$0xff]  ;;  %v331_v7 = vld [vmem:[%s4151_s5 + $0x50] sm:$0xff] }
  0xdb   :  { %632 = vmatpush.bf16.msrb.mxu3 %v457_v30  ;;  %v336_v37 = vld [vmem:[%s4151_s5 + $0x78] sm:$0xff]  ;;  %v453_v57 = vpack.c.bf16 %v291_v31, %v289_v29  ;;  %v653_v3 = vpack.c.bf16 %v334_v56, %v333_v49  ;;  %v4191_v30 = vpack.c.bf16 %v3036_v33, %v3034_v32  ;;  %v330_v32 = vld [vmem:[%s4151_s5 + $0x48] sm:$0xff]  ;;  %v345_v21 = vld [vmem:[%s4151_s5 + $0xc0] sm:$0xff] }
  0xdc   :  { %v654_v50 = vpack.c.bf16 %v336_v37, %v335_v23  ;;  %v332_v43 = vld [vmem:[%s4151_s5 + $0x58] sm:$0xff]  ;;  %v326_v31 = vld [vmem:[%s4151_s5 + $0x28] sm:$0xff]  ;;  %v3302_v37 = vld [vmem:[%s4150_s4] sm:$0x3] }
  0xdd   :  { %v652_v13 = vpack.c.bf16 %v332_v43, %v331_v7  ;;  %v328_v45 = vld [vmem:[%s4151_s5 + $0x38] sm:$0xff]  ;;  %4193 = vst [vmem:[#allocation28_spill] sm:$0xff] %v3302_v37  ;;  %v321_v43 = vld [vmem:[%s4151_s5] sm:$0xff] }
  0xde   :  { %619 = vmatpush.bf16.msrb.mxu2 %v439_v9  ;;  %666 = vmatpush.bf16.msra.mxu0 %v654_v50  ;;  %v329_v9 = vld [vmem:[%s4151_s5 + $0x40] sm:$0xff]  ;;  %v650_v29 = vpack.c.bf16 %v328_v45, %v327_v44  ;;  %v323_v50 = vld [vmem:[%s4151_s5 + $0x10] sm:$0xff]  ;;  %v324_v56 = vld [vmem:[%s4151_s5 + $0x18] sm:$0xff] }
  0xdf   :  { %633 = vmatpush.bf16.msrb.mxu3 %v455_v24  ;;  %v651_v33 = vpack.c.bf16 %v330_v32, %v329_v9  ;;  %v352_v7 = vld [vmem:[%s4151_s5 + $0xf8] sm:$0xff]  ;;  %v349_v9 = vld [vmem:[%s4151_s5 + $0xe0] sm:$0xff] }
  0xe0   :  { %v2618_v32 = vld [vmem:[#allocation12 + $0xc0] sm:$0xff] }
  0xe2   :  { %620 = vmatpush.bf16.msrb.mxu2 %v437_v34  ;;  %667 = vmatpush.bf16.msra.mxu0 %v653_v3  ;;  %v648_v3 = vpack.c.bf16 %v324_v56, %v323_v50  ;;  %v2622_v56 = vld [vmem:[#allocation12 + $0xa0] sm:$0xff] }
  0xe3   :  { %634 = vmatpush.bf16.msrb.mxu3 %v453_v57  ;;  %v351_v57 = vld [vmem:[%s4151_s5 + $0xf0] sm:$0xff] }
  0xe5   :  { %621 = vmatmul.bf16.vlgmr.msrb.gmra.mxu2 %v3112_v38 }
  0xe6   :  { %1977 = vmatpush.bf16.msra.mxu2 %v4191_v30  ;;  %635 = vmatmul.bf16.vlgmr.msrb.gmra.mxu3 %v3129_v51  ;;  %v325_v51 = vld [vmem:[%s4151_s5 + $0x20] sm:$0xff]  ;;  %v469_v30 = vperm.slane %v3302_v37, 0  ;;  %v2639_v37 = vld [vmem:[#allocation12 + $0x2b0] sm:$0xff] }
  0xe7   :  { %1991 = vmatpush.bf16.msra.mxu3 %v4192_v22  ;;  %668 = vmatpush.bf16.msra.mxu0 %v652_v13  ;;  %v649_v23 = vpack.c.bf16 %v326_v31, %v325_v51  ;;  %v662_v13 = vpack.c.bf16 %v352_v7, %v351_v57  ;;  %v322_v22 = vld [vmem:[%s4151_s5 + $0x8] sm:$0xff]  ;;  %v2621_v31 = vld [vmem:[#allocation12 + $0x1d0] sm:$0xff] }
  0xe8   :  { %v647_v45 = vpack.c.bf16 %v322_v22, %v321_v43  ;;  %v350_v51 = vld [vmem:[%s4151_s5 + $0xe8] sm:$0xff]  ;;  %v2623_v57 = vld [vmem:[#allocation12 + $0xb0] sm:$0xff]  ;;  %v2624_v43 = vld [vmem:[#allocation12 + $0x1a0] sm:$0xff] }
  0xe9   :  { %680 = vmatpush.bf16.msra.mxu1 %v662_v13  ;;  %v661_v50 = vpack.c.bf16 %v350_v51, %v349_v9  ;;  %v1886_v7 = vpack.c.bf16 %v2623_v57, %v2622_v56  ;;  %v2625_v22 = vld [vmem:[#allocation12 + $0x1b0] sm:$0xff]  ;;  %v2626_v13 = vld [vmem:[#allocation12 + $0x2e0] sm:$0xff] }
  0xea   :  { %v482_v38 = vpop.f32.mrf.mxu2  ;;  %v2627_v9 = vld [vmem:[#allocation12 + $0x2f0] sm:$0xff] }
  0xeb   :  { %669 = vmatpush.bf16.msra.mxu0 %v651_v33  ;;  %v3285_v24 = vpop.f32.mrf.mxu3  ;;  %v2619_v33 = vld [vmem:[#allocation12 + $0xd0] sm:$0xff]  ;;  %v483_v26 = vadd.f32 %v482_v38, %v469_v30  ;;  %v346_v38 = vld [vmem:[%s4151_s5 + $0xc8] sm:$0xff] }
  0xec   :  { %v1888_v44 = vpack.c.bf16 %v2619_v33, %v2618_v32  ;;  %v347_v32 = vld [vmem:[%s4151_s5 + $0xd0] sm:$0xff]  ;;  %v1902_v33 = vpack.c.bf16 %v2625_v22, %v2624_v43  ;;  %v2630_v43 = vld [vmem:[#allocation12 + $0x180] sm:$0xff] }
  0xed   :  { %681 = vmatpush.bf16.msra.mxu1 %v661_v50  ;;  %v2631_v22 = vld [vmem:[#allocation12 + $0x190] sm:$0xff]  ;;  %v2632_v50 = vld [vmem:[#allocation12 + $0x2c0] sm:$0xff] }
  0xee   :  { %1978 = vmatpush.bf16.msra.mxu2 %v1888_v44  ;;  %v1922_v44 = vpack.c.bf16 %v2627_v9, %v2626_v13  ;;  %v343_v9 = vld [vmem:[%s4151_s5 + $0xb0] sm:$0xff] }
  0xef   :  { %670 = vmatpush.bf16.msra.mxu0 %v650_v29  ;;  %v2620_v29 = vld [vmem:[#allocation12 + $0x1c0] sm:$0xff] }
  0xf2   :  { %v484_v34 = vpop.f32.mrf.mxu2  ;;  %1979 = vmatpush.bf16.msra.mxu2 %v1886_v7 }
  0xf3   :  { %671 = vmatpush.bf16.msra.mxu0 %v649_v23  ;;  %v3304_v49 = vpop.f32.mrf.mxu3  ;;  %v1904_v23 = vpack.c.bf16 %v2621_v31, %v2620_v29  ;;  %v2628_v31 = vld [vmem:[#allocation12 + $0x80] sm:$0xff]  ;;  %v485_v13 = vadd.f32 %v484_v34, %v469_v30 }
  0xf5   :  { %1992 = vmatpush.bf16.msra.mxu3 %v1904_v23  ;;  %v2629_v23 = vld [vmem:[#allocation12 + $0x90] sm:$0xff] }
  0xf6   :  { %v1884_v56 = vpack.c.bf16 %v2629_v23, %v2628_v31 }
  0xf7   :  { %672 = vmatpush.bf16.msra.mxu0 %v648_v3  ;;  %v348_v3 = vld [vmem:[%s4151_s5 + $0xd8] sm:$0xff] }
  0xf8   :  { %v660_v51 = vpack.c.bf16 %v348_v3, %v347_v32  ;;  %v2633_v32 = vld [vmem:[#allocation12 + $0x2d0] sm:$0xff]  ;;  %v497_v3 = vadd.f32 %v3285_v24, %v483_v26  ;;  %1980 = vmatpush.bf16.msra.mxu2 %v1884_v56  ;;  %v2634_v56 = vld [vmem:[#allocation12 + $0x60] sm:$0xff] }
  0xf9   :  { %1993 = vmatpush.bf16.msra.mxu3 %v1902_v33  ;;  %v1920_v7 = vpack.c.bf16 %v2633_v32, %v2632_v50  ;;  %v659_v33 = vpack.c.bf16 %v346_v38, %v345_v21  ;;  %v2635_v38 = vld [vmem:[#allocation12 + $0x70] sm:$0xff]  ;;  %v2636_v32 = vld [vmem:[#allocation12 + $0x160] sm:$0xff] }
  0xfa   :  { %682 = vmatpush.bf16.msra.mxu1 %v660_v51 }
  0xfb   :  { %673 = vmatpush.bf16.msra.mxu0 %v647_v45  ;;  %v1900_v45 = vpack.c.bf16 %v2631_v22, %v2630_v43  ;;  %v499_v43 = vadd.f32 %v3304_v49, %v485_v13  ;;  %v1882_v22 = vpack.c.bf16 %v2635_v38, %v2634_v56  ;;  %v342_v13 = vld [vmem:[%s4151_s5 + $0xa8] sm:$0xff] }
  0xfc   :  { %v2642_v56 = vld [vmem:[#allocation7 + $0xe8] sm:$0xff] }
  0xfd   :  { %1994 = vmatpush.bf16.msra.mxu3 %v1900_v45  ;;  %1981 = vmatpush.bf16.msra.mxu2 %v1882_v22  ;;  %v3357_v38 = vmul.f32 0.001, %v2642_v56  ;;  %v2643_v22 = vld [vmem:[#allocation12 + $0x140] sm:$0xff]  ;;  %v2654_v56 = vld [vmem:[#allocation12 + $0x130] sm:$0xff] }
  0xfe   :  { %683 = vmatpush.bf16.msra.mxu1 %v659_v33 }
  0xff   :  { %2005 = vmatpush.bf16.msrb.mxu0 %v1922_v44  ;;  %v344_v44 = vld [vmem:[%s4151_s5 + $0xb8] sm:$0xff] }
 0x100   :  { %v658_v26 = vpack.c.bf16 %v344_v44, %v343_v9 }
 0x102   :  { %684 = vmatpush.bf16.msra.mxu1 %v658_v26 }
 0x103   :  { %2006 = vmatpush.bf16.msrb.mxu0 %v1920_v7  ;;  %v2637_v7 = vld [vmem:[#allocation12 + $0x170] sm:$0xff] }
 0x112   :  { %v524_v57 = vpop.f32.mrf.mxu3 }
 0x113   :  { %v510_v29 = vpop.f32.mrf.mxu2 }
 0x114   :  { %v511_v31 = vadd.f32 %v510_v29, %v497_v3  ;;  %v1898_v29 = vpack.c.bf16 %v2637_v7, %v2636_v32  ;;  %v2638_v3 = vld [vmem:[#allocation12 + $0x2a0] sm:$0xff]  ;;  %v2644_v32 = vld [vmem:[#allocation12 + $0x150] sm:$0xff] }
 0x115   :  { %v1918_v49 = vpack.c.bf16 %v2639_v37, %v2638_v3  ;;  %v1896_v7 = vpack.c.bf16 %v2644_v32, %v2643_v22  ;;  %v2646_v3 = vld [vmem:[#allocation12 + $0x290] sm:$0xff]  ;;  %v2655_v32 = vld [vmem:[#allocation12 + $0x260] sm:$0xff] }
 0x116   :  { %v525_v34 = vadd.f32 %v524_v57, %v511_v31  ;;  %v341_v57 = vld [vmem:[%s4151_s5 + $0xa0] sm:$0xff]  ;;  %1995 = vmatpush.bf16.msra.mxu3 %v1898_v29 }
 0x117   :  { %v657_v33 = vpack.c.bf16 %v342_v13, %v341_v57  ;;  %2007 = vmatpush.bf16.msrb.mxu0 %v1918_v49  ;;  %v2645_v29 = vld [vmem:[#allocation12 + $0x280] sm:$0xff]  ;;  %v2648_v57 = vld [vmem:[#allocation12 + $0x30] sm:$0xff] }
 0x118   :  { %v2647_v49 = vld [vmem:[#allocation12 + $0x20] sm:$0xff] }
 0x119   :  { %685 = vmatpush.bf16.msra.mxu1 %v657_v33  ;;  %v1878_v13 = vpack.c.bf16 %v2648_v57, %v2647_v49  ;;  %v337_v33 = vld [vmem:[%s4151_s5 + $0x80] sm:$0xff]  ;;  %v2657_v49 = vld [vmem:[#allocation7 + $0xd8] sm:$0xff] }
 0x11a   :  { %v526_v51 = vpop.f32.mrf.mxu3  ;;  %1996 = vmatpush.bf16.msra.mxu3 %v1896_v7  ;;  %v2660_v7 = vld [vmem:[#allocation7 + $0xa8] sm:$0xff] }
 0x11b   :  { %v512_v23 = vpop.f32.mrf.mxu2 }
 0x11c   :  { %v538_v24 = vpop.f32.mrf.mxu0  ;;  %v513_v21 = vadd.f32 %v512_v23, %v499_v43 }
 0x11d   :  { %v552_v30 = vpop.f32.mrf.mxu1  ;;  %v539_v45 = vadd.f32 %v538_v24, %v525_v34  ;;  %v2640_v34 = vld [vmem:[#allocation12 + $0x40] sm:$0xff] }
 0x11e   :  { %v527_v50 = vadd.f32 %v526_v51, %v513_v21  ;;  %v2641_v21 = vld [vmem:[#allocation12 + $0x50] sm:$0xff] }
 0x11f   :  { %v553_v44 = vadd.f32 %v552_v30, %v539_v45  ;;  %v1880_v51 = vpack.c.bf16 %v2641_v21, %v2640_v34  ;;  %v1916_v30 = vpack.c.bf16 %v2646_v3, %v2645_v29  ;;  %v339_v45 = vld [vmem:[%s4151_s5 + $0x90] sm:$0xff]  ;;  %v2652_v34 = vld [vmem:[#allocation7 + $0xc8] sm:$0xff] }
 0x120   :  { %v3377_v21 = vmul.f32 0.001, %v2652_v34  ;;  %v2656_v29 = vld [vmem:[#allocation12 + $0x270] sm:$0xff]  ;;  %v2661_v34 = vld [vmem:[#allocation7 + $0xb8] sm:$0xff] }
 0x121   :  { %v641_v26 = vmax.f32 %v553_v44, 0.0  ;;  %1982 = vmatpush.bf16.msra.mxu2 %v1880_v51  ;;  %2008 = vmatpush.bf16.msrb.mxu0 %v1916_v30  ;;  %v2653_v51 = vld [vmem:[#allocation12 + $0x120] sm:$0xff]  ;;  %v1914_v3 = vpack.c.bf16 %v2656_v29, %v2655_v32  ;;  %v3385_v30 = vmul.f32 0.001, %v2660_v7  ;;  %v2663_v29 = vld [vmem:[#allocation7 + $0x1b8] sm:$0xff] }
 0x122   :  { %v1894_v22 = vpack.c.bf16 %v2654_v56, %v2653_v51  ;;  %v3387_v51 = vmul.f32 0.001, %v2661_v34  ;;  %v2662_v56 = vld [vmem:[#allocation7 + $0x1a8] sm:$0xff]  ;;  %v3397_v7 = vmul.f32 0.001, %v3110_v36 }
 0x123   :  { %v3389_v32 = vmul.f32 0.001, %v2662_v56  ;;  %v3400_v34 = vmul.f32 0.001, %v3116_v42  ;;  %v3403_v56 = vmul.f32 0.001, %v3118_v46  ;;  %v4196_v42 = vpack.c.bf16 %v3052_v41, %v3050_v40 }
 0x124   :  { %v540_v9 = vpop.f32.mrf.mxu0  ;;  %1997 = vmatpush.bf16.msra.mxu3 %v1894_v22  ;;  %v3415_v36 = vmul.f32 0.001, %v3140_v6  ;;  %v2668_v46 = vld [vmem:[#allocation12 + $0x100] sm:$0xff]  ;;  %v2669_v22 = vld [vmem:[#allocation12 + $0x110] sm:$0xff]  ;;  %v3424_v6 = vmul.f32 0.001, %v3146_v47 }
 0x125   :  { %v541_v31 = vadd.f32 %v540_v9, %v527_v50  ;;  %v554_v23 = vpop.f32.mrf.mxu1  ;;  %v340_v50 = vld [vmem:[%s4151_s5 + $0x98] sm:$0xff]  ;;  %1983 = vmatpush.bf16.msra.mxu2 %v1878_v13  ;;  %v2666_v13 = vld [vmem:[#allocation12 + $0x3e0] sm:$0xff]  ;;  %2009 = vmatpush.bf16.msrb.mxu0 %v1914_v3  ;;  %v3427_v40 = vmul.f32 0.001, %v3148_v48  ;;  %v3436_v47 = vmul.f32 0.001, %v3158_v19 }
 0x126   :  { %v2649_v9 = vld [vmem:[#allocation7 + $0xf8] sm:$0xff]  ;;  %v2670_v3 = vld [vmem:[#allocation12 + $0x240] sm:$0xff]  ;;  %v3439_v48 = vmul.f32 0.001, %v3162_v27 }
 0x127   :  { %v555_v43 = vadd.f32 %v554_v23, %v541_v31  ;;  %v3368_v44 = vmul.f32 0.001, %v2649_v9  ;;  %v2650_v31 = vld [vmem:[#allocation7 + $0x1e8] sm:$0xff]  ;;  %v2659_v9 = vld [vmem:[#allocation7 + $0x1d8] sm:$0xff]  ;;  %v2674_v41 = vld [vmem:[#allocation12 + $0x4c0] sm:$0xff] }
 0x128   :  { %v3370_v23 = vmul.f32 0.001, %v2650_v31  ;;  %v3383_v31 = vmul.f32 0.001, %v2659_v9  ;;  %v2664_v9 = vld [vmem:[#allocation12] sm:$0xff]  ;;  %4197 = vst [vmem:[#allocation31_spill] sm:$0xff] %v3439_v48 }
 0x129   :  { %v643_v24 = vmax.f32 %v555_v43, 0.0  ;;  %v656_v43 = vpack.c.bf16 %v340_v50, %v339_v45  ;;  %v3379_v45 = vmul.f32 0.001, %v2657_v49  ;;  %v2658_v50 = vld [vmem:[#allocation7 + $0x1c8] sm:$0xff]  ;;  %v3391_v49 = vmul.f32 0.001, %v2663_v29 }
 0x12a   :  { %v3381_v57 = vmul.f32 0.001, %v2658_v50  ;;  %4194 = vst [vmem:[#allocation29_spill] sm:$0xff] %v3383_v31  ;;  %v3394_v50 = vmul.f32 0.001, %v3108_v35  ;;  %v2665_v31 = vld [vmem:[#allocation12 + $0x10] sm:$0xff] }
 0x12b   :  { %v645_v37 = vpack.c.bf16 %v643_v24, %v641_v26  ;;  %v338_v26 = vld [vmem:[%s4151_s5 + $0x88] sm:$0xff]  ;;  %v2651_v24 = vld [vmem:[#allocation7 + $0x1f8] sm:$0xff]  ;;  %686 = vmatpush.bf16.msra.mxu1 %v656_v43  ;;  %v1876_v43 = vpack.c.bf16 %v2665_v31, %v2664_v9  ;;  %v3406_v35 = vmul.f32 0.001, %v3132_v63  ;;  %v3409_v29 = vmul.f32 0.001, %v3134_v0 }
 0x12c   :  { %v3412_v31 = vmul.f32 0.001, %v3138_v5  ;;  %v1892_v63 = vpack.c.bf16 %v2669_v22, %v2668_v46  ;;  %v2671_v9 = vld [vmem:[#allocation12 + $0x250] sm:$0xff]  ;;  %v3430_v46 = vmul.f32 0.001, %v3152_v52  ;;  %v2678_v52 = vld [vmem:[#allocation12 + $0x5c0] sm:$0xff] }
 0x12d   :  { %674 = vmatmul.bf16.vlgmr.msra.gmra.mxu0 %v645_v37  ;;  %v3375_v37 = vmul.f32 0.001, %v2651_v24  ;;  %v655_v24 = vpack.c.bf16 %v338_v26, %v337_v33  ;;  %v2667_v33 = vld [vmem:[#allocation12 + $0x3f0] sm:$0xff]  ;;  %1984 = vmatpush.bf16.msra.mxu2 %v1876_v43  ;;  %v1912_v0 = vpack.c.bf16 %v2671_v9, %v2670_v3  ;;  %v3421_v43 = vmul.f32 0.001, %v3144_v39  ;;  %v2676_v3 = vld [vmem:[#allocation12 + $0x220] sm:$0xff] }
 0x12e   :  { %v1938_v26 = vpack.c.bf16 %v2667_v33, %v2666_v13  ;;  %4195 = vst [vmem:[#allocation30_spill] sm:$0xff] %v3412_v31  ;;  %v2672_v13 = vld [vmem:[#allocation12 + $0x3c0] sm:$0xff]  ;;  %v2673_v33 = vld [vmem:[#allocation12 + $0x3d0] sm:$0xff]  ;;  %v753_v31 = vld [vmem:[#allocation10 + $0xe8] sm:$0xff]  ;;  %v3433_v22 = vmul.f32 0.001, %v3156_v18  ;;  %1998 = vmatpush.bf16.msra.mxu3 %v1892_v63 }
 0x12f   :  { %687 = vmatpush.bf16.msra.mxu1 %v655_v24  ;;  %v1936_v5 = vpack.c.bf16 %v2673_v33, %v2672_v13  ;;  %v755_v24 = vld [vmem:[#allocation10 + $0xf8] sm:$0xff]  ;;  %2010 = vmatpush.bf16.msrb.mxu0 %v1912_v0  ;;  %v2677_v39 = vld [vmem:[#allocation12 + $0x230] sm:$0xff]  ;;  %v945_v13 = vmul.f32 0.999, %v753_v31  ;;  %v4198_v33 = vpack.c.bf16 %v3063_v15, %v3061_v14  ;;  %v3445_v63 = vmul.f32 0.001, %v3164_v28 }
 0x130   :  { %v1910_v9 = vpack.c.bf16 %v2677_v39, %v2676_v3  ;;  %v2680_v31 = vld [vmem:[#allocation12 + $0x3a0] sm:$0xff]  ;;  %v2681_v0 = vld [vmem:[#allocation12 + $0x3b0] sm:$0xff]  ;;  %v3449_v14 = vmul.f32 0.001, %v3168_v10  ;;  %v3452_v15 = vmul.f32 0.001, %v3170_v11 }
 0x131   :  { %2033 = vmatpush.bf16.msrb.mxu2 %v4196_v42  ;;  %v1934_v19 = vpack.c.bf16 %v2681_v0, %v2680_v31  ;;  %v2682_v3 = vld [vmem:[#allocation12 + $0x4a0] sm:$0xff]  ;;  %v2683_v39 = vld [vmem:[#allocation12 + $0x4b0] sm:$0xff]  ;;  %v1329_v48 = vadd.f32 %v3357_v38, %v945_v13  ;;  %v3465_v10 = vmul.f32 0.001, %v3182_v60  ;;  %v3468_v11 = vmul.f32 0.001, %v3184_v61 }
 0x132   :  { %2047 = vmatpush.bf16.msrb.mxu3 %v4198_v33  ;;  %v1950_v27 = vpack.c.bf16 %v2683_v39, %v2682_v3  ;;  %v2684_v33 = vld [vmem:[#allocation12 + $0x200] sm:$0xff]  ;;  %v2685_v38 = vld [vmem:[#allocation12 + $0x210] sm:$0xff]  ;;  %v751_v60 = vld [vmem:[#allocation10 + $0xd8] sm:$0xff]  ;;  %v3480_v31 = vmul.f32 0.001, %v3198_v1 }
 0x133   :  { %2019 = vmatpush.bf16.msrb.mxu1 %v1938_v26  ;;  %v2675_v26 = vld [vmem:[#allocation12 + $0x4d0] sm:$0xff]  ;;  %2011 = vmatpush.bf16.msrb.mxu0 %v1910_v9  ;;  %v1908_v13 = vpack.c.bf16 %v2685_v38, %v2684_v33  ;;  %1657 = vst [vmem:[#allocation12 + $0xe8] sm:$0xff] %v1329_v48  ;;  %v3474_v9 = vmul.f32 0.001, %v3194_v55  ;;  %v2688_v55 = vld [vmem:[#allocation12 + $0x380] sm:$0xff]  ;;  %v4200_v33 = vld [vmem:[#allocation21_spill] sm:$0xff] }
 0x134   :  { %v1952_v42 = vpack.c.bf16 %v2675_v26, %v2674_v41  ;;  %v2679_v41 = vld [vmem:[#allocation12 + $0x5d0] sm:$0xff]  ;;  %v947_v26 = vmul.f32 0.999, %v755_v24  ;;  %v3455_v24 = vmul.f32 0.001, %v3172_v12  ;;  %v2686_v12 = vld [vmem:[#allocation12 + $0x5a0] sm:$0xff] }
 0x135   :  { %v1968_v18 = vpack.c.bf16 %v2679_v41, %v2678_v52  ;;  %v749_v41 = vld [vmem:[#allocation10 + $0xc8] sm:$0xff]  ;;  %v2689_v0 = vld [vmem:[#allocation12 + $0x390] sm:$0xff]  ;;  %v4199_v3 = vld [vmem:[#allocation20_spill] sm:$0xff]  ;;  %v3494_v38 = vmul.f32 0.001, %v4200_v33 }
 0x136   :  { %2034 = vmatpush.bf16.msrb.mxu2 %v1952_v42  ;;  %v1331_v28 = vadd.f32 %v3368_v44, %v947_v26  ;;  %v3462_v42 = vmul.f32 0.001, %v3180_v58  ;;  %v2687_v44 = vld [vmem:[#allocation12 + $0x5b0] sm:$0xff]  ;;  %v3471_v58 = vmul.f32 0.001, %v3186_v62 }
 0x137   :  { %2020 = vmatpush.bf16.msrb.mxu1 %v1936_v5  ;;  %v3459_v5 = vmul.f32 0.001, %v3176_v25  ;;  %2048 = vmatpush.bf16.msrb.mxu3 %v1968_v18  ;;  %v1966_v52 = vpack.c.bf16 %v2687_v44, %v2686_v12  ;;  %v3477_v26 = vmul.f32 0.001, %v3196_v59  ;;  %v941_v61 = vmul.f32 0.999, %v749_v41 }
 0x138   :  { %1659 = vst [vmem:[#allocation12 + $0xf8] sm:$0xff] %v1331_v28  ;;  %v1891_v25 = vpack.c.bf16 %v1331_v28, %v1329_v48  ;;  %v943_v18 = vmul.f32 0.999, %v751_v60  ;;  %v3483_v48 = vmul.f32 0.001, %v3202_v8  ;;  %2012 = vmatpush.bf16.msrb.mxu0 %v1908_v13  ;;  %v2690_v59 = vld [vmem:[#allocation12 + $0x480] sm:$0xff] }
 0x139   :  { %v3486_v62 = vmul.f32 0.001, %v3206_v53  ;;  %v3489_v39 = vmul.f32 0.001, %v4199_v3  ;;  %v1325_v1 = vadd.f32 %v3377_v21, %v941_v61  ;;  %4201 = vst [vmem:[#allocation20_spill] sm:$0xff] %v3494_v38  ;;  %v4202_v53 = vld [vmem:[#allocation22_spill] sm:$0xff] }
 0x13a   :  { %2035 = vmatpush.bf16.msrb.mxu2 %v1950_v27  ;;  %v2691_v27 = vld [vmem:[#allocation12 + $0x490] sm:$0xff]  ;;  %v1327_v8 = vadd.f32 %v3379_v45, %v943_v18  ;;  %v3497_v13 = vmul.f32 0.001, %v4202_v53  ;;  %v745_v12 = vld [vmem:[#allocation10 + $0xa8] sm:$0xff]  ;;  %v747_v44 = vld [vmem:[#allocation10 + $0xb8] sm:$0xff] }
 0x13b   :  { %2021 = vmatpush.bf16.msrb.mxu1 %v1934_v19  ;;  %v1932_v19 = vpack.c.bf16 %v2689_v0, %v2688_v55  ;;  %2049 = vmatpush.bf16.msrb.mxu3 %v1966_v52  ;;  %v1948_v28 = vpack.c.bf16 %v2691_v27, %v2690_v59  ;;  %v2692_v41 = vld [vmem:[#allocation12 + $0x580] sm:$0xff]  ;;  %v2693_v52 = vld [vmem:[#allocation12 + $0x590] sm:$0xff]  ;;  %1653 = vst [vmem:[#allocation12 + $0xc8] sm:$0xff] %v1325_v1  ;;  %v937_v55 = vmul.f32 0.999, %v745_v12  ;;  %v4204_v21 = vld [vmem:[#allocation23_spill] sm:$0xff] }
 0x13c   :  { %2061 = vmatpush.bf16.msra.mxu0 %v1891_v25  ;;  %4203 = vst [vmem:[#allocation21_spill] sm:$0xff] %v3497_v13  ;;  %v1964_v25 = vpack.c.bf16 %v2693_v52, %v2692_v41  ;;  %v1889_v60 = vpack.c.bf16 %v1327_v8, %v1325_v1  ;;  %v939_v0 = vmul.f32 0.999, %v747_v44  ;;  %v3500_v61 = vmul.f32 0.001, %v4204_v21  ;;  %v4205_v45 = vld [vmem:[#allocation24_spill] sm:$0xff] }
 0x13d   :  { %v3503_v18 = vmul.f32 0.001, %v4205_v45  ;;  %1655 = vst [vmem:[#allocation12 + $0xd8] sm:$0xff] %v1327_v8  ;;  %v2694_v3 = vld [vmem:[#allocation12 + $0x360] sm:$0xff]  ;;  %v2695_v59 = vld [vmem:[#allocation12 + $0x370] sm:$0xff]  ;;  %v4206_v27 = vld [vmem:[#allocation25_spill] sm:$0xff]  ;;  %v1321_v52 = vadd.f32 %v3385_v30, %v937_v55 }
 0x13e   :  { %2036 = vmatpush.bf16.msrb.mxu2 %v1948_v28  ;;  %v3506_v33 = vmul.f32 0.001, %v4206_v27  ;;  %v2696_v28 = vld [vmem:[#allocation12 + $0x460] sm:$0xff]  ;;  %v2697_v53 = vld [vmem:[#allocation12 + $0x470] sm:$0xff]  ;;  %v3510_v21 = vmul.f32 0.001, %v3227_v20  ;;  %v1323_v45 = vadd.f32 %v3387_v51, %v939_v0 }
 0x13f   :  { %2022 = vmatpush.bf16.msrb.mxu1 %v1932_v19  ;;  %v1930_v19 = vpack.c.bf16 %v2695_v59, %v2694_v3  ;;  %2050 = vmatpush.bf16.msrb.mxu3 %v1964_v25  ;;  %v1946_v1 = vpack.c.bf16 %v2697_v53, %v2696_v28  ;;  %v2698_v12 = vld [vmem:[#allocation12 + $0x560] sm:$0xff]  ;;  %v2699_v44 = vld [vmem:[#allocation12 + $0x570] sm:$0xff]  ;;  %v3513_v8 = vmul.f32 0.001, %v3229_v17  ;;  %v741_v3 = vld [vmem:[#allocation10 + $0x88] sm:$0xff]  ;;  %1649 = vst [vmem:[#allocation12 + $0xa8] sm:$0xff] %v1321_v52 }
 0x140   :  { %4207 = vst [vmem:[#allocation22_spill] sm:$0xff] %v3506_v33  ;;  %2062 = vmatpush.bf16.msra.mxu0 %v1889_v60  ;;  %v1962_v41 = vpack.c.bf16 %v2699_v44, %v2698_v12  ;;  %v743_v25 = vld [vmem:[#allocation10 + $0x98] sm:$0xff]  ;;  %v566_v60 = vpop.f32.mrf.mxu2  ;;  %v933_v59 = vmul.f32 0.999, %v741_v3  ;;  %v3517_v28 = vmul.f32 0.001, %v3234_v54  ;;  %v1887_v20 = vpack.c.bf16 %v1323_v45, %v1321_v52 }
 0x141   :  { %v935_v27 = vmul.f32 0.999, %v743_v25  ;;  %v3520_v30 = vmul.f32 0.001, %v3236_v2  ;;  %1651 = vst [vmem:[#allocation12 + $0xb8] sm:$0xff] %v1323_v45  ;;  %v2700_v17 = vld [vmem:[#allocation12 + $0x340] sm:$0xff] }
 0x142   :  { %2037 = vmatpush.bf16.msrb.mxu2 %v1946_v1  ;;  %v2701_v55 = vld [vmem:[#allocation12 + $0x350] sm:$0xff]  ;;  %v3523_v51 = vmul.f32 0.001, %v3241_v16  ;;  %v2702_v0 = vld [vmem:[#allocation12 + $0x440] sm:$0xff]  ;;  %v1317_v12 = vadd.f32 %v3394_v50, %v933_v59  ;;  %v3528_v44 = vmul.f32 0.001, %v3243_v4 }
 0x143   :  { %2023 = vmatpush.bf16.msrb.mxu1 %v1930_v19  ;;  %v1928_v19 = vpack.c.bf16 %v2701_v55, %v2700_v17  ;;  %2051 = vmatpush.bf16.msrb.mxu3 %v1962_v41  ;;  %v2703_v53 = vld [vmem:[#allocation12 + $0x450] sm:$0xff]  ;;  %v1319_v54 = vadd.f32 %v3397_v7, %v935_v27  ;;  %v4208_v2 = vld [vmem:[#allocation28_spill] sm:$0xff]  ;;  %v737_v52 = vld [vmem:[#allocation10 + $0x68] sm:$0xff]  ;;  %v3534_v41 = vpop.f32.mrf.mxu3 }
 0x144   :  { %v1944_v1 = vpack.c.bf16 %v2703_v53, %v2702_v0  ;;  %v4177_v3 = vperm.slane %v4208_v2, 1  ;;  %2063 = vmatpush.bf16.msra.mxu0 %v1887_v20  ;;  %v739_v45 = vld [vmem:[#allocation10 + $0x78] sm:$0xff]  ;;  %v4209_v25 = vld [vmem:[#allocation26_spill] sm:$0xff]  ;;  %v2704_v17 = vld [vmem:[#allocation12 + $0x540] sm:$0xff]  ;;  %1645 = vst [vmem:[#allocation12 + $0x88] sm:$0xff] %v1317_v12 }
 0x145   :  { %v3532_v16 = vmul.f32 0.001, %v4209_v25  ;;  %v2705_v55 = vld [vmem:[#allocation12 + $0x550] sm:$0xff]  ;;  %v1885_v7 = vpack.c.bf16 %v1319_v54, %v1317_v12  ;;  %v929_v59 = vmul.f32 0.999, %v737_v52  ;;  %1647 = vst [vmem:[#allocation12 + $0x98] sm:$0xff] %v1319_v54 }
 0x146   :  { %2038 = vmatpush.bf16.msrb.mxu2 %v1944_v1  ;;  %v1960_v50 = vpack.c.bf16 %v2705_v55, %v2704_v17  ;;  %v2706_v4 = vld [vmem:[#allocation12 + $0x320] sm:$0xff]  ;;  %v2707_v27 = vld [vmem:[#allocation12 + $0x330] sm:$0xff]  ;;  %v931_v53 = vmul.f32 0.999, %v739_v45  ;;  %v785_v1 = vld [vmem:[#allocation10 + $0x1e8] sm:$0xff] }
 0x147   :  { %2024 = vmatpush.bf16.msrb.mxu1 %v1928_v19  ;;  %4210 = vst [vmem:[#allocation23_spill] sm:$0xff] %v3532_v16  ;;  %v1926_v0 = vpack.c.bf16 %v2707_v27, %v2706_v4  ;;  %v1858_v20 = vld [vmem:[%s4211_s23] sm:$0xff]  ;;  %v1864_v19 = vld [vmem:[%s4211_s23 + $0x30] sm:$0xff]  ;;  %v1313_v54 = vadd.f32 %v3406_v35, %v929_v59  ;;  %v787_v55 = vld [vmem:[#allocation10 + $0x1f8] sm:$0xff]  ;;  %v977_v4 = vmul.f32 0.999, %v785_v1  ;;  %v567_v27 = vadd.f32 %v566_v60, %v4177_v3 }
 0x148   :  { %2052 = vmatpush.bf16.msrb.mxu3 %v1960_v50  ;;  %v3542_v25 = vpack.c.bf16 %v1864_v19, %v1858_v20  ;;  %v2708_v17 = vld [vmem:[#allocation12 + $0x420] sm:$0xff]  ;;  %v2709_v12 = vld [vmem:[#allocation12 + $0x430] sm:$0xff]  ;;  %2064 = vmatpush.bf16.msra.mxu0 %v1885_v7  ;;  %v1859_v45 = vld [vmem:[%s4211_s23 + $0x8] sm:$0xff]  ;;  %v1315_v20 = vadd.f32 %v3409_v29, %v931_v53  ;;  %v979_v19 = vmul.f32 0.999, %v787_v55  ;;  %v568_v13 = vpop.f32.mrf.mxu2 }
 0x149   :  { %v1942_v52 = vpack.c.bf16 %v2709_v12, %v2708_v17  ;;  %v1865_v50 = vld [vmem:[%s4211_s23 + $0x38] sm:$0xff]  ;;  %v733_v17 = vld [vmem:[#allocation10 + $0x48] sm:$0xff]  ;;  %v2710_v59 = vld [vmem:[#allocation12 + $0x520] sm:$0xff]  ;;  %1641 = vst [vmem:[#allocation12 + $0x68] sm:$0xff] %v1313_v54  ;;  %v3558_v29 = vadd.f32 %v3370_v23, %v977_v4 }
 0x14a   :  { %1985 = vmatmul.bf16.vlgmr.msra.gmra.mxu2 %v3542_v25  ;;  %v3555_v35 = vpack.c.bf16 %v1865_v50, %v1859_v45  ;;  %v2711_v60 = vld [vmem:[#allocation12 + $0x530] sm:$0xff]  ;;  %v735_v3 = vld [vmem:[#allocation10 + $0x58] sm:$0xff]  ;;  %v925_v33 = vmul.f32 0.999, %v733_v17  ;;  %1643 = vst [vmem:[#allocation12 + $0x78] sm:$0xff] %v1315_v20  ;;  %v1883_v16 = vpack.c.bf16 %v1315_v20, %v1313_v54  ;;  %v3561_v53 = vadd.f32 %v3375_v37, %v979_v19  ;;  %v781_v45 = vld [vmem:[#allocation10 + $0x1c8] sm:$0xff] }
 0x14b   :  { %2025 = vmatpush.bf16.msrb.mxu1 %v1926_v0  ;;  %v1958_v7 = vpack.c.bf16 %v2711_v60, %v2710_v59  ;;  %v2712_v0 = vld [vmem:[#allocation12 + $0x300] sm:$0xff]  ;;  %v2713_v1 = vld [vmem:[#allocation12 + $0x310] sm:$0xff]  ;;  %2039 = vmatpush.bf16.msrb.mxu2 %v1942_v52  ;;  %v927_v55 = vmul.f32 0.999, %v735_v3  ;;  %v783_v50 = vld [vmem:[#allocation10 + $0x1d8] sm:$0xff]  ;;  %1689 = vst [vmem:[#allocation12 + $0x1e8] sm:$0xff] %v3558_v29  ;;  %v582_v23 = vpop.f32.mrf.mxu3 }
 0x14c   :  { %4212 = vst [vmem:[#allocation24_spill] sm:$0xff] %v3555_v35  ;;  %v1924_v12 = vpack.c.bf16 %v2713_v1, %v2712_v0  ;;  %1999 = vmatmul.bf16.vlgmr.msra.gmra.mxu3 %v3555_v35  ;;  %v2714_v59 = vld [vmem:[#allocation12 + $0x400] sm:$0xff]  ;;  %v2715_v60 = vld [vmem:[#allocation12 + $0x410] sm:$0xff]  ;;  %v1309_v17 = vadd.f32 %v3421_v43, %v925_v33  ;;  %v973_v52 = vmul.f32 0.999, %v781_v45  ;;  %2065 = vmatpush.bf16.msra.mxu0 %v1883_v16  ;;  %v2716_v37 = vld [vmem:[#allocation12 + $0x2e8] sm:$0xff] }
 0x14d   :  { %v1940_v0 = vpack.c.bf16 %v2715_v60, %v2714_v59  ;;  %v975_v1 = vmul.f32 0.999, %v783_v50  ;;  %2053 = vmatpush.bf16.msrb.mxu3 %v1958_v7  ;;  %v2717_v3 = vld [vmem:[#allocation12 + $0x2f8] sm:$0xff]  ;;  %v2718_v4 = vld [vmem:[#allocation12 + $0x500] sm:$0xff]  ;;  %v2719_v20 = vld [vmem:[#allocation12 + $0x510] sm:$0xff]  ;;  %v581_v59 = vadd.f32 %v3534_v41, %v567_v27  ;;  %1691 = vst [vmem:[#allocation12 + $0x1f8] sm:$0xff] %v3561_v53  ;;  %v1311_v33 = vadd.f32 %v3424_v6, %v927_v55 }
 0x14e   :  { %v1923_v54 = vpack.c.bf16 %v2717_v3, %v2716_v37  ;;  %v1956_v19 = vpack.c.bf16 %v2719_v20, %v2718_v4  ;;  %v729_v35 = vld [vmem:[#allocation10 + $0x28] sm:$0xff]  ;;  %v731_v38 = vld [vmem:[#allocation10 + $0x38] sm:$0xff]  ;;  %v4213_v60 = vperm.slane %v4208_v2, 1  ;;  %1637 = vst [vmem:[#allocation12 + $0x48] sm:$0xff] %v1309_v17  ;;  %v3574_v3 = vadd.f32 %v3381_v57, %v973_v52 }
 0x14f   :  { %2026 = vmatpush.bf16.msrb.mxu1 %v1924_v12  ;;  %v2720_v16 = vld [vmem:[#allocation12 + $0x3e8] sm:$0xff]  ;;  %v2721_v7 = vld [vmem:[#allocation12 + $0x3f8] sm:$0xff]  ;;  %v921_v50 = vmul.f32 0.999, %v729_v35  ;;  %2040 = vmatpush.bf16.msrb.mxu2 %v1940_v0  ;;  %v923_v27 = vmul.f32 0.999, %v731_v38  ;;  %v1881_v6 = vpack.c.bf16 %v1311_v33, %v1309_v17 }
 0x150   :  { %v1939_v45 = vpack.c.bf16 %v2721_v7, %v2720_v16  ;;  %v569_v37 = vadd.f32 %v568_v13, %v4213_v60  ;;  %v4214_v4 = vld [vmem:[#allocation29_spill] sm:$0xff]  ;;  %v779_v20 = vld [vmem:[#allocation10 + $0x1b8] sm:$0xff]  ;;  %1639 = vst [vmem:[#allocation12 + $0x58] sm:$0xff] %v1311_v33 }
 0x151   :  { %v594_v43 = vpop.f32.mrf.mxu0  ;;  %v3577_v41 = vadd.f32 %v4214_v4, %v975_v1  ;;  %v777_v12 = vld [vmem:[#allocation10 + $0x1a8] sm:$0xff]  ;;  %v1305_v35 = vadd.f32 %v3433_v22, %v921_v50  ;;  %v971_v2 = vmul.f32 0.999, %v779_v20  ;;  %v4215_v13 = vld [vmem:[#allocation27_spill] sm:$0xff]  ;;  %2054 = vmatpush.bf16.msrb.mxu3 %v1956_v19  ;;  %1685 = vst [vmem:[#allocation12 + $0x1c8] sm:$0xff] %v3574_v3  ;;  %2066 = vmatpush.bf16.msra.mxu0 %v1881_v6 }
 0x152   :  { %v969_v55 = vmul.f32 0.999, %v777_v12  ;;  %v3581_v0 = vmul.f32 0.001, %v4215_v13  ;;  %v2722_v38 = vld [vmem:[#allocation12 + $0x2c8] sm:$0xff]  ;;  %v2723_v52 = vld [vmem:[#allocation12 + $0x2d8] sm:$0xff]  ;;  %v1307_v22 = vadd.f32 %v3436_v47, %v923_v27  ;;  %v3591_v12 = vadd.f32 %v582_v23, %v569_v37 }
 0x153   :  { %2089 = vmatpush.bf16.msra.mxu2 %v1923_v54  ;;  %v1905_v57 = vpack.c.bf16 %v3577_v41, %v3574_v3  ;;  %v1921_v1 = vpack.c.bf16 %v2723_v52, %v2722_v38  ;;  %v725_v16 = vld [vmem:[#allocation10 + $0x8] sm:$0xff]  ;;  %v727_v54 = vld [vmem:[#allocation10 + $0x18] sm:$0xff]  ;;  %1687 = vst [vmem:[#allocation12 + $0x1d8] sm:$0xff] %v3577_v41  ;;  %v3594_v20 = vadd.f32 %v3391_v49, %v971_v2  ;;  %v1860_v49 = vld [vmem:[%s4211_s23 + $0x10] sm:$0xff] }
 0x154   :  { %v608_v7 = vpop.f32.mrf.mxu1  ;;  %v2724_v17 = vld [vmem:[#allocation12 + $0x3c8] sm:$0xff]  ;;  %v2725_v33 = vld [vmem:[#allocation12 + $0x3d8] sm:$0xff]  ;;  %v3589_v50 = vadd.f32 %v3389_v32, %v969_v55  ;;  %1633 = vst [vmem:[#allocation12 + $0x28] sm:$0xff] %v1305_v35  ;;  %v917_v6 = vmul.f32 0.999, %v725_v16  ;;  %v595_v38 = vadd.f32 %v594_v43, %v581_v59  ;;  %v1879_v47 = vpack.c.bf16 %v1307_v22, %v1305_v35  ;;  %v1866_v59 = vld [vmem:[%s4211_s23 + $0x40] sm:$0xff] }
 0x155   :  { %2103 = vmatpush.bf16.msra.mxu3 %v1939_v45  ;;  %v1937_v19 = vpack.c.bf16 %v2725_v33, %v2724_v17  ;;  %v881_v60 = vld [vmem:[#allocation10 + $0x4e8] sm:$0xff]  ;;  %v883_v4 = vld [vmem:[#allocation10 + $0x4f8] sm:$0xff]  ;;  %v919_v45 = vmul.f32 0.999, %v727_v54  ;;  %1635 = vst [vmem:[#allocation12 + $0x38] sm:$0xff] %v1307_v22  ;;  %v1862_v2 = vld [vmem:[%s4211_s23 + $0x20] sm:$0xff] }
 0x156   :  { %v773_v13 = vld [vmem:[#allocation10 + $0x188] sm:$0xff]  ;;  %v1073_v27 = vmul.f32 0.999, %v881_v60  ;;  %v1075_v52 = vmul.f32 0.999, %v883_v4  ;;  %v775_v17 = vld [vmem:[#allocation10 + $0x198] sm:$0xff]  ;;  %v1903_v32 = vpack.c.bf16 %v3594_v20, %v3589_v50  ;;  %v1301_v43 = vadd.f32 %v3449_v14, %v917_v6  ;;  %2067 = vmatpush.bf16.msra.mxu0 %v1879_v47 }
 0x157   :  { %2090 = vmatpush.bf16.msra.mxu2 %v1921_v1  ;;  %1681 = vst [vmem:[#allocation12 + $0x1a8] sm:$0xff] %v3589_v50  ;;  %v2726_v23 = vld [vmem:[#allocation12 + $0x2a8] sm:$0xff]  ;;  %v2727_v37 = vld [vmem:[#allocation12 + $0x2b8] sm:$0xff]  ;;  %v1303_v35 = vadd.f32 %v3452_v15, %v919_v45  ;;  %v3611_v1 = vpack.c.bf16 %v1866_v59, %v1860_v49  ;;  %v1868_v14 = vld [vmem:[%s4211_s23 + $0x50] sm:$0xff] }
 0x158   :  { %v1919_v55 = vpack.c.bf16 %v2727_v37, %v2726_v23  ;;  %1683 = vst [vmem:[#allocation12 + $0x1b8] sm:$0xff] %v3594_v20  ;;  %v2728_v16 = vld [vmem:[#allocation12 + $0x3a8] sm:$0xff]  ;;  %v2729_v54 = vld [vmem:[#allocation12 + $0x3b8] sm:$0xff]  ;;  %v1457_v33 = vadd.f32 %v3462_v42, %v1073_v27  ;;  %v1459_v4 = vadd.f32 %v3465_v10, %v1075_v52  ;;  %v3618_v6 = vpack.c.bf16 %v1868_v14, %v1862_v2 }
 0x159   :  { %2104 = vmatpush.bf16.msra.mxu3 %v1937_v19  ;;  %v1935_v22 = vpack.c.bf16 %v2729_v54, %v2728_v16  ;;  %v877_v15 = vld [vmem:[#allocation10 + $0x4c8] sm:$0xff]  ;;  %1629 = vst [vmem:[#allocation12 + $0x8] sm:$0xff] %v1301_v43  ;;  %v1877_v60 = vpack.c.bf16 %v1303_v35, %v1301_v43  ;;  %v965_v19 = vmul.f32 0.999, %v773_v13  ;;  %v879_v45 = vld [vmem:[#allocation10 + $0x4d8] sm:$0xff]  ;;  %v609_v23 = vadd.f32 %v608_v7, %v595_v38  ;;  %v596_v37 = vpop.f32.mrf.mxu0 }
 0x15a   :  { %v769_v47 = vld [vmem:[#allocation10 + $0x168] sm:$0xff]  ;;  %2013 = vmatmul.bf16.vlgmr.msrb.gmra.mxu0 %v3611_v1  ;;  %1631 = vst [vmem:[#allocation12 + $0x18] sm:$0xff] %v1303_v35  ;;  %v967_v42 = vmul.f32 0.999, %v775_v17  ;;  %v1069_v27 = vmul.f32 0.999, %v877_v15  ;;  %v1955_v59 = vpack.c.bf16 %v1459_v4, %v1457_v33  ;;  %2041 = vmatmul.bf16.vlgmr.msrb.gmra.mxu2 %v3618_v6 }
 0x15b   :  { %2091 = vmatpush.bf16.msra.mxu2 %v1919_v55  ;;  %v771_v49 = vld [vmem:[#allocation10 + $0x178] sm:$0xff]  ;;  %1785 = vst [vmem:[#allocation12 + $0x4e8] sm:$0xff] %v1457_v33  ;;  %v3622_v43 = vadd.f32 %v3400_v34, %v965_v19  ;;  %v2730_v10 = vld [vmem:[#allocation12 + $0x288] sm:$0xff]  ;;  %2068 = vmatpush.bf16.msra.mxu0 %v1877_v60  ;;  %v1071_v16 = vmul.f32 0.999, %v879_v45  ;;  %v597_v33 = vadd.f32 %v596_v37, %v3591_v12 }
 0x15c   :  { %v2731_v52 = vld [vmem:[#allocation12 + $0x298] sm:$0xff]  ;;  %v1863_v7 = vld [vmem:[%s4211_s23 + $0x28] sm:$0xff]  ;;  %1787 = vst [vmem:[#allocation12 + $0x4f8] sm:$0xff] %v1459_v4  ;;  %v3631_v34 = vadd.f32 %v3403_v56, %v967_v42  ;;  %v961_v54 = vmul.f32 0.999, %v769_v47  ;;  %v1453_v15 = vadd.f32 %v3474_v9, %v1069_v27  ;;  %v610_v19 = vpop.f32.mrf.mxu1  ;;  %v4216_v9 = vld [vmem:[#allocation30_spill] sm:$0xff] }
 0x15d   :  { %v1917_v2 = vpack.c.bf16 %v2731_v52, %v2730_v10  ;;  %v1869_v13 = vld [vmem:[%s4211_s23 + $0x58] sm:$0xff]  ;;  %v2732_v38 = vld [vmem:[#allocation12 + $0x388] sm:$0xff]  ;;  %2105 = vmatpush.bf16.msra.mxu3 %v1935_v22  ;;  %1677 = vst [vmem:[#allocation12 + $0x188] sm:$0xff] %v3622_v43  ;;  %v963_v60 = vmul.f32 0.999, %v771_v49  ;;  %v1455_v12 = vadd.f32 %v3477_v26, %v1071_v16 }
 0x15e   :  { %v2733_v17 = vld [vmem:[#allocation12 + $0x398] sm:$0xff]  ;;  %v3633_v35 = vpack.c.bf16 %v1869_v13, %v1863_v7  ;;  %v873_v22 = vld [vmem:[#allocation10 + $0x4a8] sm:$0xff]  ;;  %1679 = vst [vmem:[#allocation12 + $0x198] sm:$0xff] %v3631_v34  ;;  %v1901_v45 = vpack.c.bf16 %v3631_v34, %v3622_v43  ;;  %v3645_v27 = vadd.f32 %v4216_v9, %v961_v54 }
 0x15f   :  { %v1933_v55 = vpack.c.bf16 %v2733_v17, %v2732_v38  ;;  %2117 = vmatpush.bf16.msrb.mxu0 %v1955_v59  ;;  %v875_v4 = vld [vmem:[#allocation10 + $0x4b8] sm:$0xff]  ;;  %2092 = vmatpush.bf16.msra.mxu2 %v1917_v2  ;;  %v765_v47 = vld [vmem:[#allocation10 + $0x148] sm:$0xff]  ;;  %1781 = vst [vmem:[#allocation12 + $0x4c8] sm:$0xff] %v1453_v15  ;;  %v3648_v49 = vadd.f32 %v3415_v36, %v963_v60  ;;  %v1065_v38 = vmul.f32 0.999, %v873_v22 }
 0x160   :  { %2055 = vmatmul.bf16.vlgmr.msrb.gmra.mxu3 %v3633_v35  ;;  %v767_v37 = vld [vmem:[#allocation10 + $0x158] sm:$0xff]  ;;  %v2736_v52 = vld [vmem:[#allocation12 + $0x368] sm:$0xff]  ;;  %1783 = vst [vmem:[#allocation12 + $0x4d8] sm:$0xff] %v1455_v12  ;;  %v1953_v26 = vpack.c.bf16 %v1455_v12, %v1453_v15  ;;  %v1067_v17 = vmul.f32 0.999, %v875_v4 }
 0x161   :  { %v2735_v59 = vld [vmem:[#allocation12 + $0x278] sm:$0xff]  ;;  %2106 = vmatpush.bf16.msra.mxu3 %v1933_v55  ;;  %v869_v16 = vld [vmem:[#allocation10 + $0x488] sm:$0xff]  ;;  %1673 = vst [vmem:[#allocation12 + $0x168] sm:$0xff] %v3645_v27  ;;  %v1899_v36 = vpack.c.bf16 %v3648_v49, %v3645_v27  ;;  %v957_v54 = vmul.f32 0.999, %v765_v47  ;;  %v1449_v55 = vadd.f32 %v3486_v62, %v1065_v38 }
 0x162   :  { %v2737_v7 = vld [vmem:[#allocation12 + $0x378] sm:$0xff]  ;;  %v959_v60 = vmul.f32 0.999, %v767_v37  ;;  %1675 = vst [vmem:[#allocation12 + $0x178] sm:$0xff] %v3648_v49  ;;  %v1451_v15 = vadd.f32 %v3489_v39, %v1067_v17  ;;  %v1061_v22 = vmul.f32 0.999, %v869_v16 }
 0x163   :  { %v1931_v2 = vpack.c.bf16 %v2737_v7, %v2736_v52  ;;  %v871_v9 = vld [vmem:[#allocation10 + $0x498] sm:$0xff]  ;;  %2118 = vmatpush.bf16.msrb.mxu0 %v1953_v26  ;;  %v2738_v12 = vld [vmem:[#allocation12 + $0x248] sm:$0xff]  ;;  %1777 = vst [vmem:[#allocation12 + $0x4a8] sm:$0xff] %v1449_v55 }
 0x164   :  { %v763_v4 = vld [vmem:[#allocation10 + $0x138] sm:$0xff]  ;;  %v1951_v62 = vpack.c.bf16 %v1451_v15, %v1449_v55  ;;  %v1445_v39 = vadd.f32 %v3500_v61, %v1061_v22  ;;  %v865_v26 = vld [vmem:[#allocation10 + $0x468] sm:$0xff]  ;;  %1779 = vst [vmem:[#allocation12 + $0x4b8] sm:$0xff] %v1451_v15 }
 0x165   :  { %v2739_v47 = vld [vmem:[#allocation12 + $0x258] sm:$0xff]  ;;  %2107 = vmatpush.bf16.msra.mxu3 %v1931_v2  ;;  %v1057_v16 = vmul.f32 0.999, %v865_v26  ;;  %v757_v61 = vld [vmem:[#allocation10 + $0x108] sm:$0xff] }
 0x166   :  { %v1913_v37 = vpack.c.bf16 %v2739_v47, %v2738_v12  ;;  %v867_v17 = vld [vmem:[#allocation10 + $0x478] sm:$0xff]  ;;  %v913_v22 = vld [vmem:[#allocation10 + $0x5e8] sm:$0xff]  ;;  %1773 = vst [vmem:[#allocation12 + $0x488] sm:$0xff] %v1445_v39  ;;  %v949_v26 = vmul.f32 0.999, %v757_v61 }
 0x167   :  { %2119 = vmatpush.bf16.msrb.mxu0 %v1951_v62  ;;  %v759_v55 = vld [vmem:[#allocation10 + $0x118] sm:$0xff]  ;;  %v2744_v47 = vld [vmem:[#allocation12 + $0x328] sm:$0xff] }
 0x168   :  { %v622_v14 = vpop.f32.mrf.mxu2  ;;  %v893_v50 = vld [vmem:[#allocation10 + $0x548] sm:$0xff]  ;;  %v895_v20 = vld [vmem:[#allocation10 + $0x558] sm:$0xff] }
 0x169   :  { %v623_v56 = vadd.f32 %v622_v14, %v609_v23  ;;  %v636_v42 = vpop.f32.mrf.mxu3  ;;  %v2734_v23 = vld [vmem:[#allocation12 + $0x268] sm:$0xff]  ;;  %v611_v14 = vadd.f32 %v610_v19, %v597_v33  ;;  %v3660_v19 = vadd.f32 %v3427_v40, %v957_v54  ;;  %v891_v34 = vld [vmem:[#allocation10 + $0x538] sm:$0xff] }
 0x16a   :  { %v1915_v10 = vpack.c.bf16 %v2735_v59, %v2734_v23  ;;  %v761_v33 = vld [vmem:[#allocation10 + $0x128] sm:$0xff]  ;;  %v2741_v59 = vld [vmem:[#allocation12 + $0x358] sm:$0xff]  ;;  %2069 = vmatmul.bf16.vlgmr.msra.gmra.mxu0 %v3542_v25 }
 0x16b   :  { %v3650_v13 = vadd.f32 %v636_v42, %v623_v56  ;;  %v3663_v56 = vadd.f32 %v3430_v46, %v959_v60  ;;  %v2740_v42 = vld [vmem:[#allocation12 + $0x348] sm:$0xff]  ;;  %v953_v7 = vmul.f32 0.999, %v761_v33  ;;  %v955_v46 = vmul.f32 0.999, %v763_v4  ;;  %1669 = vst [vmem:[#allocation12 + $0x148] sm:$0xff] %v3660_v19 }
 0x16c   :  { %2093 = vmatpush.bf16.msra.mxu2 %v1915_v10  ;;  %v1929_v52 = vpack.c.bf16 %v2741_v59, %v2740_v42  ;;  %v1063_v10 = vmul.f32 0.999, %v871_v9  ;;  %v4217_v60 = vld [vmem:[#allocation31_spill] sm:$0xff]  ;;  %v2742_v4 = vld [vmem:[#allocation12 + $0x228] sm:$0xff]  ;;  %v1059_v59 = vmul.f32 0.999, %v867_v17 }
 0x16d   :  { %v642_v23 = vmax.f32 %v3650_v13, 0.0  ;;  %v1897_v40 = vpack.c.bf16 %v3663_v56, %v3660_v19  ;;  %v3671_v9 = vadd.f32 %v4217_v60, %v953_v7  ;;  %1671 = vst [vmem:[#allocation12 + $0x158] sm:$0xff] %v3663_v56  ;;  %v3675_v33 = vadd.f32 %v3445_v63, %v955_v46  ;;  %v2745_v42 = vld [vmem:[#allocation12 + $0x338] sm:$0xff]  ;;  %v1867_v13 = vld [vmem:[%s4211_s23 + $0x48] sm:$0xff]  ;;  %v4223_v19 = vld [vmem:[#allocation24_spill] sm:$0xff] }
 0x16e   :  { %v1447_v2 = vadd.f32 %v3503_v18, %v1063_v10  ;;  %v915_v18 = vld [vmem:[#allocation10 + $0x5f8] sm:$0xff]  ;;  %2108 = vmatpush.bf16.msra.mxu3 %v1929_v52  ;;  %v1441_v7 = vadd.f32 %v3510_v21, %v1057_v16  ;;  %v1443_v46 = vadd.f32 %v3513_v8, %v1059_v59  ;;  %v3683_v52 = vadd.f32 %v3455_v24, %v949_v26  ;;  %v2746_v8 = vld [vmem:[#allocation12 + $0x208] sm:$0xff]  ;;  %v2759_v56 = vld [vmem:[%s4151_s5 + $0x70] sm:$0xff] }
 0x16f   :  { %v863_v60 = vld [vmem:[#allocation10 + $0x458] sm:$0xff]  ;;  %v1895_v63 = vpack.c.bf16 %v3675_v33, %v3671_v9  ;;  %1665 = vst [vmem:[#allocation12 + $0x128] sm:$0xff] %v3671_v9  ;;  %v1107_v21 = vmul.f32 0.999, %v915_v18  ;;  %v889_v43 = vld [vmem:[#allocation10 + $0x528] sm:$0xff] }
 0x170   :  { %v624_v38 = vpop.f32.mrf.mxu2  ;;  %2094 = vmatpush.bf16.msra.mxu2 %v1913_v37  ;;  %v1927_v37 = vpack.c.bf16 %v2745_v42, %v2744_v47  ;;  %v1949_v10 = vpack.c.bf16 %v1447_v2, %v1445_v39  ;;  %1775 = vst [vmem:[#allocation12 + $0x498] sm:$0xff] %v1447_v2  ;;  %v1947_v17 = vpack.c.bf16 %v1443_v46, %v1441_v7  ;;  %v1055_v61 = vmul.f32 0.999, %v863_v60  ;;  %v859_v42 = vld [vmem:[#allocation10 + $0x438] sm:$0xff]  ;;  %v905_v60 = vld [vmem:[#allocation10 + $0x5a8] sm:$0xff] }
 0x171   :  { %v625_v54 = vadd.f32 %v624_v38, %v611_v14  ;;  %v638_v15 = vpop.f32.mrf.mxu3  ;;  %v2743_v14 = vld [vmem:[#allocation12 + $0x238] sm:$0xff]  ;;  %v861_v38 = vld [vmem:[#allocation10 + $0x448] sm:$0xff]  ;;  %1667 = vst [vmem:[#allocation12 + $0x138] sm:$0xff] %v3675_v33  ;;  %v3696_v25 = vadd.f32 %v3471_v58, %v1107_v21 }
 0x172   :  { %v1911_v12 = vpack.c.bf16 %v2743_v14, %v2742_v4  ;;  %v951_v4 = vmul.f32 0.999, %v759_v55  ;;  %v1105_v14 = vmul.f32 0.999, %v913_v22  ;;  %2120 = vmatpush.bf16.msrb.mxu0 %v1949_v10  ;;  %v1053_v39 = vmul.f32 0.999, %v861_v38  ;;  %2109 = vmatpush.bf16.msra.mxu3 %v1927_v37 }
 0x173   :  { %v639_v62 = vadd.f32 %v638_v15, %v625_v54  ;;  %v2747_v54 = vld [vmem:[#allocation12 + $0x218] sm:$0xff]  ;;  %v909_v55 = vld [vmem:[#allocation10 + $0x5c8] sm:$0xff]  ;;  %1769 = vst [vmem:[#allocation12 + $0x468] sm:$0xff] %v1441_v7 }
 0x174   :  { %2095 = vmatpush.bf16.msra.mxu2 %v1911_v12  ;;  %v3688_v16 = vadd.f32 %v3459_v5, %v951_v4  ;;  %v1909_v2 = vpack.c.bf16 %v2747_v54, %v2746_v8  ;;  %v911_v22 = vld [vmem:[#allocation10 + $0x5d8] sm:$0xff]  ;;  %v3693_v15 = vadd.f32 %v3468_v11, %v1105_v14  ;;  %v1101_v12 = vmul.f32 0.999, %v909_v55  ;;  %v857_v5 = vld [vmem:[#allocation10 + $0x428] sm:$0xff]  ;;  %1771 = vst [vmem:[#allocation12 + $0x478] sm:$0xff] %v1443_v46  ;;  %v4219_v8 = vld [vmem:[#allocation20_spill] sm:$0xff] }
 0x175   :  { %v644_v47 = vmax.f32 %v639_v62, 0.0  ;;  %v1861_v59 = vld [vmem:[%s4211_s23 + $0x18] sm:$0xff]  ;;  %v2748_v11 = vld [vmem:[#allocation12 + $0x308] sm:$0xff]  ;;  %v1437_v58 = vadd.f32 %v3517_v28, %v1053_v39  ;;  %v1439_v62 = vadd.f32 %v3520_v30, %v1055_v61  ;;  %1661 = vst [vmem:[#allocation12 + $0x108] sm:$0xff] %v3683_v52  ;;  %v1103_v7 = vmul.f32 0.999, %v911_v22 }
 0x176   :  { %v2749_v37 = vld [vmem:[#allocation12 + $0x318] sm:$0xff]  ;;  %2121 = vmatpush.bf16.msrb.mxu0 %v1947_v17  ;;  %v1971_v10 = vpack.c.bf16 %v3696_v25, %v3693_v15  ;;  %v3712_v26 = vadd.f32 %v3480_v31, %v1101_v12  ;;  %v1049_v38 = vmul.f32 0.999, %v857_v5  ;;  %v4218_v46 = vpack.c.bf16 %v3561_v53, %v3558_v29  ;;  %1663 = vst [vmem:[#allocation12 + $0x118] sm:$0xff] %v3688_v16  ;;  %v853_v29 = vld [vmem:[#allocation10 + $0x408] sm:$0xff] }
 0x177   :  { %v646_v24 = vpack.c.bf16 %v644_v47, %v642_v23  ;;  %v1893_v23 = vpack.c.bf16 %v3688_v16, %v3683_v52  ;;  %v1925_v18 = vpack.c.bf16 %v2749_v37, %v2748_v11  ;;  %v1945_v28 = vpack.c.bf16 %v1439_v62, %v1437_v58  ;;  %v907_v4 = vld [vmem:[#allocation10 + $0x5b8] sm:$0xff]  ;;  %1817 = vst [vmem:[#allocation12 + $0x5e8] sm:$0xff] %v3693_v15  ;;  %v901_v12 = vld [vmem:[#allocation10 + $0x588] sm:$0xff] }
 0x178   :  { %2096 = vmatpush.bf16.msra.mxu2 %v1909_v2  ;;  %v1051_v30 = vmul.f32 0.999, %v859_v42  ;;  %v1097_v14 = vmul.f32 0.999, %v905_v60  ;;  %v3718_v47 = vpack.c.bf16 %v1867_v13, %v1861_v59  ;;  %v3722_v31 = vadd.f32 %v3483_v48, %v1103_v7  ;;  %v855_v53 = vld [vmem:[#allocation10 + $0x418] sm:$0xff]  ;;  %1819 = vst [vmem:[#allocation12 + $0x5f8] sm:$0xff] %v3696_v25 }
 0x179   :  { %688 = vmatmul.bf16.vlgmr.msra.gmra.mxu1 %v646_v24  ;;  %2110 = vmatpush.bf16.msra.mxu3 %v1925_v18  ;;  %v1433_v21 = vadd.f32 %v3523_v51, %v1049_v38  ;;  %v1099_v39 = vmul.f32 0.999, %v907_v4  ;;  %v1045_v2 = vmul.f32 0.999, %v853_v29  ;;  %v1047_v61 = vmul.f32 0.999, %v855_v53 }
 0x17a   :  { %2075 = vmatpush.bf16.msra.mxu1 %v4218_v46  ;;  %v1435_v17 = vadd.f32 %v3528_v44, %v1051_v30  ;;  %v3728_v54 = vadd.f32 %v4219_v8, %v1097_v14  ;;  %v2750_v55 = vld [vmem:[#allocation7 + $0x598] sm:$0xff]  ;;  %1765 = vst [vmem:[#allocation12 + $0x448] sm:$0xff] %v1437_v58  ;;  %2122 = vmatpush.bf16.msrb.mxu0 %v1945_v28  ;;  %v4220_v51 = vld [vmem:[#allocation21_spill] sm:$0xff]  ;;  %v1093_v11 = vmul.f32 0.999, %v901_v12 }
 0x17b   :  { %v1287_v22 = vmul.f32 0.001, %v2750_v55  ;;  %2097 = vmatmul.bf16.vlgmr.msra.gmra.mxu2 %v3611_v1  ;;  %v1969_v48 = vpack.c.bf16 %v3722_v31, %v3712_v26  ;;  %v3734_v24 = vadd.f32 %v4220_v51, %v1099_v39  ;;  %v903_v5 = vld [vmem:[#allocation10 + $0x598] sm:$0xff]  ;;  %1767 = vst [vmem:[#allocation12 + $0x458] sm:$0xff] %v1439_v62  ;;  %v1431_v1 = vadd.f32 %v3581_v0, %v1047_v61  ;;  %v2751_v18 = vld [vmem:[#allocation7 + $0x568] sm:$0xff] }
 0x17c   :  { %2111 = vmatmul.bf16.vlgmr.msra.gmra.mxu3 %v3718_v47  ;;  %v1943_v44 = vpack.c.bf16 %v1435_v17, %v1433_v21  ;;  %v4221_v42 = vld [vmem:[#allocation23_spill] sm:$0xff]  ;;  %1813 = vst [vmem:[#allocation12 + $0x5c8] sm:$0xff] %v3712_v26  ;;  %v1095_v37 = vmul.f32 0.999, %v903_v5  ;;  %v1281_v58 = vmul.f32 0.001, %v2751_v18 }
 0x17d   :  { %v1429_v59 = vadd.f32 %v4221_v42, %v1045_v2  ;;  %v1967_v13 = vpack.c.bf16 %v3734_v24, %v3728_v54  ;;  %v2752_v7 = vld [vmem:[#allocation7 + $0x578] sm:$0xff]  ;;  %1815 = vst [vmem:[#allocation12 + $0x5d8] sm:$0xff] %v3722_v31  ;;  %v897_v38 = vld [vmem:[#allocation10 + $0x568] sm:$0xff]  ;;  %v1087_v8 = vmul.f32 0.999, %v895_v20  ;;  %v1820_v31 = vlaneseq }
 0x17e   :  { %2076 = vmatpush.bf16.msra.mxu1 %v1905_v57  ;;  %v1283_v3 = vmul.f32 0.001, %v2752_v7  ;;  %1761 = vst [vmem:[#allocation12 + $0x428] sm:$0xff] %v1433_v21  ;;  %2123 = vmatpush.bf16.msrb.mxu0 %v1943_v44  ;;  %v4222_v57 = vld [vmem:[#allocation22_spill] sm:$0xff]  ;;  %v3749_v0 = vadd.f32 %v1287_v22, %v1095_v37  ;;  %v899_v60 = vld [vmem:[#allocation10 + $0x578] sm:$0xff]  ;;  %v2753_v4 = vld [vmem:[#allocation7 + $0x548] sm:$0xff] }
 0x17f   :  { %v1941_v41 = vpack.c.bf16 %v1431_v1, %v1429_v59  ;;  %v3747_v62 = vadd.f32 %v4222_v57, %v1093_v11  ;;  %1763 = vst [vmem:[#allocation12 + $0x438] sm:$0xff] %v1435_v17  ;;  %v1089_v46 = vmul.f32 0.999, %v897_v38  ;;  %v1091_v28 = vmul.f32 0.999, %v899_v60  ;;  %v2754_v21 = vld [vmem:[#allocation7 + $0x558] sm:$0xff] }
 0x180   :  { %1809 = vst [vmem:[#allocation12 + $0x5a8] sm:$0xff] %v3728_v54  ;;  %v1277_v14 = vmul.f32 0.001, %v2753_v4  ;;  %v1279_v39 = vmul.f32 0.001, %v2754_v21  ;;  %v2755_v2 = vld [vmem:[#allocation7 + $0x528] sm:$0xff] }
 0x181   :  { %v1965_v30 = vpack.c.bf16 %v3749_v0, %v3747_v62  ;;  %1811 = vst [vmem:[#allocation12 + $0x5b8] sm:$0xff] %v3734_v24  ;;  %v1473_v29 = vadd.f32 %v1281_v58, %v1089_v46  ;;  %v1475_v53 = vadd.f32 %v1283_v3, %v1091_v28  ;;  %v1085_v17 = vmul.f32 0.999, %v893_v50  ;;  %v2756_v55 = vld [vmem:[#allocation7 + $0x538] sm:$0xff]  ;;  %v2757_v42 = vld [vmem:[#allocation7 + $0x508] sm:$0xff]  ;;  %v1508_v57 = vld [vmem:[%s4155_s9 + $0x60] sm:$0xff] }
 0x182   :  { %2077 = vmatpush.bf16.msra.mxu1 %v1903_v32  ;;  %1757 = vst [vmem:[#allocation12 + $0x408] sm:$0xff] %v1429_v59  ;;  %2124 = vmatpush.bf16.msrb.mxu0 %v1941_v41  ;;  %v1273_v61 = vmul.f32 0.001, %v2755_v2  ;;  %v1275_v22 = vmul.f32 0.001, %v2756_v55  ;;  %v1471_v12 = vadd.f32 %v1279_v39, %v1087_v8  ;;  %v887_v18 = vld [vmem:[#allocation10 + $0x518] sm:$0xff] }
 0x183   :  { %1759 = vst [vmem:[#allocation12 + $0x418] sm:$0xff] %v1431_v1  ;;  %v1963_v32 = vpack.c.bf16 %v1475_v53, %v1473_v29  ;;  %v1469_v51 = vadd.f32 %v1277_v14, %v1085_v17  ;;  %v1081_v5 = vmul.f32 0.999, %v889_v43  ;;  %v1083_v44 = vmul.f32 0.999, %v891_v34  ;;  %v2758_v1 = vld [vmem:[#allocation7 + $0x518] sm:$0xff] }
 0x184   :  { %1805 = vst [vmem:[#allocation12 + $0x588] sm:$0xff] %v3747_v62  ;;  %v1269_v59 = vmul.f32 0.001, %v2757_v42  ;;  %v2760_v9 = vld [vmem:[%s4151_s5 + $0x78] sm:$0xff]  ;;  %v1492_v26 = vld [vmem:[%s4154_s8] sm:$0x3] }
 0x185   :  { %1807 = vst [vmem:[#allocation12 + $0x598] sm:$0xff] %v3749_v0  ;;  %2125 = vmatmul.bf16.vlgmr.msrb.gmra.mxu0 %v3618_v6  ;;  %v1271_v6 = vmul.f32 0.001, %v2758_v1  ;;  %v1465_v11 = vadd.f32 %v1273_v61, %v1081_v5  ;;  %v1467_v37 = vadd.f32 %v1275_v22, %v1083_v44  ;;  %v1575_v33 = vmul.f32 0.001, %v2760_v9  ;;  %v1511_v52 = vld [vmem:[%s4155_s9 + $0x78] sm:$0xff] }
 0x186   :  { %2078 = vmatpush.bf16.msra.mxu1 %v1901_v45  ;;  %1801 = vst [vmem:[#allocation12 + $0x568] sm:$0xff] %v1473_v29  ;;  %v1961_v45 = vpack.c.bf16 %v1471_v12, %v1469_v51  ;;  %v1543_v25 = vmul.f32 0.999, %v1511_v52  ;;  %v2763_v54 = vld [vmem:[%s4151_s5 + $0x68] sm:$0xff]  ;;  %v1493_v24 = vmul.f32 0.999, %v1492_v26 }
 0x187   :  { %1803 = vst [vmem:[#allocation12 + $0x578] sm:$0xff] %v1475_v53  ;;  %v1959_v27 = vpack.c.bf16 %v1467_v37, %v1465_v11  ;;  %vm1822_vm0 = vcmp.lt.s32.totalorder %v1820_v31, 256  ;;  %v1509_v62 = vld [vmem:[%s4155_s9 + $0x68] sm:$0xff]  ;;  %v1540_v60 = vmul.f32 0.999, %v1508_v57  ;;  %v2764_v28 = vld [vmem:[%s4151_s5 + $0x50] sm:$0xff] }
 0x188   :  { %1797 = vst [vmem:[#allocation12 + $0x548] sm:$0xff] %v1469_v51  ;;  %v1607_v41 = vadd.f32 %v1575_v33, %v1543_v25  ;;  %v1541_v46 = vmul.f32 0.999, %v1509_v62  ;;  %v2765_v4 = vld [vmem:[%s4151_s5 + $0x58] sm:$0xff]  ;;  %v2766_v17 = vld [vmem:[%s4151_s5 + $0x40] sm:$0xff]  ;;  %v2767_v2 = vld [vmem:[%s4151_s5 + $0x48] sm:$0xff] }
 0x189   :  { %2027 = vmatmul.bf16.vlgmr.msrb.gmra.mxu1 %v3718_v47  ;;  %1799 = vst [vmem:[#allocation12 + $0x558] sm:$0xff] %v1471_v12  ;;  %v885_v47 = vld [vmem:[#allocation10 + $0x508] sm:$0xff]  ;;  %v1571_v14 = vmul.f32 0.001, %v2765_v4  ;;  %v1568_v8 = vmul.f32 0.001, %v2766_v17 }
 0x18a   :  { %2079 = vmatpush.bf16.msra.mxu1 %v1899_v36  ;;  %1793 = vst [vmem:[#allocation12 + $0x528] sm:$0xff] %v1465_v11  ;;  %v1077_v49 = vmul.f32 0.999, %v885_v47  ;;  %v1079_v36 = vmul.f32 0.999, %v887_v18  ;;  %v2768_v5 = vld [vmem:[%s4151_s5 + $0x30] sm:$0xff] }
 0x18b   :  { %1795 = vst [vmem:[#allocation12 + $0x538] sm:$0xff] %v1467_v37  ;;  %v1569_v61 = vmul.f32 0.001, %v2767_v2  ;;  %v1566_v44 = vmul.f32 0.001, %v2768_v5  ;;  %v2769_v42 = vld [vmem:[%s4151_s5 + $0x38] sm:$0xff] }
 0x18c   :  { %v1461_v58 = vadd.f32 %v1269_v59, %v1077_v49  ;;  %v1463_v7 = vadd.f32 %v1271_v6, %v1079_v36  ;;  %v1567_v59 = vmul.f32 0.001, %v2769_v42  ;;  %v2770_v49 = vld [vmem:[%s4151_s5 + $0x20] sm:$0xff]  ;;  %v2772_v52 = vld [vmem:[%s4151_s5 + $0x10] sm:$0xff]  ;;  %v2775_v57 = vld [vmem:[%s4151_s5 + $0x8] sm:$0xff] }
 0x18d   :  { %v1564_v36 = vmul.f32 0.001, %v2770_v49  ;;  %v1561_v62 = vmul.f32 0.001, %v2775_v57  ;;  %v2779_v49 = vld [vmem:[%s4151_s5 + $0xe8] sm:$0xff] }
 0x18e   :  { %2080 = vmatpush.bf16.msra.mxu1 %v1897_v40  ;;  %1789 = vst [vmem:[#allocation12 + $0x508] sm:$0xff] %v1461_v58  ;;  %v1957_v3 = vpack.c.bf16 %v1463_v7, %v1461_v58  ;;  %v1574_v40 = vmul.f32 0.001, %v2759_v56  ;;  %v2771_v58 = vld [vmem:[%s4151_s5 + $0x28] sm:$0xff] }
 0x18f   :  { %1791 = vst [vmem:[#allocation12 + $0x518] sm:$0xff] %v1463_v7  ;;  %v1565_v7 = vmul.f32 0.001, %v2771_v58 }
 0x192   :  { %2081 = vmatpush.bf16.msra.mxu1 %v1895_v63  ;;  %v1510_v63 = vld [vmem:[%s4155_s9 + $0x70] sm:$0xff] }
 0x193   :  { %v1542_v15 = vmul.f32 0.999, %v1510_v63  ;;  %1840 = vst [vmem:[%s4160_s14 + $0x78] sm:$0xff] %v1607_v41 }
 0x196   :  { %2082 = vmatpush.bf16.msra.mxu1 %v1893_v23  ;;  %v2762_v23 = vld [vmem:[%s4151_s5 + $0x60] sm:$0xff] }
 0x199   :  { %2083 = vmatmul.bf16.vlgmr.msra.gmra.mxu1 %v4223_v19 }
 0x19a   :  { %2131 = vmatpush.bf16.msrb.mxu1 %v1971_v10  ;;  %v1572_v10 = vmul.f32 0.001, %v2762_v23 }
 0x19c   :  { %v1604_v21 = vadd.f32 %v1572_v10, %v1540_v60 }
 0x19e   :  { %2132 = vmatpush.bf16.msrb.mxu1 %v1969_v48  ;;  %v1573_v48 = vmul.f32 0.001, %v2763_v54 }
 0x1a0   :  { %v1605_v39 = vadd.f32 %v1573_v48, %v1541_v46 }
 0x1a2   :  { %2133 = vmatpush.bf16.msrb.mxu1 %v1967_v13  ;;  %v1606_v13 = vadd.f32 %v1574_v40, %v1542_v15  ;;  %v2157_v50 = vpack.c.bf16 %v1605_v39, %v1604_v21 }
 0x1a4   :  { %1839 = vst [vmem:[%s4160_s14 + $0x70] sm:$0xff] %v1606_v13  ;;  %v2158_v38 = vpack.c.bf16 %v1607_v41, %v1606_v13  ;;  %v2774_v13 = vld [vmem:[%s4151_s5] sm:$0xff] }
 0x1a5   :  { %v1560_v41 = vmul.f32 0.001, %v2774_v13 }
 0x1a6   :  { %2134 = vmatpush.bf16.msrb.mxu1 %v1965_v30  ;;  %v1570_v30 = vmul.f32 0.001, %v2764_v28  ;;  %2170 = vmatpush.bf16.msrb.mxu2 %v2158_v38  ;;  %v2609_v28 = vld [vmem:[%s4152_s6] ss:$0 sm:$0xff] }
 0x1aa   :  { %2135 = vmatpush.bf16.msrb.mxu1 %v1963_v32  ;;  %2171 = vmatpush.bf16.msrb.mxu2 %v2157_v50  ;;  %v675_v31 = vpop.f32.mrf.mxu0 }
 0x1ab   :  { %v1506_v29 = vld [vmem:[%s4155_s9 + $0x50] sm:$0xff]  ;;  %v1507_v53 = vld [vmem:[%s4155_s9 + $0x58] sm:$0xff] }
 0x1ac   :  { %1837 = vst [vmem:[%s4160_s14 + $0x60] sm:$0xff] %v1604_v21  ;;  %v1538_v20 = vmul.f32 0.999, %v1506_v29  ;;  %v1539_v32 = vmul.f32 0.999, %v1507_v53 }
 0x1ad   :  { %1838 = vst [vmem:[%s4160_s14 + $0x68] sm:$0xff] %v1605_v39 }
 0x1ae   :  { %2136 = vmatpush.bf16.msrb.mxu1 %v1961_v45  ;;  %v1602_v55 = vadd.f32 %v1570_v30, %v1538_v20  ;;  %v1603_v22 = vadd.f32 %v1571_v14, %v1539_v32  ;;  %v676_v20 = vadd.f32 %v2609_v28, %v675_v31 }
 0x1b0   :  { %v2156_v43 = vpack.c.bf16 %v1603_v22, %v1602_v55 }
 0x1b2   :  { %2137 = vmatpush.bf16.msrb.mxu1 %v1959_v27  ;;  %2172 = vmatpush.bf16.msrb.mxu2 %v2156_v43 }
 0x1b4   :  { %v1504_v51 = vld [vmem:[%s4155_s9 + $0x40] sm:$0xff]  ;;  %v1505_v12 = vld [vmem:[%s4155_s9 + $0x48] sm:$0xff] }
 0x1b5   :  { %1835 = vst [vmem:[%s4160_s14 + $0x50] sm:$0xff] %v1602_v55  ;;  %v1536_v34 = vmul.f32 0.999, %v1504_v51  ;;  %v1537_v45 = vmul.f32 0.999, %v1505_v12  ;;  %v2776_v12 = vld [vmem:[%s4151_s5 + $0xf0] sm:$0xff] }
 0x1b6   :  { %2138 = vmatpush.bf16.msrb.mxu1 %v1957_v3  ;;  %1836 = vst [vmem:[%s4160_s14 + $0x58] sm:$0xff] %v1603_v22  ;;  %v1590_v43 = vmul.f32 0.001, %v2776_v12 }
 0x1b7   :  { %v1600_v1 = vadd.f32 %v1568_v8, %v1536_v34  ;;  %v1601_v6 = vadd.f32 %v1569_v61, %v1537_v45  ;;  %v677_v61 = vpop.f32.mrf.mxu0  ;;  %v2777_v34 = vld [vmem:[%s4151_s5 + $0xf8] sm:$0xff] }
 0x1b8   :  { %v1591_v45 = vmul.f32 0.001, %v2777_v34 }
 0x1b9   :  { %2139 = vmatmul.bf16.vlgmr.msrb.gmra.mxu1 %v3633_v35  ;;  %v2761_v35 = vld [vmem:[%s4150_s4] sm:$0x3]  ;;  %v2155_v47 = vpack.c.bf16 %v1601_v6, %v1600_v1 }
 0x1ba   :  { %v1494_v16 = vmul.f32 0.001, %v2761_v35  ;;  %v1562_v35 = vmul.f32 0.001, %v2772_v52  ;;  %v2780_v52 = vld [vmem:[%s4151_s5 + $0xd0] sm:$0xff] }
 0x1bb   :  { %2173 = vmatpush.bf16.msrb.mxu2 %v2155_v47 }
 0x1bc   :  { %v3818_v0 = vadd.f32 %v1494_v16, %v1493_v24  ;;  %v2773_v16 = vld [vmem:[%s4151_s5 + $0x18] sm:$0xff] }
 0x1bd   :  { %v1502_v11 = vld [vmem:[%s4155_s9 + $0x30] sm:$0xff]  ;;  %v1503_v37 = vld [vmem:[%s4155_s9 + $0x38] sm:$0xff]  ;;  %v1563_v15 = vmul.f32 0.001, %v2773_v16 }
 0x1be   :  { %1824 = vst.msk [vmem:[%s4159_s13] sm:$0x3] %vm1822_vm0, %v3818_v0  ;;  %v1534_v18 = vmul.f32 0.999, %v1502_v11  ;;  %v1535_v27 = vmul.f32 0.999, %v1503_v37 }
 0x1bf   :  { %1833 = vst [vmem:[%s4160_s14 + $0x40] sm:$0xff] %v1600_v1  ;;  %v1973_v2 = vperm.slane %v3818_v0, 0 }
 0x1c0   :  { %1834 = vst [vmem:[%s4160_s14 + $0x48] sm:$0xff] %v1601_v6  ;;  %v1598_v3 = vadd.f32 %v1566_v44, %v1534_v18  ;;  %v1599_v19 = vadd.f32 %v1567_v59, %v1535_v27  ;;  %v678_v44 = vadd.f32 %v2609_v28, %v677_v61  ;;  %v2778_v18 = vld [vmem:[%s4151_s5 + $0xe0] sm:$0xff] }
 0x1c1   :  { %v1588_v27 = vmul.f32 0.001, %v2778_v18 }
 0x1c2   :  { %v2154_v9 = vpack.c.bf16 %v1599_v19, %v1598_v3 }
 0x1c4   :  { %2174 = vmatpush.bf16.msrb.mxu2 %v2154_v9 }
 0x1c7   :  { %v1500_v56 = vld [vmem:[%s4155_s9 + $0x20] sm:$0xff]  ;;  %v1501_v40 = vld [vmem:[%s4155_s9 + $0x28] sm:$0xff] }
 0x1c8   :  { %1831 = vst [vmem:[%s4160_s14 + $0x30] sm:$0xff] %v1598_v3  ;;  %v1532_v33 = vmul.f32 0.999, %v1500_v56  ;;  %v1533_v63 = vmul.f32 0.999, %v1501_v40 }
 0x1c9   :  { %1832 = vst [vmem:[%s4160_s14 + $0x38] sm:$0xff] %v1599_v19 }
 0x1ca   :  { %v1596_v25 = vadd.f32 %v1564_v36, %v1532_v33  ;;  %v1597_v23 = vadd.f32 %v1565_v7, %v1533_v63  ;;  %v1589_v36 = vmul.f32 0.001, %v2779_v49 }
 0x1cc   :  { %v2153_v54 = vpack.c.bf16 %v1597_v23, %v1596_v25 }
 0x1cd   :  { %v1986_v38 = vpop.f32.mrf.mxu2 }
 0x1ce   :  { %2175 = vmatpush.bf16.msrb.mxu2 %v2153_v54  ;;  %v1987_v51 = vadd.f32 %v1986_v38, %v1973_v2 }
 0x1cf   :  { %v2000_v14 = vpop.f32.mrf.mxu3 }
 0x1d0   :  { %v1498_v10 = vld [vmem:[%s4155_s9 + $0x10] sm:$0xff]  ;;  %v1499_v26 = vld [vmem:[%s4155_s9 + $0x18] sm:$0xff]  ;;  %v2001_v37 = vadd.f32 %v2000_v14, %v1987_v51 }
 0x1d1   :  { %1829 = vst [vmem:[%s4160_s14 + $0x20] sm:$0xff] %v1596_v25  ;;  %v1530_v48 = vmul.f32 0.999, %v1498_v10  ;;  %v1531_v24 = vmul.f32 0.999, %v1499_v26  ;;  %v2781_v25 = vld [vmem:[%s4151_s5 + $0xd8] sm:$0xff] }
 0x1d2   :  { %1830 = vst [vmem:[%s4160_s14 + $0x28] sm:$0xff] %v1597_v23  ;;  %v1587_v23 = vmul.f32 0.001, %v2781_v25  ;;  %v2782_v10 = vld [vmem:[%s4151_s5 + $0xc0] sm:$0xff]  ;;  %v2784_v51 = vld [vmem:[%s4151_s5 + $0xb0] sm:$0xff] }
 0x1d3   :  { %v1594_v60 = vadd.f32 %v1562_v35, %v1530_v48  ;;  %v1595_v46 = vadd.f32 %v1563_v15, %v1531_v24  ;;  %v1586_v35 = vmul.f32 0.001, %v2780_v52  ;;  %v1584_v26 = vmul.f32 0.001, %v2782_v10  ;;  %v2783_v24 = vld [vmem:[%s4151_s5 + $0xc8] sm:$0xff] }
 0x1d4   :  { %v1585_v13 = vmul.f32 0.001, %v2783_v24  ;;  %v1582_v12 = vmul.f32 0.001, %v2784_v51 }
 0x1d5   :  { %v2152_v21 = vpack.c.bf16 %v1595_v46, %v1594_v60  ;;  %v1988_v22 = vpop.f32.mrf.mxu2 }
 0x1d6   :  { %v1989_v16 = vadd.f32 %v1988_v22, %v1973_v2 }
 0x1d7   :  { %2176 = vmatpush.bf16.msrb.mxu2 %v2152_v21  ;;  %v2002_v5 = vpop.f32.mrf.mxu3  ;;  %v2014_v58 = vpop.f32.mrf.mxu0 }
 0x1d8   :  { %v2015_v15 = vadd.f32 %v2014_v58, %v2001_v37  ;;  %v2003_v14 = vadd.f32 %v2002_v5, %v1989_v16  ;;  %v2786_v37 = vld [vmem:[%s4151_s5 + $0xa0] sm:$0xff] }
 0x1d9   :  { %v1496_v30 = vld [vmem:[%s4155_s9] sm:$0xff]  ;;  %v1497_v4 = vld [vmem:[%s4155_s9 + $0x8] sm:$0xff]  ;;  %v1580_v18 = vmul.f32 0.001, %v2786_v37 }
 0x1da   :  { %1827 = vst [vmem:[%s4160_s14 + $0x10] sm:$0xff] %v1594_v60  ;;  %v1528_v39 = vmul.f32 0.999, %v1496_v30  ;;  %v1529_v29 = vmul.f32 0.999, %v1497_v4 }
 0x1db   :  { %1828 = vst [vmem:[%s4160_s14 + $0x18] sm:$0xff] %v1595_v46 }
 0x1dc   :  { %v1592_v53 = vadd.f32 %v1560_v41, %v1528_v39  ;;  %v1593_v50 = vadd.f32 %v1561_v62, %v1529_v29 }
 0x1dd   :  { %v2042_v31 = vpop.f32.mrf.mxu2 }
 0x1de   :  { %1825 = vst [vmem:[%s4160_s14] sm:$0xff] %v1592_v53  ;;  %v2151_v17 = vpack.c.bf16 %v1593_v50, %v1592_v53 }
 0x1df   :  { %1826 = vst [vmem:[%s4160_s14 + $0x8] sm:$0xff] %v1593_v50 }
 0x1e0   :  { %2177 = vmatpush.bf16.msrb.mxu2 %v2151_v17  ;;  %v2016_v17 = vpop.f32.mrf.mxu0 }
 0x1e1   :  { %v2017_v61 = vadd.f32 %v2016_v17, %v2003_v14 }
 0x1e3   :  { %v2056_v60 = vpop.f32.mrf.mxu3 }
 0x1e6   :  { %v1526_v42 = vld [vmem:[%s4155_s9 + $0xf0] sm:$0xff]  ;;  %v1527_v59 = vld [vmem:[%s4155_s9 + $0xf8] sm:$0xff]  ;;  %v1524_v56 = vld [vmem:[%s4155_s9 + $0xe0] sm:$0xff] }
 0x1e7   :  { %v1558_v6 = vmul.f32 0.999, %v1526_v42  ;;  %v1559_v11 = vmul.f32 0.999, %v1527_v59  ;;  %v1525_v40 = vld [vmem:[%s4155_s9 + $0xe8] sm:$0xff]  ;;  %v2044_v42 = vpop.f32.mrf.mxu2 }
 0x1e8   :  { %v1556_v33 = vmul.f32 0.999, %v1524_v56  ;;  %v1557_v63 = vmul.f32 0.999, %v1525_v40 }
 0x1e9   :  { %v1622_v7 = vadd.f32 %v1590_v43, %v1558_v6  ;;  %v1623_v3 = vadd.f32 %v1591_v45, %v1559_v11  ;;  %v2785_v43 = vld [vmem:[%s4151_s5 + $0xb8] sm:$0xff] }
 0x1ea   :  { %v1620_v54 = vadd.f32 %v1588_v27, %v1556_v33  ;;  %v1621_v48 = vadd.f32 %v1589_v36, %v1557_v63  ;;  %v1583_v34 = vmul.f32 0.001, %v2785_v43  ;;  %v2787_v27 = vld [vmem:[%s4151_s5 + $0xa8] sm:$0xff] }
 0x1eb   :  { %1855 = vst [vmem:[%s4160_s14 + $0xf0] sm:$0xff] %v1622_v7  ;;  %v2166_v9 = vpack.c.bf16 %v1623_v3, %v1622_v7  ;;  %v1581_v49 = vmul.f32 0.001, %v2787_v27  ;;  %v2058_v36 = vpop.f32.mrf.mxu3 }
 0x1ec   :  { %1856 = vst [vmem:[%s4160_s14 + $0xf8] sm:$0xff] %v1623_v3  ;;  %v2165_v46 = vpack.c.bf16 %v1621_v48, %v1620_v54 }
 0x1ed   :  { %2184 = vmatpush.bf16.msrb.mxu3 %v2166_v9 }
 0x1f1   :  { %2185 = vmatpush.bf16.msrb.mxu3 %v2165_v46 }
 0x1f3   :  { %v1522_v41 = vld [vmem:[%s4155_s9 + $0xd0] sm:$0xff]  ;;  %v1523_v57 = vld [vmem:[%s4155_s9 + $0xd8] sm:$0xff]  ;;  %v1520_v62 = vld [vmem:[%s4155_s9 + $0xc0] sm:$0xff] }
 0x1f4   :  { %1853 = vst [vmem:[%s4160_s14 + $0xe0] sm:$0xff] %v1620_v54  ;;  %v1554_v28 = vmul.f32 0.999, %v1522_v41  ;;  %v1555_v30 = vmul.f32 0.999, %v1523_v57  ;;  %v2790_v57 = vld [vmem:[%s4151_s5 + $0x80] sm:$0xff] }
 0x1f5   :  { %v1552_v39 = vmul.f32 0.999, %v1520_v62  ;;  %v1576_v62 = vmul.f32 0.001, %v2790_v57 }
 0x1f6   :  { %v689_v32 = vpop.f32.mrf.mxu1  ;;  %v1618_v53 = vadd.f32 %v1586_v35, %v1554_v28  ;;  %v1619_v50 = vadd.f32 %v1587_v23, %v1555_v30  ;;  %v2788_v35 = vld [vmem:[%s4151_s5 + $0x90] sm:$0xff]  ;;  %v2070_v30 = vpop.f32.mrf.mxu0 }
 0x1f7   :  { %v3944_v8 = vadd.f32 %v689_v32, %v676_v20  ;;  %v1616_v20 = vadd.f32 %v1584_v26, %v1552_v39  ;;  %v1578_v16 = vmul.f32 0.001, %v2788_v35 }
 0x1f8   :  { %v2164_v2 = vpack.c.bf16 %v1619_v50, %v1618_v53 }
 0x1f9   :  { %v694_v55 = vmul.f32 %v3944_v8, %v3944_v8 }
 0x1fa   :  { %2186 = vmatpush.bf16.msrb.mxu3 %v2164_v2  ;;  %v1974_v2 = vperm.slane %v3818_v0, 1 }
 0x1fb   :  { %696 = vadd.xlane.f32.xlu0 %v694_v55  ;;  %v1521_v4 = vld [vmem:[%s4155_s9 + $0xc8] sm:$0xff] }
 0x1fc   :  { %1854 = vst [vmem:[%s4160_s14 + $0xe8] sm:$0xff] %v1621_v48  ;;  %v1553_v29 = vmul.f32 0.999, %v1521_v4 }
 0x1fd   :  { %1851 = vst [vmem:[%s4160_s14 + $0xd0] sm:$0xff] %v1618_v53 }
 0x1fe   :  { %v691_v1 = vpop.f32.mrf.mxu1  ;;  %v1617_v32 = vadd.f32 %v1585_v13, %v1553_v29  ;;  %1852 = vst [vmem:[%s4160_s14 + $0xd8] sm:$0xff] %v1619_v50  ;;  %v2072_v17 = vpop.f32.mrf.mxu0 }
 0x1ff   :  { %v3964_v47 = vadd.f32 %v691_v1, %v678_v44  ;;  %1849 = vst [vmem:[%s4160_s14 + $0xc0] sm:$0xff] %v1616_v20  ;;  %v2073_v51 = vadd.f32 %v2072_v17, %v1974_v2 }
 0x200   :  { %v2163_v22 = vpack.c.bf16 %v1617_v32, %v1616_v20  ;;  %1850 = vst [vmem:[%s4160_s14 + $0xc8] sm:$0xff] %v1617_v32 }
 0x201   :  { %v695_v19 = vmul.f32 %v3964_v47, %v3964_v47 }
 0x202   :  { %2187 = vmatpush.bf16.msrb.mxu3 %v2163_v22  ;;  %v2112_v22 = vpop.f32.mrf.mxu3 }
 0x203   :  { %698 = vadd.xlane.f32.xlu0 %v695_v19 }
 0x206   :  { %v2028_v38 = vpop.f32.mrf.mxu1 }
 0x207   :  { %v2029_v21 = vadd.f32 %v2028_v38, %v2015_v15  ;;  %v1518_v45 = vld [vmem:[%s4155_s9 + $0xb0] sm:$0xff]  ;;  %v1519_v5 = vld [vmem:[%s4155_s9 + $0xb8] sm:$0xff]  ;;  %v1516_v19 = vld [vmem:[%s4155_s9 + $0xa0] sm:$0xff] }
 0x208   :  { %v1550_v59 = vmul.f32 0.999, %v1518_v45  ;;  %v1551_v1 = vmul.f32 0.999, %v1519_v5  ;;  %v1517_v56 = vld [vmem:[%s4155_s9 + $0xa8] sm:$0xff]  ;;  %v2789_v15 = vld [vmem:[%s4151_s5 + $0x98] sm:$0xff] }
 0x209   :  { %v2043_v55 = vadd.f32 %v2042_v31, %v2029_v21  ;;  %v1548_v9 = vmul.f32 0.999, %v1516_v19  ;;  %v1549_v33 = vmul.f32 0.999, %v1517_v56  ;;  %v1579_v25 = vmul.f32 0.001, %v2789_v15 }
 0x20a   :  { %v1614_v58 = vadd.f32 %v1582_v12, %v1550_v59  ;;  %v1615_v7 = vadd.f32 %v1583_v34, %v1551_v1  ;;  %v2791_v38 = vld [vmem:[%s4151_s5 + $0x88] sm:$0xff]  ;;  %v2126_v34 = vpop.f32.mrf.mxu0  ;;  %v2114_v59 = vpop.f32.mrf.mxu3  ;;  %v353_v19 = vld [vmem:[%s4152_s6] sm:$0x1] }
 0x20b   :  { %v2057_v6 = vadd.f32 %v2056_v60, %v2043_v55  ;;  %v1612_v23 = vadd.f32 %v1580_v18, %v1548_v9  ;;  %v1613_v10 = vadd.f32 %v1581_v49, %v1549_v33  ;;  %v1577_v60 = vmul.f32 0.001, %v2791_v38 }
 0x20c   :  { %1847 = vst [vmem:[%s4160_s14 + $0xb0] sm:$0xff] %v1614_v58  ;;  %v2162_v40 = vpack.c.bf16 %v1615_v7, %v1614_v58  ;;  %v2071_v55 = vadd.f32 %v2070_v30, %v1974_v2  ;;  %v1626_v56 = vmul.f32 0.001, %v353_v19 }
 0x20d   :  { %v2145_v63 = vmax.f32 %v2057_v6, 0.0  ;;  %1848 = vst [vmem:[%s4160_s14 + $0xb8] sm:$0xff] %v1615_v7  ;;  %v2161_v48 = vpack.c.bf16 %v1613_v10, %v1612_v23 }
 0x20e   :  { %v2030_v44 = vpop.f32.mrf.mxu1  ;;  %2188 = vmatpush.bf16.msrb.mxu3 %v2162_v40  ;;  %v1624_v40 = vld [vmem:[%s4156_s10] sm:$0x1] }
 0x20f   :  { %v2031_v11 = vadd.f32 %v2030_v44, %v2017_v61  ;;  %v2098_v61 = vpop.f32.mrf.mxu2  ;;  %v1625_v9 = vmul.f32 0.999, %v1624_v40 }
 0x211   :  { %v2045_v3 = vadd.f32 %v2044_v42, %v2031_v11  ;;  %v1627_v33 = vadd.f32 %v1626_v56, %v1625_v9 }
 0x212   :  { %2189 = vmatpush.bf16.msrb.mxu3 %v2161_v48  ;;  %v2128_v37 = vpop.f32.mrf.mxu0 }
 0x213   :  { %v2059_v52 = vadd.f32 %v2058_v36, %v2045_v3  ;;  %1857 = vst [vmem:[%s4161_s15] sm:$0x1] %v1627_v33 }
 0x214   :  { %v1514_v31 = vld [vmem:[%s4155_s9 + $0x90] sm:$0xff]  ;;  %v1515_v54 = vld [vmem:[%s4155_s9 + $0x98] sm:$0xff] }
 0x215   :  { %v2147_v26 = vmax.f32 %v2059_v52, 0.0  ;;  %1845 = vst [vmem:[%s4160_s14 + $0xa0] sm:$0xff] %v1612_v23  ;;  %v1546_v24 = vmul.f32 0.999, %v1514_v31  ;;  %v1547_v13 = vmul.f32 0.999, %v1515_v54 }
 0x216   :  { %1846 = vst [vmem:[%s4160_s14 + $0xa8] sm:$0xff] %v1613_v10  ;;  %v2084_v32 = vpop.f32.mrf.mxu1  ;;  %v2168_v52 = vperm.slane %v1627_v33, 0 }
 0x217   :  { %v2149_v41 = vpack.c.bf16 %v2147_v26, %v2145_v63  ;;  %v1610_v46 = vadd.f32 %v1578_v16, %v1546_v24  ;;  %v1611_v28 = vadd.f32 %v1579_v25, %v1547_v13  ;;  %v2085_v43 = vadd.f32 %v2084_v32, %v2071_v55  ;;  %v2100_v5 = vpop.f32.mrf.mxu2 }
 0x219   :  { %2178 = vmatmul.bf16.vlgmr.msrb.gmra.mxu2 %v2149_v41  ;;  %v2160_v21 = vpack.c.bf16 %v1611_v28, %v1610_v46  ;;  %v2099_v44 = vadd.f32 %v2098_v61, %v2085_v43 }
 0x21b   :  { %2190 = vmatpush.bf16.msrb.mxu3 %v2160_v21  ;;  %v2113_v6 = vadd.f32 %v2112_v22, %v2099_v44 }
 0x21d   :  { %v1512_v4 = vld [vmem:[%s4155_s9 + $0x80] sm:$0xff]  ;;  %v1513_v14 = vld [vmem:[%s4155_s9 + $0x88] sm:$0xff]  ;;  %v2127_v18 = vadd.f32 %v2126_v34, %v2113_v6 }
 0x21e   :  { %1843 = vst [vmem:[%s4160_s14 + $0x90] sm:$0xff] %v1610_v46  ;;  %v1544_v39 = vmul.f32 0.999, %v1512_v4  ;;  %v1545_v29 = vmul.f32 0.999, %v1513_v14  ;;  %v2086_v12 = vpop.f32.mrf.mxu1 }
 0x21f   :  { %1844 = vst [vmem:[%s4160_s14 + $0x98] sm:$0xff] %v1611_v28  ;;  %v2087_v45 = vadd.f32 %v2086_v12, %v2073_v51 }
 0x220   :  { %v1608_v53 = vadd.f32 %v1576_v62, %v1544_v39  ;;  %v1609_v50 = vadd.f32 %v1577_v60, %v1545_v29 }
 0x221   :  { %v2101_v42 = vadd.f32 %v2100_v5, %v2087_v45 }
 0x222   :  { %1841 = vst [vmem:[%s4160_s14 + $0x80] sm:$0xff] %v1608_v53  ;;  %v2159_v20 = vpack.c.bf16 %v1609_v50, %v1608_v53 }
 0x223   :  { %1842 = vst [vmem:[%s4160_s14 + $0x88] sm:$0xff] %v1609_v50  ;;  %v2115_v11 = vadd.f32 %v2114_v59, %v2101_v42 }
 0x224   :  { %2191 = vmatpush.bf16.msrb.mxu3 %v2159_v20 }
 0x225   :  { %v2129_v27 = vadd.f32 %v2128_v37, %v2115_v11 }
 0x236   :  { %v2140_v1 = vpop.f32.mrf.mxu1 }
 0x237   :  { %v2141_v49 = vadd.f32 %v2140_v1, %v2127_v18 }
 0x239   :  { %v2146_v58 = vmax.f32 %v2141_v49, 0.0 }
 0x23e   :  { %v2142_v0 = vpop.f32.mrf.mxu1 }
 0x23f   :  { %v2143_v36 = vadd.f32 %v2142_v0, %v2129_v27 }
 0x241   :  { %v2148_v7 = vmax.f32 %v2143_v36, 0.0 }
 0x243   :  { %v2150_v3 = vpack.c.bf16 %v2148_v7, %v2146_v58 }
 0x245   :  { %2192 = vmatmul.bf16.vlgmr.msrb.gmra.mxu3 %v2150_v3 }
 0x26e   :  { %v697_v48 = vpop.xlane.xlu0 %696 }
 0x26f   :  { %v700_v24 = vmax.f32 %v697_v48, 1e-24 }
 0x271   :  { %2610 = vrsqrt.f32 %v700_v24  ;;  %vm708_vm2 = vweird.f32 %v700_v24 }
 0x276   :  { %v699_v13 = vpop.xlane.xlu0 %698 }
 0x277   :  { %v701_v41 = vmax.f32 %v699_v13, 1e-24  ;;  %v2611_v57 = vpop.eup %2610 }
 0x278   :  { %v703_v62 = vmul.f32 %v2611_v57, %v700_v24  ;;  %vm709_vm1 = vweird.f32 %v2611_v57 }
 0x279   :  { %2612 = vrsqrt.f32 %v701_v41  ;;  %vm710_vm3 = vmor %vm708_vm2, %vm709_vm1  ;;  %vm718_vm8 = vweird.f32 %v701_v41 }
 0x27a   :  { %v704_v60 = vmul.f32 %v2611_v57, %v703_v62 }
 0x27c   :  { %v705_v30 = vmul.f32 0.5, %v704_v60 }
 0x27e   :  { %v706_v39 = vsub.f32 1.5, %v705_v30 }
 0x27f   :  { %v2613_v28 = vpop.eup %2612 }
 0x280   :  { %v713_v4 = vmul.f32 %v2613_v28, %v701_v41  ;;  %v707_v32 = vmul.f32 %v2611_v57, %v706_v39  ;;  %vm719_vm7 = vweird.f32 %v2613_v28 }
 0x281   :  { %vm720_vm10 = vmor %vm718_vm8, %vm719_vm7 }
 0x282   :  { %v714_v53 = vmul.f32 %v2613_v28, %v713_v4  ;;  %v711_v22 = vsel %vm710_vm3, %v2611_v57, %v707_v32 }
 0x283   :  { %v4111_v5 = vmul.f32 %v711_v22, %v3944_v8 }
 0x284   :  { %v715_v17 = vmul.f32 0.5, %v714_v53 }
 0x286   :  { %v716_v51 = vsub.f32 1.5, %v715_v17 }
 0x288   :  { %v717_v59 = vmul.f32 %v2613_v28, %v716_v51 }
 0x28a   :  { %v721_v11 = vsel %vm720_vm10, %v2613_v28, %v717_v59 }
 0x28b   :  { %v723_v27 = vmul.f32 %v721_v11, %v3964_v47 }
 0x29c   :  { %v2179_v63 = vpop.f32.mrf.mxu2 }
 0x29d   :  { %v2180_v35 = vadd.f32 %v2179_v63, %v2168_v52 }
 0x2a4   :  { %v2181_v23 = vpop.f32.mrf.mxu2 }
 0x2a5   :  { %v2182_v10 = vadd.f32 %v2181_v23, %v2168_v52 }
 0x2c8   :  { %v2193_v16 = vpop.f32.mrf.mxu3 }
 0x2c9   :  { %v2194_v15 = vadd.f32 %v2193_v16, %v2180_v35 }
 0x2cb   :  { %v2198_v25 = vmul.f32 %v2194_v15, %v2194_v15 }
 0x2cd   :  { %2200 = vadd.xlane.f32.xlu1 %v2198_v25 }
 0x2d0   :  { %v2195_v26 = vpop.f32.mrf.mxu3 }
 0x2d1   :  { %v2196_v31 = vadd.f32 %v2195_v26, %v2182_v10 }
 0x2d3   :  { %v2199_v54 = vmul.f32 %v2196_v31, %v2196_v31 }
 0x2d5   :  { %2202 = vadd.xlane.f32.xlu1 %v2199_v54 }
 0x340   :  { %v2201_v38 = vpop.xlane.xlu1 %2200 }
 0x341   :  { %v2204_v46 = vmax.f32 %v2201_v38, 1e-24 }
 0x343   :  { %2614 = vrsqrt.f32 %v2204_v46  ;;  %vm2212_vm5 = vweird.f32 %v2204_v46 }
 0x348   :  { %v2203_v14 = vpop.xlane.xlu1 %2202 }
 0x349   :  { %v2615_v21 = vpop.eup %2614  ;;  %v2205_v29 = vmax.f32 %v2203_v14, 1e-24 }
 0x34a   :  { %v2207_v50 = vmul.f32 %v2615_v21, %v2204_v46  ;;  %vm2213_vm4 = vweird.f32 %v2615_v21 }
 0x34b   :  { %2616 = vrsqrt.f32 %v2205_v29  ;;  %vm2214_vm6 = vmor %vm2212_vm5, %vm2213_vm4  ;;  %vm2222_vm11 = vweird.f32 %v2205_v29 }
 0x34c   :  { %v2208_v20 = vmul.f32 %v2615_v21, %v2207_v50 }
 0x34e   :  { %v2209_v2 = vmul.f32 0.5, %v2208_v20 }
 0x350   :  { %v2210_v61 = vsub.f32 1.5, %v2209_v2 }
 0x351   :  { %v2617_v55 = vpop.eup %2616 }
 0x352   :  { %v2217_v12 = vmul.f32 %v2617_v55, %v2205_v29  ;;  %v2211_v43 = vmul.f32 %v2615_v21, %v2210_v61  ;;  %vm2223_vm9 = vweird.f32 %v2617_v55 }
 0x353   :  { %vm2224_vm12 = vmor %vm2222_vm11, %vm2223_vm9 }
 0x354   :  { %v2218_v34 = vmul.f32 %v2617_v55, %v2217_v12  ;;  %v2215_v45 = vsel %vm2214_vm6, %v2615_v21, %v2211_v43 }
 0x355   :  { %v2226_v44 = vmul.f32 %v2215_v45, %v2194_v15 }
 0x356   :  { %v2219_v42 = vmul.f32 0.5, %v2218_v34 }
 0x357   :  { %v2228_v1 = vmul.f32 %v2226_v44, %v4111_v5 }
 0x358   :  { %v2220_v6 = vsub.f32 1.5, %v2219_v42 }
 0x359   :  { %2230 = vadd.xlane.f32.xlu2 %v2228_v1 }
 0x35a   :  { %v2221_v37 = vmul.f32 %v2617_v55, %v2220_v6 }
 0x35c   :  { %v2225_v18 = vsel %vm2224_vm12, %v2617_v55, %v2221_v37 }
 0x35d   :  { %v2227_v8 = vmul.f32 %v2225_v18, %v2196_v31 }
 0x35f   :  { %v2229_v49 = vmul.f32 %v2227_v8, %v723_v27 }
 0x361   :  { %2232 = vadd.xlane.f32.xlu2 %v2229_v49 }
 0x3cc   :  { %v2231_v0 = vpop.xlane.xlu2 %2230 }
 0x3cd   :  { %v2234_v36 = vmul.f32 14.285714, %v2231_v0 }
 0x3cf   :  { %2236 = vst [vmem:[%s4162_s16] sm:$0xff] %v2234_v36 }
 0x3d4   :  { %v2233_v58 = vpop.xlane.xlu2 %2232 }
 0x3d5   :  { %v2235_v7 = vmul.f32 14.285714, %v2233_v58 }
 0x3d7   :  { %2237 = vst [vmem:[%s4162_s16 + $0x8] sm:$0xff] %v2235_v7 }
 0x3d8   :  { %2868 = dma.done.wait [#allocation4], 2048 }
 0x3d9   :  { %2869 = vsyncadd [#allocation4], 4294965248  ;;  %v2602_v3 = vpack.c.bf16 %v2227_v8, %v2226_v44  ;;  %s4224_s23 = sld [smem:[#allocation32_spill]]  ;;  %v2590_v47 = vld [vmem:[#allocation2 + $0x48] sm:$0xff]  ;;  %v2597_v40 = vld [vmem:[#allocation2 + $0x78] sm:$0xff]  ;;  %v2242_v54 = vpack.c.bf16 %v723_v27, %v4111_v5 }
 0x3da   :  { %v2598_v19 = vld [vmem:[#allocation2 + $0x28] sm:$0xff]  ;;  %2371 = vmatpush.bf16.xpose.msra.mxu0 %v2590_v47  ;;  %v2596_v33 = vld [vmem:[#allocation2 + $0x70] sm:$0xff]  ;;  %v2595_v52 = vld [vmem:[#allocation2 + $0x60] sm:$0xff] }
 0x3db   :  { %2385 = vmatpush.bf16.xpose.msra.mxu1 %v2598_v19  ;;  %v2589_v56 = vld [vmem:[#allocation2 + $0x8] sm:$0xff]  ;;  %v2587_v63 = vld [vmem:[#allocation2 + $0x50] sm:$0xff]  ;;  %v2586_v35 = vld [vmem:[#allocation2 + $0x18] sm:$0xff] }
 0x3dc   :  { %v2588_v9 = vld [vmem:[#allocation2 + $0x68] sm:$0xff]  ;;  %v2594_v16 = vld [vmem:[#allocation2 + $0x38] sm:$0xff]  ;;  %v2593_v25 = vld [vmem:[#allocation2 + $0x10] sm:$0xff] }
 0x3dd   :  { %v2585_v15 = vld [vmem:[#allocation2 + $0x58] sm:$0xff]  ;;  %v2584_v23 = vld [vmem:[#allocation2] sm:$0xff]  ;;  %v2583_v26 = vld [vmem:[#allocation2 + $0x30] sm:$0xff] }
 0x3de   :  { %v2592_v10 = vld [vmem:[#allocation2 + $0x20] sm:$0xff] }
 0x3df   :  { %s2412_s29 = sshra.s32 %s4224_s23, 3  ;;  %v2591_v31 = vld [vmem:[#allocation2 + $0x40] sm:$0xff] }
 0x3e0   :  { %s2580_s13 = sshll.u32 %s2412_s29, 2 }
 0x3e1   :  { %s2415_s0 = scalar_lea.vmem %s4164_s18, %s2580_s13 }
 0x3e2   :  { %2443 = vst [vmem:[%s2415_s0] sm:$0xff] %v2602_v3  ;;  %2372 = vmatpush.bf16.xpose.msra.mxu0 %v2589_v56 }
 0x3e3   :  { %2386 = vmatpush.bf16.xpose.msra.mxu1 %v2597_v40 }
 0x3ea   :  { %2373 = vmatpush.bf16.xpose.msra.mxu0 %v2588_v9 }
 0x3eb   :  { %2387 = vmatpush.bf16.xpose.msra.mxu1 %v2596_v33 }
 0x3f2   :  { %2374 = vmatpush.bf16.xpose.msra.mxu0 %v2587_v63 }
 0x3f3   :  { %2388 = vmatpush.bf16.xpose.msra.mxu1 %v2595_v52 }
 0x3fa   :  { %2375 = vmatpush.bf16.xpose.msra.mxu0 %v2586_v35 }
 0x3fb   :  { %2389 = vmatpush.bf16.xpose.msra.mxu1 %v2594_v16 }
 0x402   :  { %2376 = vmatpush.bf16.xpose.msra.mxu0 %v2585_v15 }
 0x403   :  { %2390 = vmatpush.bf16.xpose.msra.mxu1 %v2593_v25 }
 0x40a   :  { %2377 = vmatpush.bf16.xpose.msra.mxu0 %v2584_v23 }
 0x40b   :  { %2391 = vmatpush.bf16.xpose.msra.mxu1 %v2592_v10 }
 0x412   :  { %2378 = vmatpush.bf16.xpose.msra.mxu0 %v2583_v26 }
 0x413   :  { %2392 = vmatpush.bf16.xpose.msra.mxu1 %v2591_v31 }
 0x419   :  { %2379 = vmatmul.bf16.vlgmr.msra.gmra.mxu0 %v2242_v54 }
 0x41a   :  { %2393 = vmatmul.bf16.vlgmr.msra.gmra.mxu1 %v2242_v54 }
 0x496   :  { %v2380_v48 = vpop.f32.mrf.mxu0 }
 0x497   :  { %v2394_v24 = vpop.f32.mrf.mxu1  ;;  %v2399_v13 = vmul.f32 14.285714, %v2380_v48 }
 0x498   :  { %v2400_v41 = vmul.f32 14.285714, %v2394_v24 }
 0x499   :  { %2403 = vst [vmem:[%s4163_s17] sm:$0xff] %v2399_v13 }
 0x49a   :  { %2404 = vst [vmem:[%s4163_s17 + $0x8] sm:$0xff] %v2400_v41 }
 0x49e   :  { %v2382_v57 = vpop.f32.mrf.mxu0 }
 0x49f   :  { %v2396_v62 = vpop.f32.mrf.mxu1  ;;  %v2401_v38 = vmul.f32 14.285714, %v2382_v57 }
 0x4a0   :  { %v2402_v60 = vmul.f32 14.285714, %v2396_v62 }
 0x4a1   :  { %2405 = vst [vmem:[%s4163_s17 + $0x10] sm:$0xff] %v2401_v38 }
 0x4a2   :  { %2406 = vst [vmem:[%s4163_s17 + $0x18] sm:$0xff] %v2402_v60 }
 0x4a3   :  { %2449 = vsyncadd [#allocation5], 128 }
 0x4a4   :  { %2870 = dma.done.wait [#allocation5], 128 }
 0x4a5   :  { %2871 = vsyncadd [#allocation5], 4294967168  ;;  %s2460_s3 = sshll.u32 %s4158_s12, 4  ;;  %s2878_s7 = smov [#allocation12]   ;;  %s2461_s3 = int_to_ptr.hbm [resolvable:$true] %s2460_s3 }
 0x4a6   :  { %s2458_s11 = sshll.u32 %s2878_s7, 4  ;;  %s2459_s11 = int_to_ptr.vmem [resolvable:$true] %s2458_s11 }
 0x4a7   :  { %2466 = dma.vmem_to_hbm [thread:$0]  %s2459_s11, 24576, %s2461_s3, [#allocation9], %s2875_s21, %s2875_s21, %s2876_s22  }
 0x4a8   :  { %2872 = dma.done.wait [#allocation9], 24576  }
 0x4a9   :  { %2873 = vsyncadd [#allocation9], 4294942720 }
 0x4aa   :  { %2491 = vsyncpa [#allocation8], 1 }
 0x4ab   :  { %2492 = vsyncpa [#allocation11], 1 }
 0x4ac   :  { %2493 = vsyncpa [#allocation9], 1 }
 0x4ad   :  { %2494 = vsyncmov [#allocation4] }
 0x4b0   :  { %s2495_s17 = vpop.sfrf %2494 }
 0x4b1   :  { %p2581_p0 = scmp.ne.s32.totalorder %s2495_s17, 0 }
 0x4b3   :  { %2499 = shalt.err (%p2581_p0)  }
 0x4b4   :  { %2500 = vsyncmov [#allocation5] }
 0x4b7   :  { %s2501_s24 = vpop.sfrf %2500 }
 0x4b8   :  { %p2582_p1 = scmp.ne.s32.totalorder %s2501_s24, 0 }
 0x4ba   :  { %2505 = shalt.err (%p2582_p1)  }

</bundles_post_ra>
